<compile_context>
chip_gen: v6e
topology: v6e:2x2x1
jax: 0.10.0
libtpu: 0.0.40
codegen_flags: <defaults>
</compile_context>

<pallas_src>
import numpy as np

import jax
import jax.numpy as jnp
from jax import lax
from jax.experimental import pallas as pl
from jax.experimental.pallas import tpu as pltpu

EPS = 1e-5
SLOPE = 0.01                     # nn.LeakyReLU() default negative_slope
DILATIONS = (1, 2, 1, 4, 1)      # layer1..layer5 (padding == dilation, "same")
NUM_LAYERS = 5


# --------------------------- host-built structure matrices ---------------------------
def _shift_matrix(n, h, s):
    """(n*h, n*h) matrix: row (img, r) reads row (img, r+s) of the same image, else 0.

    Encodes the vertical (dy) conv tap shift, the vertical zero padding and the
    batch-boundary masking in a single tiny MXU matmul.
    """
    m = np.zeros((h, h), np.float32)
    for i in range(h):
        j = i + s
        if 0 <= j < h:
            m[i, j] = 1.0
    return np.kron(np.eye(n, dtype=np.float32), m)


def _dx_placement(w, d):
    """(3, W, W) 0/1 tensor: P[kx, src, dst] = 1 iff src == dst + (kx-1)*d, in range."""
    p = np.zeros((3, w, w), np.float32)
    for kx in range(3):
        off = (kx - 1) * d
        for col in range(w):
            src = col + off
            if 0 <= src < w:
                p[kx, src, col] = 1.0
    return p


# ------------------------------------ fused kernel ------------------------------------
def _make_fused_kernel(N, H, W, C):
    NHW = N * H * W
    inv_cnt = 1.0 / NHW

    def kernel(x_ref, sm_ref, sp_ref, m_ref, bias_ref, gamma_ref, beta_ref,
               sel_ref, selt_ref, out_ref):
        sel = sel_ref[...]      # (W*C, C)  per-channel column selector
        selt = selt_ref[...]    # (C, W*C)  per-channel lane broadcaster

        def layer(a, l, res):
            # ---- dilated 3x3 conv: 2 row-shift matmuls + 3 dense mix matmuls ----
            a_up = jnp.dot(sm_ref[l], a, preferred_element_type=jnp.float32)
            a_dn = jnp.dot(sp_ref[l], a, preferred_element_type=jnp.float32)
            acc = jnp.dot(a, m_ref[l, 1], preferred_element_type=jnp.float32)
            acc = acc + jnp.dot(a_up, m_ref[l, 0], preferred_element_type=jnp.float32)
            acc = acc + jnp.dot(a_dn, m_ref[l, 2], preferred_element_type=jnp.float32)
            acc = acc + bias_ref[l:l + 1, :]                       # (1, W*C) broadcast

            # ---- BatchNorm2d, training mode: biased batch stats over (N,H,W) ----
            rsum = jnp.sum(acc, axis=0, keepdims=True)                              # (1, W*C)
            mean_c = jnp.dot(rsum, sel, preferred_element_type=jnp.float32) * inv_cnt   # (1, C)
            mean_t = jnp.dot(mean_c, selt, preferred_element_type=jnp.float32)          # (1, W*C)
            diff = acc - mean_t
            ssum = jnp.sum(diff * diff, axis=0, keepdims=True)
            var_c = jnp.dot(ssum, sel, preferred_element_type=jnp.float32) * inv_cnt    # (1, C)
            scale_c = gamma_ref[l:l + 1, :] * lax.rsqrt(var_c + EPS)
            shift_c = beta_ref[l:l + 1, :] - mean_c * scale_c
            y = (acc * jnp.dot(scale_c, selt, preferred_element_type=jnp.float32)
                 + jnp.dot(shift_c, selt, preferred_element_type=jnp.float32))

            # ---- LeakyReLU (slope 0.01) + residual ----
            y = jnp.where(y >= 0.0, y, SLOPE * y)
            if res is not None:
                y = y + res
            return y

        a0 = x_ref[...]                 # (N*H, W*C), lane-dense
        e1 = layer(a0, 0, None)         # layer1
        e2 = layer(e1, 1, a0)           # layer2 + x
        e3 = layer(e2, 2, e1)           # layer3 + e1
        e4 = layer(e3, 3, e2)           # layer4 + e2
        e5 = layer(e4, 4, e3)           # layer5 + e3
        out_ref[...] = e5

    return kernel


# ------------------------------------- wrapper ----------------------------------------
def dconv5_forward_nchw(x_nchw, params):
    """DConv_5.forward. x_nchw: (N, C, H, W) float32 -> (N, C, H, W)."""
    N, C, H, W = x_nchw.shape
    NH, WC = N * H, W * C

    sm_l, sp_l, m_l, b_l, g_l, bt_l = [], [], [], [], [], []
    for (w, b, gamma, beta), d in zip(params, DILATIONS):
        sm_l.append(_shift_matrix(N, H, -d))          # dy = -d  (ky = 0)
        sp_l.append(_shift_matrix(N, H, +d))          # dy = +d  (ky = 2)
        P = jnp.asarray(_dx_placement(W, d))          # (3, W, W)
        # M[ky, src_w*Cin+ci, dst_w*Cout+co] = sum_kx P[kx,src,dst] * w[ky,kx,ci,co]
        m = jnp.einsum('xuw,yxic->yuiwc', P, w).reshape(3, WC, WC)
        m_l.append(m)
        b_l.append(jnp.tile(b, W))                    # (W*C,), c-minor tiling
        g_l.append(gamma)
        bt_l.append(beta)

    sm_stack = jnp.asarray(np.stack(sm_l))            # (5, N*H, N*H)
    sp_stack = jnp.asarray(np.stack(sp_l))            # (5, N*H, N*H)
    m_stack = jnp.stack(m_l)                          # (5, 3, W*C, W*C)
    bias_stack = jnp.stack(b_l)                       # (5, W*C)
    gamma_stack = jnp.stack(g_l)                      # (5, C)
    beta_stack = jnp.stack(bt_l)                      # (5, C)
    sel = jnp.asarray(np.tile(np.eye(C, dtype=np.float32), (W, 1)))   # (W*C, C)
    selt = sel.T                                                       # (C, W*C)

    # NCHW -> lane-dense (N*H, W*C); cheap one-off XLA reshuffle on a tiny tensor.
    x2d = jnp.transpose(x_nchw, (0, 2, 3, 1)).reshape(NH, WC).astype(jnp.float32)

    vspec = pl.BlockSpec(memory_space=pltpu.MemorySpace.VMEM)
    out2d = pl.pallas_call(
        _make_fused_kernel(N, H, W, C),
        out_shape=jax.ShapeDtypeStruct((NH, WC), jnp.float32),
        in_specs=[vspec] * 9,
        out_specs=vspec,
        compiler_params=pltpu.CompilerParams(vmem_limit_bytes=32 * 1024 * 1024),
    )(x2d, sm_stack, sp_stack, m_stack, bias_stack, gamma_stack, beta_stack,
      sel, selt)

    return jnp.transpose(out2d.reshape(N, H, W, C), (0, 3, 1, 2))


# ----------------------- pure-JAX reference (correctness check) -----------------------
def _ref_layer(x, w, b, gamma, beta, padding, dilation):
    out = lax.conv_general_dilated(
        x, w, window_strides=(1, 1),
        padding=[(padding, padding), (padding, padding)],
        rhs_dilation=(dilation, dilation),
        dimension_numbers=("NHWC", "HWIO", "NHWC"),
        precision=lax.Precision.HIGHEST,
    )
    out = out + b
    mean = out.mean(axis=(0, 1, 2), keepdims=True)
    var = ((out - mean) ** 2).mean(axis=(0, 1, 2), keepdims=True)
    y = (out - mean) * lax.rsqrt(var + EPS) * gamma + beta
    return jnp.where(y >= 0, y, SLOPE * y)


def _ref_forward_nchw(x_nchw, params):
    x = jnp.transpose(x_nchw, (0, 2, 3, 1)).astype(jnp.float32)
    e1 = _ref_layer(x, *params[0], 1, 1)
    e2 = _ref_layer(e1, *params[1], 2, 2) + x
    e3 = _ref_layer(e2, *params[2], 1, 1) + e1
    e4 = _ref_layer(e3, *params[3], 4, 4) + e2
    e5 = _ref_layer(e4, *params[4], 1, 1) + e3
    return jnp.transpose(e5, (0, 3, 1, 2))


def init_params(key, channels):
    params = []
    fan_in = channels * 9
    for i in range(NUM_LAYERS):
        kw, kb, kg, kbt = jax.random.split(jax.random.fold_in(key, i), 4)
        w = jax.random.uniform(kw, (3, 3, channels, channels), jnp.float32,
                               -1.0, 1.0) / jnp.sqrt(jnp.float32(fan_in))
        b = jax.random.uniform(kb, (channels,), jnp.float32,
                               -1.0, 1.0) / jnp.sqrt(jnp.float32(fan_in))
        # BatchNorm2d(affine=True) params (perturbed from init for a stronger check)
        gamma = 1.0 + 0.1 * jax.random.uniform(kg, (channels,), jnp.float32, -1.0, 1.0)
        beta = 0.1 * jax.random.uniform(kbt, (channels,), jnp.float32, -1.0, 1.0)
        params.append((w, b, gamma, beta))
    return params


if __name__ == "__main__":
    N, C, H, W = 2, 8, 16, 16          # W*C = 128 -> fully lane-dense activations
    key = jax.random.PRNGKey(0)
    kx, kp = jax.random.split(key)
    x = jax.random.normal(kx, (N, C, H, W), jnp.float32)   # NCHW like PyTorch
    params = init_params(kp, C)

    out = jax.block_until_ready(dconv5_forward_nchw(x, params))
    ref = jax.block_until_ready(_ref_forward_nchw(x, params))

    assert out.shape == (N, C, H, W)
    assert jnp.allclose(out, ref, atol=3e-4, rtol=3e-4), (
        "mismatch vs JAX reference: max abs err "
        f"{float(jnp.max(jnp.abs(out - ref)))}")
    print("KERNEL_OK")
</pallas_src>

<mosaic_0001>
module attributes {stable_mosaic.version = 11 : i64} {
  func.func @kernel(%arg0: memref<32x128xf32, #tpu.memory_space<vmem>>, %arg1: memref<5x32x32xf32, #tpu.memory_space<vmem>>, %arg2: memref<5x32x32xf32, #tpu.memory_space<vmem>>, %arg3: memref<5x3x128x128xf32, #tpu.memory_space<vmem>>, %arg4: memref<5x128xf32, #tpu.memory_space<vmem>>, %arg5: memref<5x8xf32, #tpu.memory_space<vmem>>, %arg6: memref<5x8xf32, #tpu.memory_space<vmem>>, %arg7: memref<128x8xf32, #tpu.memory_space<vmem>>, %arg8: memref<8x128xf32, #tpu.memory_space<vmem>>, %arg9: memref<32x128xf32, #tpu.memory_space<vmem>>) attributes {dimension_semantics = [], scalar_prefetch = 0 : i64, scratch_operands = 0 : i64, tpu.core_type = #tpu.core_type<tc>} {
    %c0 = arith.constant 0 : index
    %c0_0 = arith.constant 0 : index
    %0 = vector.load %arg7[%c0, %c0_0] : memref<128x8xf32, #tpu.memory_space<vmem>>, vector<128x8xf32>
    %c0_1 = arith.constant 0 : index
    %c0_2 = arith.constant 0 : index
    %1 = vector.load %arg8[%c0_1, %c0_2] : memref<8x128xf32, #tpu.memory_space<vmem>>, vector<8x128xf32>
    %c0_3 = arith.constant 0 : index
    %c0_4 = arith.constant 0 : index
    %2 = vector.load %arg0[%c0_3, %c0_4] : memref<32x128xf32, #tpu.memory_space<vmem>>, vector<32x128xf32>
    %c0_5 = arith.constant 0 : index
    %c0_6 = arith.constant 0 : index
    %c0_7 = arith.constant 0 : index
    %3 = vector.load %arg1[%c0_5, %c0_6, %c0_7] : memref<5x32x32xf32, #tpu.memory_space<vmem>>, vector<1x32x32xf32>
    %4 = vector.shape_cast %3 : vector<1x32x32xf32> to vector<32x32xf32>
    %cst = arith.constant dense<0.000000e+00> : vector<32x128xf32>
    %5 = tpu.matmul %4, %2, %cst {dimension_numbers = #tpu.dot_dimension_numbers<[1], [0], [0], [1], [0, 0, 1, 1], [], []>} : vector<32x32xf32>, vector<32x128xf32>, vector<32x128xf32> -> vector<32x128xf32>
    %c0_8 = arith.constant 0 : index
    %c0_9 = arith.constant 0 : index
    %c0_10 = arith.constant 0 : index
    %6 = vector.load %arg2[%c0_8, %c0_9, %c0_10] : memref<5x32x32xf32, #tpu.memory_space<vmem>>, vector<1x32x32xf32>
    %7 = vector.shape_cast %6 : vector<1x32x32xf32> to vector<32x32xf32>
    %cst_11 = arith.constant dense<0.000000e+00> : vector<32x128xf32>
    %8 = tpu.matmul %7, %2, %cst_11 {dimension_numbers = #tpu.dot_dimension_numbers<[1], [0], [0], [1], [0, 0, 1, 1], [], []>} : vector<32x32xf32>, vector<32x128xf32>, vector<32x128xf32> -> vector<32x128xf32>
    %c0_12 = arith.constant 0 : index
    %c1 = arith.constant 1 : index
    %c0_13 = arith.constant 0 : index
    %c0_14 = arith.constant 0 : index
    %9 = vector.load %arg3[%c0_12, %c1, %c0_13, %c0_14] : memref<5x3x128x128xf32, #tpu.memory_space<vmem>>, vector<1x1x128x128xf32>
    %10 = vector.shape_cast %9 : vector<1x1x128x128xf32> to vector<128x128xf32>
    %cst_15 = arith.constant dense<0.000000e+00> : vector<32x128xf32>
    %11 = tpu.matmul %2, %10, %cst_15 {dimension_numbers = #tpu.dot_dimension_numbers<[1], [0], [0], [1], [0, 0, 1, 1], [], []>} : vector<32x128xf32>, vector<128x128xf32>, vector<32x128xf32> -> vector<32x128xf32>
    %c0_16 = arith.constant 0 : index
    %c0_17 = arith.constant 0 : index
    %c0_18 = arith.constant 0 : index
    %c0_19 = arith.constant 0 : index
    %12 = vector.load %arg3[%c0_16, %c0_17, %c0_18, %c0_19] : memref<5x3x128x128xf32, #tpu.memory_space<vmem>>, vector<1x1x128x128xf32>
    %13 = vector.shape_cast %12 : vector<1x1x128x128xf32> to vector<128x128xf32>
    %cst_20 = arith.constant dense<0.000000e+00> : vector<32x128xf32>
    %14 = tpu.matmul %5, %13, %cst_20 {dimension_numbers = #tpu.dot_dimension_numbers<[1], [0], [0], [1], [0, 0, 1, 1], [], []>} : vector<32x128xf32>, vector<128x128xf32>, vector<32x128xf32> -> vector<32x128xf32>
    %15 = arith.addf %11, %14 : vector<32x128xf32>
    %c0_21 = arith.constant 0 : index
    %c2 = arith.constant 2 : index
    %c0_22 = arith.constant 0 : index
    %c0_23 = arith.constant 0 : index
    %16 = vector.load %arg3[%c0_21, %c2, %c0_22, %c0_23] : memref<5x3x128x128xf32, #tpu.memory_space<vmem>>, vector<1x1x128x128xf32>
    %17 = vector.shape_cast %16 : vector<1x1x128x128xf32> to vector<128x128xf32>
    %cst_24 = arith.constant dense<0.000000e+00> : vector<32x128xf32>
    %18 = tpu.matmul %8, %17, %cst_24 {dimension_numbers = #tpu.dot_dimension_numbers<[1], [0], [0], [1], [0, 0, 1, 1], [], []>} : vector<32x128xf32>, vector<128x128xf32>, vector<32x128xf32> -> vector<32x128xf32>
    %19 = arith.addf %15, %18 : vector<32x128xf32>
    %c0_25 = arith.constant 0 : index
    %c0_26 = arith.constant 0 : index
    %20 = vector.load %arg4[%c0_25, %c0_26] : memref<5x128xf32, #tpu.memory_space<vmem>>, vector<1x128xf32>
    %21 = vector.broadcast %20 : vector<1x128xf32> to vector<32x128xf32>
    %22 = arith.addf %19, %21 : vector<32x128xf32>
    %cst_27 = arith.constant dense<0.000000e+00> : vector<128xf32>
    %23 = vector.multi_reduction <add>, %22, %cst_27 [0] : vector<32x128xf32> to vector<128xf32>
    %24 = vector.shape_cast %23 : vector<128xf32> to vector<1x128xf32>
    %cst_28 = arith.constant dense<0.000000e+00> : vector<1x8xf32>
    %25 = tpu.matmul %24, %0, %cst_28 {dimension_numbers = #tpu.dot_dimension_numbers<[1], [0], [0], [1], [0, 0, 1, 1], [], []>} : vector<1x128xf32>, vector<128x8xf32>, vector<1x8xf32> -> vector<1x8xf32>
    %cst_29 = arith.constant 0.001953125 : f32
    %26 = vector.broadcast %cst_29 : f32 to vector<1x8xf32>
    %27 = arith.mulf %25, %26 : vector<1x8xf32>
    %cst_30 = arith.constant dense<0.000000e+00> : vector<1x128xf32>
    %28 = tpu.matmul %27, %1, %cst_30 {dimension_numbers = #tpu.dot_dimension_numbers<[1], [0], [0], [1], [0, 0, 1, 1], [], []>} : vector<1x8xf32>, vector<8x128xf32>, vector<1x128xf32> -> vector<1x128xf32>
    %29 = vector.broadcast %28 : vector<1x128xf32> to vector<32x128xf32>
    %30 = arith.subf %22, %29 : vector<32x128xf32>
    %31 = arith.mulf %30, %30 : vector<32x128xf32>
    %cst_31 = arith.constant dense<0.000000e+00> : vector<128xf32>
    %32 = vector.multi_reduction <add>, %31, %cst_31 [0] : vector<32x128xf32> to vector<128xf32>
    %33 = vector.shape_cast %32 : vector<128xf32> to vector<1x128xf32>
    %cst_32 = arith.constant dense<0.000000e+00> : vector<1x8xf32>
    %34 = tpu.matmul %33, %0, %cst_32 {dimension_numbers = #tpu.dot_dimension_numbers<[1], [0], [0], [1], [0, 0, 1, 1], [], []>} : vector<1x128xf32>, vector<128x8xf32>, vector<1x8xf32> -> vector<1x8xf32>
    %cst_33 = arith.constant 0.001953125 : f32
    %35 = vector.broadcast %cst_33 : f32 to vector<1x8xf32>
    %36 = arith.mulf %34, %35 : vector<1x8xf32>
    %c0_34 = arith.constant 0 : index
    %c0_35 = arith.constant 0 : index
    %37 = vector.load %arg5[%c0_34, %c0_35] : memref<5x8xf32, #tpu.memory_space<vmem>>, vector<1x8xf32>
    %cst_36 = arith.constant 9.99999974E-6 : f32
    %38 = vector.broadcast %cst_36 : f32 to vector<1x8xf32>
    %39 = arith.addf %36, %38 : vector<1x8xf32>
    %40 = math.rsqrt %39 : vector<1x8xf32>
    %41 = arith.mulf %37, %40 : vector<1x8xf32>
    %c0_37 = arith.constant 0 : index
    %c0_38 = arith.constant 0 : index
    %42 = vector.load %arg6[%c0_37, %c0_38] : memref<5x8xf32, #tpu.memory_space<vmem>>, vector<1x8xf32>
    %43 = arith.mulf %27, %41 : vector<1x8xf32>
    %44 = arith.subf %42, %43 : vector<1x8xf32>
    %cst_39 = arith.constant dense<0.000000e+00> : vector<1x128xf32>
    %45 = tpu.matmul %41, %1, %cst_39 {dimension_numbers = #tpu.dot_dimension_numbers<[1], [0], [0], [1], [0, 0, 1, 1], [], []>} : vector<1x8xf32>, vector<8x128xf32>, vector<1x128xf32> -> vector<1x128xf32>
    %46 = vector.broadcast %45 : vector<1x128xf32> to vector<32x128xf32>
    %47 = arith.mulf %22, %46 : vector<32x128xf32>
    %cst_40 = arith.constant dense<0.000000e+00> : vector<1x128xf32>
    %48 = tpu.matmul %44, %1, %cst_40 {dimension_numbers = #tpu.dot_dimension_numbers<[1], [0], [0], [1], [0, 0, 1, 1], [], []>} : vector<1x8xf32>, vector<8x128xf32>, vector<1x128xf32> -> vector<1x128xf32>
    %49 = vector.broadcast %48 : vector<1x128xf32> to vector<32x128xf32>
    %50 = arith.addf %47, %49 : vector<32x128xf32>
    %cst_41 = arith.constant 0.000000e+00 : f32
    %51 = vector.broadcast %cst_41 : f32 to vector<32x128xf32>
    %52 = arith.cmpf oge, %50, %51 : vector<32x128xf32>
    %cst_42 = arith.constant 0.00999999977 : f32
    %53 = vector.broadcast %cst_42 : f32 to vector<32x128xf32>
    %54 = arith.mulf %53, %50 : vector<32x128xf32>
    %55 = arith.select %52, %50, %54 : vector<32x128xi1>, vector<32x128xf32>
    %c1_43 = arith.constant 1 : index
    %c0_44 = arith.constant 0 : index
    %c0_45 = arith.constant 0 : index
    %56 = vector.load %arg1[%c1_43, %c0_44, %c0_45] : memref<5x32x32xf32, #tpu.memory_space<vmem>>, vector<1x32x32xf32>
    %57 = vector.shape_cast %56 : vector<1x32x32xf32> to vector<32x32xf32>
    %cst_46 = arith.constant dense<0.000000e+00> : vector<32x128xf32>
    %58 = tpu.matmul %57, %55, %cst_46 {dimension_numbers = #tpu.dot_dimension_numbers<[1], [0], [0], [1], [0, 0, 1, 1], [], []>} : vector<32x32xf32>, vector<32x128xf32>, vector<32x128xf32> -> vector<32x128xf32>
    %c1_47 = arith.constant 1 : index
    %c0_48 = arith.constant 0 : index
    %c0_49 = arith.constant 0 : index
    %59 = vector.load %arg2[%c1_47, %c0_48, %c0_49] : memref<5x32x32xf32, #tpu.memory_space<vmem>>, vector<1x32x32xf32>
    %60 = vector.shape_cast %59 : vector<1x32x32xf32> to vector<32x32xf32>
    %cst_50 = arith.constant dense<0.000000e+00> : vector<32x128xf32>
    %61 = tpu.matmul %60, %55, %cst_50 {dimension_numbers = #tpu.dot_dimension_numbers<[1], [0], [0], [1], [0, 0, 1, 1], [], []>} : vector<32x32xf32>, vector<32x128xf32>, vector<32x128xf32> -> vector<32x128xf32>
    %c1_51 = arith.constant 1 : index
    %c1_52 = arith.constant 1 : index
    %c0_53 = arith.constant 0 : index
    %c0_54 = arith.constant 0 : index
    %62 = vector.load %arg3[%c1_51, %c1_52, %c0_53, %c0_54] : memref<5x3x128x128xf32, #tpu.memory_space<vmem>>, vector<1x1x128x128xf32>
    %63 = vector.shape_cast %62 : vector<1x1x128x128xf32> to vector<128x128xf32>
    %cst_55 = arith.constant dense<0.000000e+00> : vector<32x128xf32>
    %64 = tpu.matmul %55, %63, %cst_55 {dimension_numbers = #tpu.dot_dimension_numbers<[1], [0], [0], [1], [0, 0, 1, 1], [], []>} : vector<32x128xf32>, vector<128x128xf32>, vector<32x128xf32> -> vector<32x128xf32>
    %c1_56 = arith.constant 1 : index
    %c0_57 = arith.constant 0 : index
    %c0_58 = arith.constant 0 : index
    %c0_59 = arith.constant 0 : index
    %65 = vector.load %arg3[%c1_56, %c0_57, %c0_58, %c0_59] : memref<5x3x128x128xf32, #tpu.memory_space<vmem>>, vector<1x1x128x128xf32>
    %66 = vector.shape_cast %65 : vector<1x1x128x128xf32> to vector<128x128xf32>
    %cst_60 = arith.constant dense<0.000000e+00> : vector<32x128xf32>
    %67 = tpu.matmul %58, %66, %cst_60 {dimension_numbers = #tpu.dot_dimension_numbers<[1], [0], [0], [1], [0, 0, 1, 1], [], []>} : vector<32x128xf32>, vector<128x128xf32>, vector<32x128xf32> -> vector<32x128xf32>
    %68 = arith.addf %64, %67 : vector<32x128xf32>
    %c1_61 = arith.constant 1 : index
    %c2_62 = arith.constant 2 : index
    %c0_63 = arith.constant 0 : index
    %c0_64 = arith.constant 0 : index
    %69 = vector.load %arg3[%c1_61, %c2_62, %c0_63, %c0_64] : memref<5x3x128x128xf32, #tpu.memory_space<vmem>>, vector<1x1x128x128xf32>
    %70 = vector.shape_cast %69 : vector<1x1x128x128xf32> to vector<128x128xf32>
    %cst_65 = arith.constant dense<0.000000e+00> : vector<32x128xf32>
    %71 = tpu.matmul %61, %70, %cst_65 {dimension_numbers = #tpu.dot_dimension_numbers<[1], [0], [0], [1], [0, 0, 1, 1], [], []>} : vector<32x128xf32>, vector<128x128xf32>, vector<32x128xf32> -> vector<32x128xf32>
    %72 = arith.addf %68, %71 : vector<32x128xf32>
    %c1_66 = arith.constant 1 : index
    %c0_67 = arith.constant 0 : index
    %73 = vector.load %arg4[%c1_66, %c0_67] : memref<5x128xf32, #tpu.memory_space<vmem>>, vector<1x128xf32>
    %74 = vector.broadcast %73 : vector<1x128xf32> to vector<32x128xf32>
    %75 = arith.addf %72, %74 : vector<32x128xf32>
    %cst_68 = arith.constant dense<0.000000e+00> : vector<128xf32>
    %76 = vector.multi_reduction <add>, %75, %cst_68 [0] : vector<32x128xf32> to vector<128xf32>
    %77 = vector.shape_cast %76 : vector<128xf32> to vector<1x128xf32>
    %cst_69 = arith.constant dense<0.000000e+00> : vector<1x8xf32>
    %78 = tpu.matmul %77, %0, %cst_69 {dimension_numbers = #tpu.dot_dimension_numbers<[1], [0], [0], [1], [0, 0, 1, 1], [], []>} : vector<1x128xf32>, vector<128x8xf32>, vector<1x8xf32> -> vector<1x8xf32>
    %cst_70 = arith.constant 0.001953125 : f32
    %79 = vector.broadcast %cst_70 : f32 to vector<1x8xf32>
    %80 = arith.mulf %78, %79 : vector<1x8xf32>
    %cst_71 = arith.constant dense<0.000000e+00> : vector<1x128xf32>
    %81 = tpu.matmul %80, %1, %cst_71 {dimension_numbers = #tpu.dot_dimension_numbers<[1], [0], [0], [1], [0, 0, 1, 1], [], []>} : vector<1x8xf32>, vector<8x128xf32>, vector<1x128xf32> -> vector<1x128xf32>
    %82 = vector.broadcast %81 : vector<1x128xf32> to vector<32x128xf32>
    %83 = arith.subf %75, %82 : vector<32x128xf32>
    %84 = arith.mulf %83, %83 : vector<32x128xf32>
    %cst_72 = arith.constant dense<0.000000e+00> : vector<128xf32>
    %85 = vector.multi_reduction <add>, %84, %cst_72 [0] : vector<32x128xf32> to vector<128xf32>
    %86 = vector.shape_cast %85 : vector<128xf32> to vector<1x128xf32>
    %cst_73 = arith.constant dense<0.000000e+00> : vector<1x8xf32>
    %87 = tpu.matmul %86, %0, %cst_73 {dimension_numbers = #tpu.dot_dimension_numbers<[1], [0], [0], [1], [0, 0, 1, 1], [], []>} : vector<1x128xf32>, vector<128x8xf32>, vector<1x8xf32> -> vector<1x8xf32>
    %cst_74 = arith.constant 0.001953125 : f32
    %88 = vector.broadcast %cst_74 : f32 to vector<1x8xf32>
    %89 = arith.mulf %87, %88 : vector<1x8xf32>
    %c1_75 = arith.constant 1 : index
    %c0_76 = arith.constant 0 : index
    %90 = vector.load %arg5[%c1_75, %c0_76] : memref<5x8xf32, #tpu.memory_space<vmem>>, vector<1x8xf32>
    %cst_77 = arith.constant 9.99999974E-6 : f32
    %91 = vector.broadcast %cst_77 : f32 to vector<1x8xf32>
    %92 = arith.addf %89, %91 : vector<1x8xf32>
    %93 = math.rsqrt %92 : vector<1x8xf32>
    %94 = arith.mulf %90, %93 : vector<1x8xf32>
    %c1_78 = arith.constant 1 : index
    %c0_79 = arith.constant 0 : index
    %95 = vector.load %arg6[%c1_78, %c0_79] : memref<5x8xf32, #tpu.memory_space<vmem>>, vector<1x8xf32>
    %96 = arith.mulf %80, %94 : vector<1x8xf32>
    %97 = arith.subf %95, %96 : vector<1x8xf32>
    %cst_80 = arith.constant dense<0.000000e+00> : vector<1x128xf32>
    %98 = tpu.matmul %94, %1, %cst_80 {dimension_numbers = #tpu.dot_dimension_numbers<[1], [0], [0], [1], [0, 0, 1, 1], [], []>} : vector<1x8xf32>, vector<8x128xf32>, vector<1x128xf32> -> vector<1x128xf32>
    %99 = vector.broadcast %98 : vector<1x128xf32> to vector<32x128xf32>
    %100 = arith.mulf %75, %99 : vector<32x128xf32>
    %cst_81 = arith.constant dense<0.000000e+00> : vector<1x128xf32>
    %101 = tpu.matmul %97, %1, %cst_81 {dimension_numbers = #tpu.dot_dimension_numbers<[1], [0], [0], [1], [0, 0, 1, 1], [], []>} : vector<1x8xf32>, vector<8x128xf32>, vector<1x128xf32> -> vector<1x128xf32>
    %102 = vector.broadcast %101 : vector<1x128xf32> to vector<32x128xf32>
    %103 = arith.addf %100, %102 : vector<32x128xf32>
    %cst_82 = arith.constant 0.000000e+00 : f32
    %104 = vector.broadcast %cst_82 : f32 to vector<32x128xf32>
    %105 = arith.cmpf oge, %103, %104 : vector<32x128xf32>
    %cst_83 = arith.constant 0.00999999977 : f32
    %106 = vector.broadcast %cst_83 : f32 to vector<32x128xf32>
    %107 = arith.mulf %106, %103 : vector<32x128xf32>
    %108 = arith.select %105, %103, %107 : vector<32x128xi1>, vector<32x128xf32>
    %109 = arith.addf %108, %2 : vector<32x128xf32>
    %c2_84 = arith.constant 2 : index
    %c0_85 = arith.constant 0 : index
    %c0_86 = arith.constant 0 : index
    %110 = vector.load %arg1[%c2_84, %c0_85, %c0_86] : memref<5x32x32xf32, #tpu.memory_space<vmem>>, vector<1x32x32xf32>
    %111 = vector.shape_cast %110 : vector<1x32x32xf32> to vector<32x32xf32>
    %cst_87 = arith.constant dense<0.000000e+00> : vector<32x128xf32>
    %112 = tpu.matmul %111, %109, %cst_87 {dimension_numbers = #tpu.dot_dimension_numbers<[1], [0], [0], [1], [0, 0, 1, 1], [], []>} : vector<32x32xf32>, vector<32x128xf32>, vector<32x128xf32> -> vector<32x128xf32>
    %c2_88 = arith.constant 2 : index
    %c0_89 = arith.constant 0 : index
    %c0_90 = arith.constant 0 : index
    %113 = vector.load %arg2[%c2_88, %c0_89, %c0_90] : memref<5x32x32xf32, #tpu.memory_space<vmem>>, vector<1x32x32xf32>
    %114 = vector.shape_cast %113 : vector<1x32x32xf32> to vector<32x32xf32>
    %cst_91 = arith.constant dense<0.000000e+00> : vector<32x128xf32>
    %115 = tpu.matmul %114, %109, %cst_91 {dimension_numbers = #tpu.dot_dimension_numbers<[1], [0], [0], [1], [0, 0, 1, 1], [], []>} : vector<32x32xf32>, vector<32x128xf32>, vector<32x128xf32> -> vector<32x128xf32>
    %c2_92 = arith.constant 2 : index
    %c1_93 = arith.constant 1 : index
    %c0_94 = arith.constant 0 : index
    %c0_95 = arith.constant 0 : index
    %116 = vector.load %arg3[%c2_92, %c1_93, %c0_94, %c0_95] : memref<5x3x128x128xf32, #tpu.memory_space<vmem>>, vector<1x1x128x128xf32>
    %117 = vector.shape_cast %116 : vector<1x1x128x128xf32> to vector<128x128xf32>
    %cst_96 = arith.constant dense<0.000000e+00> : vector<32x128xf32>
    %118 = tpu.matmul %109, %117, %cst_96 {dimension_numbers = #tpu.dot_dimension_numbers<[1], [0], [0], [1], [0, 0, 1, 1], [], []>} : vector<32x128xf32>, vector<128x128xf32>, vector<32x128xf32> -> vector<32x128xf32>
    %c2_97 = arith.constant 2 : index
    %c0_98 = arith.constant 0 : index
    %c0_99 = arith.constant 0 : index
    %c0_100 = arith.constant 0 : index
    %119 = vector.load %arg3[%c2_97, %c0_98, %c0_99, %c0_100] : memref<5x3x128x128xf32, #tpu.memory_space<vmem>>, vector<1x1x128x128xf32>
    %120 = vector.shape_cast %119 : vector<1x1x128x128xf32> to vector<128x128xf32>
    %cst_101 = arith.constant dense<0.000000e+00> : vector<32x128xf32>
    %121 = tpu.matmul %112, %120, %cst_101 {dimension_numbers = #tpu.dot_dimension_numbers<[1], [0], [0], [1], [0, 0, 1, 1], [], []>} : vector<32x128xf32>, vector<128x128xf32>, vector<32x128xf32> -> vector<32x128xf32>
    %122 = arith.addf %118, %121 : vector<32x128xf32>
    %c2_102 = arith.constant 2 : index
    %c2_103 = arith.constant 2 : index
    %c0_104 = arith.constant 0 : index
    %c0_105 = arith.constant 0 : index
    %123 = vector.load %arg3[%c2_102, %c2_103, %c0_104, %c0_105] : memref<5x3x128x128xf32, #tpu.memory_space<vmem>>, vector<1x1x128x128xf32>
    %124 = vector.shape_cast %123 : vector<1x1x128x128xf32> to vector<128x128xf32>
    %cst_106 = arith.constant dense<0.000000e+00> : vector<32x128xf32>
    %125 = tpu.matmul %115, %124, %cst_106 {dimension_numbers = #tpu.dot_dimension_numbers<[1], [0], [0], [1], [0, 0, 1, 1], [], []>} : vector<32x128xf32>, vector<128x128xf32>, vector<32x128xf32> -> vector<32x128xf32>
    %126 = arith.addf %122, %125 : vector<32x128xf32>
    %c2_107 = arith.constant 2 : index
    %c0_108 = arith.constant 0 : index
    %127 = vector.load %arg4[%c2_107, %c0_108] : memref<5x128xf32, #tpu.memory_space<vmem>>, vector<1x128xf32>
    %128 = vector.broadcast %127 : vector<1x128xf32> to vector<32x128xf32>
    %129 = arith.addf %126, %128 : vector<32x128xf32>
    %cst_109 = arith.constant dense<0.000000e+00> : vector<128xf32>
    %130 = vector.multi_reduction <add>, %129, %cst_109 [0] : vector<32x128xf32> to vector<128xf32>
    %131 = vector.shape_cast %130 : vector<128xf32> to vector<1x128xf32>
    %cst_110 = arith.constant dense<0.000000e+00> : vector<1x8xf32>
    %132 = tpu.matmul %131, %0, %cst_110 {dimension_numbers = #tpu.dot_dimension_numbers<[1], [0], [0], [1], [0, 0, 1, 1], [], []>} : vector<1x128xf32>, vector<128x8xf32>, vector<1x8xf32> -> vector<1x8xf32>
    %cst_111 = arith.constant 0.001953125 : f32
    %133 = vector.broadcast %cst_111 : f32 to vector<1x8xf32>
    %134 = arith.mulf %132, %133 : vector<1x8xf32>
    %cst_112 = arith.constant dense<0.000000e+00> : vector<1x128xf32>
    %135 = tpu.matmul %134, %1, %cst_112 {dimension_numbers = #tpu.dot_dimension_numbers<[1], [0], [0], [1], [0, 0, 1, 1], [], []>} : vector<1x8xf32>, vector<8x128xf32>, vector<1x128xf32> -> vector<1x128xf32>
    %136 = vector.broadcast %135 : vector<1x128xf32> to vector<32x128xf32>
    %137 = arith.subf %129, %136 : vector<32x128xf32>
    %138 = arith.mulf %137, %137 : vector<32x128xf32>
    %cst_113 = arith.constant dense<0.000000e+00> : vector<128xf32>
    %139 = vector.multi_reduction <add>, %138, %cst_113 [0] : vector<32x128xf32> to vector<128xf32>
    %140 = vector.shape_cast %139 : vector<128xf32> to vector<1x128xf32>
    %cst_114 = arith.constant dense<0.000000e+00> : vector<1x8xf32>
    %141 = tpu.matmul %140, %0, %cst_114 {dimension_numbers = #tpu.dot_dimension_numbers<[1], [0], [0], [1], [0, 0, 1, 1], [], []>} : vector<1x128xf32>, vector<128x8xf32>, vector<1x8xf32> -> vector<1x8xf32>
    %cst_115 = arith.constant 0.001953125 : f32
    %142 = vector.broadcast %cst_115 : f32 to vector<1x8xf32>
    %143 = arith.mulf %141, %142 : vector<1x8xf32>
    %c2_116 = arith.constant 2 : index
    %c0_117 = arith.constant 0 : index
    %144 = vector.load %arg5[%c2_116, %c0_117] : memref<5x8xf32, #tpu.memory_space<vmem>>, vector<1x8xf32>
    %cst_118 = arith.constant 9.99999974E-6 : f32
    %145 = vector.broadcast %cst_118 : f32 to vector<1x8xf32>
    %146 = arith.addf %143, %145 : vector<1x8xf32>
    %147 = math.rsqrt %146 : vector<1x8xf32>
    %148 = arith.mulf %144, %147 : vector<1x8xf32>
    %c2_119 = arith.constant 2 : index
    %c0_120 = arith.constant 0 : index
    %149 = vector.load %arg6[%c2_119, %c0_120] : memref<5x8xf32, #tpu.memory_space<vmem>>, vector<1x8xf32>
    %150 = arith.mulf %134, %148 : vector<1x8xf32>
    %151 = arith.subf %149, %150 : vector<1x8xf32>
    %cst_121 = arith.constant dense<0.000000e+00> : vector<1x128xf32>
    %152 = tpu.matmul %148, %1, %cst_121 {dimension_numbers = #tpu.dot_dimension_numbers<[1], [0], [0], [1], [0, 0, 1, 1], [], []>} : vector<1x8xf32>, vector<8x128xf32>, vector<1x128xf32> -> vector<1x128xf32>
    %153 = vector.broadcast %152 : vector<1x128xf32> to vector<32x128xf32>
    %154 = arith.mulf %129, %153 : vector<32x128xf32>
    %cst_122 = arith.constant dense<0.000000e+00> : vector<1x128xf32>
    %155 = tpu.matmul %151, %1, %cst_122 {dimension_numbers = #tpu.dot_dimension_numbers<[1], [0], [0], [1], [0, 0, 1, 1], [], []>} : vector<1x8xf32>, vector<8x128xf32>, vector<1x128xf32> -> vector<1x128xf32>
    %156 = vector.broadcast %155 : vector<1x128xf32> to vector<32x128xf32>
    %157 = arith.addf %154, %156 : vector<32x128xf32>
    %cst_123 = arith.constant 0.000000e+00 : f32
    %158 = vector.broadcast %cst_123 : f32 to vector<32x128xf32>
    %159 = arith.cmpf oge, %157, %158 : vector<32x128xf32>
    %cst_124 = arith.constant 0.00999999977 : f32
    %160 = vector.broadcast %cst_124 : f32 to vector<32x128xf32>
    %161 = arith.mulf %160, %157 : vector<32x128xf32>
    %162 = arith.select %159, %157, %161 : vector<32x128xi1>, vector<32x128xf32>
    %163 = arith.addf %162, %55 : vector<32x128xf32>
    %c3 = arith.constant 3 : index
    %c0_125 = arith.constant 0 : index
    %c0_126 = arith.constant 0 : index
    %164 = vector.load %arg1[%c3, %c0_125, %c0_126] : memref<5x32x32xf32, #tpu.memory_space<vmem>>, vector<1x32x32xf32>
    %165 = vector.shape_cast %164 : vector<1x32x32xf32> to vector<32x32xf32>
    %cst_127 = arith.constant dense<0.000000e+00> : vector<32x128xf32>
    %166 = tpu.matmul %165, %163, %cst_127 {dimension_numbers = #tpu.dot_dimension_numbers<[1], [0], [0], [1], [0, 0, 1, 1], [], []>} : vector<32x32xf32>, vector<32x128xf32>, vector<32x128xf32> -> vector<32x128xf32>
    %c3_128 = arith.constant 3 : index
    %c0_129 = arith.constant 0 : index
    %c0_130 = arith.constant 0 : index
    %167 = vector.load %arg2[%c3_128, %c0_129, %c0_130] : memref<5x32x32xf32, #tpu.memory_space<vmem>>, vector<1x32x32xf32>
    %168 = vector.shape_cast %167 : vector<1x32x32xf32> to vector<32x32xf32>
    %cst_131 = arith.constant dense<0.000000e+00> : vector<32x128xf32>
    %169 = tpu.matmul %168, %163, %cst_131 {dimension_numbers = #tpu.dot_dimension_numbers<[1], [0], [0], [1], [0, 0, 1, 1], [], []>} : vector<32x32xf32>, vector<32x128xf32>, vector<32x128xf32> -> vector<32x128xf32>
    %c3_132 = arith.constant 3 : index
    %c1_133 = arith.constant 1 : index
    %c0_134 = arith.constant 0 : index
    %c0_135 = arith.constant 0 : index
    %170 = vector.load %arg3[%c3_132, %c1_133, %c0_134, %c0_135] : memref<5x3x128x128xf32, #tpu.memory_space<vmem>>, vector<1x1x128x128xf32>
    %171 = vector.shape_cast %170 : vector<1x1x128x128xf32> to vector<128x128xf32>
    %cst_136 = arith.constant dense<0.000000e+00> : vector<32x128xf32>
    %172 = tpu.matmul %163, %171, %cst_136 {dimension_numbers = #tpu.dot_dimension_numbers<[1], [0], [0], [1], [0, 0, 1, 1], [], []>} : vector<32x128xf32>, vector<128x128xf32>, vector<32x128xf32> -> vector<32x128xf32>
    %c3_137 = arith.constant 3 : index
    %c0_138 = arith.constant 0 : index
    %c0_139 = arith.constant 0 : index
    %c0_140 = arith.constant 0 : index
    %173 = vector.load %arg3[%c3_137, %c0_138, %c0_139, %c0_140] : memref<5x3x128x128xf32, #tpu.memory_space<vmem>>, vector<1x1x128x128xf32>
    %174 = vector.shape_cast %173 : vector<1x1x128x128xf32> to vector<128x128xf32>
    %cst_141 = arith.constant dense<0.000000e+00> : vector<32x128xf32>
    %175 = tpu.matmul %166, %174, %cst_141 {dimension_numbers = #tpu.dot_dimension_numbers<[1], [0], [0], [1], [0, 0, 1, 1], [], []>} : vector<32x128xf32>, vector<128x128xf32>, vector<32x128xf32> -> vector<32x128xf32>
    %176 = arith.addf %172, %175 : vector<32x128xf32>
    %c3_142 = arith.constant 3 : index
    %c2_143 = arith.constant 2 : index
    %c0_144 = arith.constant 0 : index
    %c0_145 = arith.constant 0 : index
    %177 = vector.load %arg3[%c3_142, %c2_143, %c0_144, %c0_145] : memref<5x3x128x128xf32, #tpu.memory_space<vmem>>, vector<1x1x128x128xf32>
    %178 = vector.shape_cast %177 : vector<1x1x128x128xf32> to vector<128x128xf32>
    %cst_146 = arith.constant dense<0.000000e+00> : vector<32x128xf32>
    %179 = tpu.matmul %169, %178, %cst_146 {dimension_numbers = #tpu.dot_dimension_numbers<[1], [0], [0], [1], [0, 0, 1, 1], [], []>} : vector<32x128xf32>, vector<128x128xf32>, vector<32x128xf32> -> vector<32x128xf32>
    %180 = arith.addf %176, %179 : vector<32x128xf32>
    %c3_147 = arith.constant 3 : index
    %c0_148 = arith.constant 0 : index
    %181 = vector.load %arg4[%c3_147, %c0_148] : memref<5x128xf32, #tpu.memory_space<vmem>>, vector<1x128xf32>
    %182 = vector.broadcast %181 : vector<1x128xf32> to vector<32x128xf32>
    %183 = arith.addf %180, %182 : vector<32x128xf32>
    %cst_149 = arith.constant dense<0.000000e+00> : vector<128xf32>
    %184 = vector.multi_reduction <add>, %183, %cst_149 [0] : vector<32x128xf32> to vector<128xf32>
    %185 = vector.shape_cast %184 : vector<128xf32> to vector<1x128xf32>
    %cst_150 = arith.constant dense<0.000000e+00> : vector<1x8xf32>
    %186 = tpu.matmul %185, %0, %cst_150 {dimension_numbers = #tpu.dot_dimension_numbers<[1], [0], [0], [1], [0, 0, 1, 1], [], []>} : vector<1x128xf32>, vector<128x8xf32>, vector<1x8xf32> -> vector<1x8xf32>
    %cst_151 = arith.constant 0.001953125 : f32
    %187 = vector.broadcast %cst_151 : f32 to vector<1x8xf32>
    %188 = arith.mulf %186, %187 : vector<1x8xf32>
    %cst_152 = arith.constant dense<0.000000e+00> : vector<1x128xf32>
    %189 = tpu.matmul %188, %1, %cst_152 {dimension_numbers = #tpu.dot_dimension_numbers<[1], [0], [0], [1], [0, 0, 1, 1], [], []>} : vector<1x8xf32>, vector<8x128xf32>, vector<1x128xf32> -> vector<1x128xf32>
    %190 = vector.broadcast %189 : vector<1x128xf32> to vector<32x128xf32>
    %191 = arith.subf %183, %190 : vector<32x128xf32>
    %192 = arith.mulf %191, %191 : vector<32x128xf32>
    %cst_153 = arith.constant dense<0.000000e+00> : vector<128xf32>
    %193 = vector.multi_reduction <add>, %192, %cst_153 [0] : vector<32x128xf32> to vector<128xf32>
    %194 = vector.shape_cast %193 : vector<128xf32> to vector<1x128xf32>
    %cst_154 = arith.constant dense<0.000000e+00> : vector<1x8xf32>
    %195 = tpu.matmul %194, %0, %cst_154 {dimension_numbers = #tpu.dot_dimension_numbers<[1], [0], [0], [1], [0, 0, 1, 1], [], []>} : vector<1x128xf32>, vector<128x8xf32>, vector<1x8xf32> -> vector<1x8xf32>
    %cst_155 = arith.constant 0.001953125 : f32
    %196 = vector.broadcast %cst_155 : f32 to vector<1x8xf32>
    %197 = arith.mulf %195, %196 : vector<1x8xf32>
    %c3_156 = arith.constant 3 : index
    %c0_157 = arith.constant 0 : index
    %198 = vector.load %arg5[%c3_156, %c0_157] : memref<5x8xf32, #tpu.memory_space<vmem>>, vector<1x8xf32>
    %cst_158 = arith.constant 9.99999974E-6 : f32
    %199 = vector.broadcast %cst_158 : f32 to vector<1x8xf32>
    %200 = arith.addf %197, %199 : vector<1x8xf32>
    %201 = math.rsqrt %200 : vector<1x8xf32>
    %202 = arith.mulf %198, %201 : vector<1x8xf32>
    %c3_159 = arith.constant 3 : index
    %c0_160 = arith.constant 0 : index
    %203 = vector.load %arg6[%c3_159, %c0_160] : memref<5x8xf32, #tpu.memory_space<vmem>>, vector<1x8xf32>
    %204 = arith.mulf %188, %202 : vector<1x8xf32>
    %205 = arith.subf %203, %204 : vector<1x8xf32>
    %cst_161 = arith.constant dense<0.000000e+00> : vector<1x128xf32>
    %206 = tpu.matmul %202, %1, %cst_161 {dimension_numbers = #tpu.dot_dimension_numbers<[1], [0], [0], [1], [0, 0, 1, 1], [], []>} : vector<1x8xf32>, vector<8x128xf32>, vector<1x128xf32> -> vector<1x128xf32>
    %207 = vector.broadcast %206 : vector<1x128xf32> to vector<32x128xf32>
    %208 = arith.mulf %183, %207 : vector<32x128xf32>
    %cst_162 = arith.constant dense<0.000000e+00> : vector<1x128xf32>
    %209 = tpu.matmul %205, %1, %cst_162 {dimension_numbers = #tpu.dot_dimension_numbers<[1], [0], [0], [1], [0, 0, 1, 1], [], []>} : vector<1x8xf32>, vector<8x128xf32>, vector<1x128xf32> -> vector<1x128xf32>
    %210 = vector.broadcast %209 : vector<1x128xf32> to vector<32x128xf32>
    %211 = arith.addf %208, %210 : vector<32x128xf32>
    %cst_163 = arith.constant 0.000000e+00 : f32
    %212 = vector.broadcast %cst_163 : f32 to vector<32x128xf32>
    %213 = arith.cmpf oge, %211, %212 : vector<32x128xf32>
    %cst_164 = arith.constant 0.00999999977 : f32
    %214 = vector.broadcast %cst_164 : f32 to vector<32x128xf32>
    %215 = arith.mulf %214, %211 : vector<32x128xf32>
    %216 = arith.select %213, %211, %215 : vector<32x128xi1>, vector<32x128xf32>
    %217 = arith.addf %216, %109 : vector<32x128xf32>
    %c4 = arith.constant 4 : index
    %c0_165 = arith.constant 0 : index
    %c0_166 = arith.constant 0 : index
    %218 = vector.load %arg1[%c4, %c0_165, %c0_166] : memref<5x32x32xf32, #tpu.memory_space<vmem>>, vector<1x32x32xf32>
    %219 = vector.shape_cast %218 : vector<1x32x32xf32> to vector<32x32xf32>
    %cst_167 = arith.constant dense<0.000000e+00> : vector<32x128xf32>
    %220 = tpu.matmul %219, %217, %cst_167 {dimension_numbers = #tpu.dot_dimension_numbers<[1], [0], [0], [1], [0, 0, 1, 1], [], []>} : vector<32x32xf32>, vector<32x128xf32>, vector<32x128xf32> -> vector<32x128xf32>
    %c4_168 = arith.constant 4 : index
    %c0_169 = arith.constant 0 : index
    %c0_170 = arith.constant 0 : index
    %221 = vector.load %arg2[%c4_168, %c0_169, %c0_170] : memref<5x32x32xf32, #tpu.memory_space<vmem>>, vector<1x32x32xf32>
    %222 = vector.shape_cast %221 : vector<1x32x32xf32> to vector<32x32xf32>
    %cst_171 = arith.constant dense<0.000000e+00> : vector<32x128xf32>
    %223 = tpu.matmul %222, %217, %cst_171 {dimension_numbers = #tpu.dot_dimension_numbers<[1], [0], [0], [1], [0, 0, 1, 1], [], []>} : vector<32x32xf32>, vector<32x128xf32>, vector<32x128xf32> -> vector<32x128xf32>
    %c4_172 = arith.constant 4 : index
    %c1_173 = arith.constant 1 : index
    %c0_174 = arith.constant 0 : index
    %c0_175 = arith.constant 0 : index
    %224 = vector.load %arg3[%c4_172, %c1_173, %c0_174, %c0_175] : memref<5x3x128x128xf32, #tpu.memory_space<vmem>>, vector<1x1x128x128xf32>
    %225 = vector.shape_cast %224 : vector<1x1x128x128xf32> to vector<128x128xf32>
    %cst_176 = arith.constant dense<0.000000e+00> : vector<32x128xf32>
    %226 = tpu.matmul %217, %225, %cst_176 {dimension_numbers = #tpu.dot_dimension_numbers<[1], [0], [0], [1], [0, 0, 1, 1], [], []>} : vector<32x128xf32>, vector<128x128xf32>, vector<32x128xf32> -> vector<32x128xf32>
    %c4_177 = arith.constant 4 : index
    %c0_178 = arith.constant 0 : index
    %c0_179 = arith.constant 0 : index
    %c0_180 = arith.constant 0 : index
    %227 = vector.load %arg3[%c4_177, %c0_178, %c0_179, %c0_180] : memref<5x3x128x128xf32, #tpu.memory_space<vmem>>, vector<1x1x128x128xf32>
    %228 = vector.shape_cast %227 : vector<1x1x128x128xf32> to vector<128x128xf32>
    %cst_181 = arith.constant dense<0.000000e+00> : vector<32x128xf32>
    %229 = tpu.matmul %220, %228, %cst_181 {dimension_numbers = #tpu.dot_dimension_numbers<[1], [0], [0], [1], [0, 0, 1, 1], [], []>} : vector<32x128xf32>, vector<128x128xf32>, vector<32x128xf32> -> vector<32x128xf32>
    %230 = arith.addf %226, %229 : vector<32x128xf32>
    %c4_182 = arith.constant 4 : index
    %c2_183 = arith.constant 2 : index
    %c0_184 = arith.constant 0 : index
    %c0_185 = arith.constant 0 : index
    %231 = vector.load %arg3[%c4_182, %c2_183, %c0_184, %c0_185] : memref<5x3x128x128xf32, #tpu.memory_space<vmem>>, vector<1x1x128x128xf32>
    %232 = vector.shape_cast %231 : vector<1x1x128x128xf32> to vector<128x128xf32>
    %cst_186 = arith.constant dense<0.000000e+00> : vector<32x128xf32>
    %233 = tpu.matmul %223, %232, %cst_186 {dimension_numbers = #tpu.dot_dimension_numbers<[1], [0], [0], [1], [0, 0, 1, 1], [], []>} : vector<32x128xf32>, vector<128x128xf32>, vector<32x128xf32> -> vector<32x128xf32>
    %234 = arith.addf %230, %233 : vector<32x128xf32>
    %c4_187 = arith.constant 4 : index
    %c0_188 = arith.constant 0 : index
    %235 = vector.load %arg4[%c4_187, %c0_188] : memref<5x128xf32, #tpu.memory_space<vmem>>, vector<1x128xf32>
    %236 = vector.broadcast %235 : vector<1x128xf32> to vector<32x128xf32>
    %237 = arith.addf %234, %236 : vector<32x128xf32>
    %cst_189 = arith.constant dense<0.000000e+00> : vector<128xf32>
    %238 = vector.multi_reduction <add>, %237, %cst_189 [0] : vector<32x128xf32> to vector<128xf32>
    %239 = vector.shape_cast %238 : vector<128xf32> to vector<1x128xf32>
    %cst_190 = arith.constant dense<0.000000e+00> : vector<1x8xf32>
    %240 = tpu.matmul %239, %0, %cst_190 {dimension_numbers = #tpu.dot_dimension_numbers<[1], [0], [0], [1], [0, 0, 1, 1], [], []>} : vector<1x128xf32>, vector<128x8xf32>, vector<1x8xf32> -> vector<1x8xf32>
    %cst_191 = arith.constant 0.001953125 : f32
    %241 = vector.broadcast %cst_191 : f32 to vector<1x8xf32>
    %242 = arith.mulf %240, %241 : vector<1x8xf32>
    %cst_192 = arith.constant dense<0.000000e+00> : vector<1x128xf32>
    %243 = tpu.matmul %242, %1, %cst_192 {dimension_numbers = #tpu.dot_dimension_numbers<[1], [0], [0], [1], [0, 0, 1, 1], [], []>} : vector<1x8xf32>, vector<8x128xf32>, vector<1x128xf32> -> vector<1x128xf32>
    %244 = vector.broadcast %243 : vector<1x128xf32> to vector<32x128xf32>
    %245 = arith.subf %237, %244 : vector<32x128xf32>
    %246 = arith.mulf %245, %245 : vector<32x128xf32>
    %cst_193 = arith.constant dense<0.000000e+00> : vector<128xf32>
    %247 = vector.multi_reduction <add>, %246, %cst_193 [0] : vector<32x128xf32> to vector<128xf32>
    %248 = vector.shape_cast %247 : vector<128xf32> to vector<1x128xf32>
    %cst_194 = arith.constant dense<0.000000e+00> : vector<1x8xf32>
    %249 = tpu.matmul %248, %0, %cst_194 {dimension_numbers = #tpu.dot_dimension_numbers<[1], [0], [0], [1], [0, 0, 1, 1], [], []>} : vector<1x128xf32>, vector<128x8xf32>, vector<1x8xf32> -> vector<1x8xf32>
    %cst_195 = arith.constant 0.001953125 : f32
    %250 = vector.broadcast %cst_195 : f32 to vector<1x8xf32>
    %251 = arith.mulf %249, %250 : vector<1x8xf32>
    %c4_196 = arith.constant 4 : index
    %c0_197 = arith.constant 0 : index
    %252 = vector.load %arg5[%c4_196, %c0_197] : memref<5x8xf32, #tpu.memory_space<vmem>>, vector<1x8xf32>
    %cst_198 = arith.constant 9.99999974E-6 : f32
    %253 = vector.broadcast %cst_198 : f32 to vector<1x8xf32>
    %254 = arith.addf %251, %253 : vector<1x8xf32>
    %255 = math.rsqrt %254 : vector<1x8xf32>
    %256 = arith.mulf %252, %255 : vector<1x8xf32>
    %c4_199 = arith.constant 4 : index
    %c0_200 = arith.constant 0 : index
    %257 = vector.load %arg6[%c4_199, %c0_200] : memref<5x8xf32, #tpu.memory_space<vmem>>, vector<1x8xf32>
    %258 = arith.mulf %242, %256 : vector<1x8xf32>
    %259 = arith.subf %257, %258 : vector<1x8xf32>
    %cst_201 = arith.constant dense<0.000000e+00> : vector<1x128xf32>
    %260 = tpu.matmul %256, %1, %cst_201 {dimension_numbers = #tpu.dot_dimension_numbers<[1], [0], [0], [1], [0, 0, 1, 1], [], []>} : vector<1x8xf32>, vector<8x128xf32>, vector<1x128xf32> -> vector<1x128xf32>
    %261 = vector.broadcast %260 : vector<1x128xf32> to vector<32x128xf32>
    %262 = arith.mulf %237, %261 : vector<32x128xf32>
    %cst_202 = arith.constant dense<0.000000e+00> : vector<1x128xf32>
    %263 = tpu.matmul %259, %1, %cst_202 {dimension_numbers = #tpu.dot_dimension_numbers<[1], [0], [0], [1], [0, 0, 1, 1], [], []>} : vector<1x8xf32>, vector<8x128xf32>, vector<1x128xf32> -> vector<1x128xf32>
    %264 = vector.broadcast %263 : vector<1x128xf32> to vector<32x128xf32>
    %265 = arith.addf %262, %264 : vector<32x128xf32>
    %cst_203 = arith.constant 0.000000e+00 : f32
    %266 = vector.broadcast %cst_203 : f32 to vector<32x128xf32>
    %267 = arith.cmpf oge, %265, %266 : vector<32x128xf32>
    %cst_204 = arith.constant 0.00999999977 : f32
    %268 = vector.broadcast %cst_204 : f32 to vector<32x128xf32>
    %269 = arith.mulf %268, %265 : vector<32x128xf32>
    %270 = arith.select %267, %265, %269 : vector<32x128xi1>, vector<32x128xf32>
    %271 = arith.addf %270, %163 : vector<32x128xf32>
    %c0_205 = arith.constant 0 : index
    %c0_206 = arith.constant 0 : index
    %272 = vector.load %arg9[%c0_205, %c0_206] : memref<32x128xf32, #tpu.memory_space<vmem>>, vector<32x128xf32>
    tpu.vector_store %arg9[%c0_205, %c0_206], %271 {strides = array<i32>} : memref<32x128xf32, #tpu.memory_space<vmem>>, vector<32x128xf32>,
    return
  }
}

</mosaic_0001>

<bundles_post_ra>
// kernel: tpu_custom_call.1
= control target key start
LH: loop header
LB: loop body
LE: loop exit
PB: predicated region body
PF: predicated region fallthrough
CT: control target
= control target key end

     0   :  { %14 = vsyncpa [#allocation3], 0  ;;  %s7907_s0 = inlined_call_operand.vmem [shape: f32[32,128], index: 0, kind: input, shape index: {}]   ;;  %s7908_s1 = inlined_call_operand.hbm [shape: f32[5,32,32], index: 1, kind: input, shape index: {}]   ;;  %s7909_s2 = inlined_call_operand.hbm [shape: f32[5,32,32], index: 2, kind: input, shape index: {}]   ;;  %s7910_s3 = inlined_call_operand.hbm [shape: f32[5,3,128,128], index: 3, kind: input, shape index: {}]   ;;  %s7911_s4 = inlined_call_operand.vmem [shape: f32[5,128], index: 4, kind: input, shape index: {}]   ;;  %s7912_s5 = inlined_call_operand.vmem [shape: f32[5,8], index: 5, kind: input, shape index: {}]   ;;  %s7913_s6 = inlined_call_operand.vmem [shape: f32[5,8], index: 6, kind: input, shape index: {}]   ;;  %s7914_s7 = inlined_call_operand.vmem [shape: f32[128,8], index: 7, kind: input, shape index: {}]   ;;  %s7915_s8 = inlined_call_operand.vmem [shape: f32[8,128], index: 8, kind: input, shape index: {}]   ;;  %s7916_s9 = inlined_call_operand.hbm [shape: f32[32,128], index: 9, kind: output, shape index: {}]  }
   0x1   :  { %15 = vsyncpa [#allocation6], 0 }
   0x2   :  { %16 = vsyncpa [#allocation4], 0  ;;  %s6794_s30 = smov [#allocation5]   ;;  %s6795_s11 = smov [#allocation2]  }
   0x3   :  { %s36_s10 = sshll.u32 %s6794_s30, 4  ;;  %s24_s12 = sshll.u32 %s6795_s11, 4  ;;  %s37_s10 = int_to_ptr.vmem [resolvable:$true] %s36_s10  ;;  %s25_s12 = int_to_ptr.vmem [resolvable:$true] %s24_s12 }
   0x4   :  { %s6716_s13 = scalar_lea.vmem %s37_s10, 2560  ;;  %p6721_p1 = scmp.lt.s32.totalorder %s37_s10, %s37_s10 }
   0x5   :  { %p6717_p0 = scmp.ne.s32.totalorder %s37_s10, %s6716_s13  ;;  %p6722_p2 = scmp.lt.s32.totalorder %s6716_s13, %s6716_s13 }
   0x7   :  { %p6723_p3 = por %p6722_p2, %p6721_p1 }
   0x9   :  { %p6724_p4 = pnand %p6723_p3, %p6717_p0 }
   0xb   :  { %6727 = shalt.err (!%p6724_p4)
}
   0xc   :  { %s6796_s14 = smov 128   ;;  %s6797_s15 = smov 8  }
   0xd   :  { %42 = dma.hbm_to_vmem [thread:$0]  %s7909_s2, 2560, %s37_s10, [#allocation6], %s6796_s14, %s6796_s14, %s6797_s15  }
   0xe   :  { %s6736_s18 = scalar_lea.vmem %s25_s12, 2560  ;;  %p6741_p6 = scmp.lt.s32.totalorder %s25_s12, %s25_s12 }
   0xf   :  { %p6737_p5 = scmp.ne.s32.totalorder %s25_s12, %s6736_s18  ;;  %p6742_p7 = scmp.lt.s32.totalorder %s6736_s18, %s6736_s18 }
  0x11   :  { %p6743_p8 = por %p6742_p7, %p6741_p6 }
  0x13   :  { %p6744_p9 = pnand %p6743_p8, %p6737_p5 }
  0x15   :  { %6747 = shalt.err (!%p6744_p9)
}
  0x16   :  { %30 = dma.hbm_to_vmem [thread:$0]  %s7908_s1, 2560, %s25_s12, [#allocation3], %s6796_s14, %s6796_s14, %s6797_s15  }
  0x17   :  { %s6798_s21 = smov [#allocation7]  }
  0x18   :  { %s48_s22 = sshll.u32 %s6798_s21, 4  ;;  %s49_s22 = int_to_ptr.vmem [resolvable:$true] %s48_s22 }
  0x19   :  { %s6756_s23 = scalar_lea.vmem %s49_s22, 30720  ;;  %p6761_p11 = scmp.lt.s32.totalorder %s49_s22, %s49_s22 }
  0x1a   :  { %p6757_p10 = scmp.ne.s32.totalorder %s49_s22, %s6756_s23  ;;  %p6762_p12 = scmp.lt.s32.totalorder %s6756_s23, %s6756_s23 }
  0x1c   :  { %p6763_p13 = por %p6762_p12, %p6761_p11 }
  0x1e   :  { %p6764_p0 = pnand %p6763_p13, %p6757_p10 }
  0x20   :  { %6767 = shalt.err (!%p6764_p0)
}
  0x21   :  { %54 = dma.hbm_to_vmem [thread:$0]  %s7910_s3, 30720, %s49_s22, [#allocation6], %s6796_s14, %s6796_s14, %s6797_s15  }
  0x22   :  { %6788 = dma.done.wait [#allocation3], 2560  }
  0x23   :  { %6789 = vsyncadd [#allocation3], 4294964736 }
  0x24   :  { %6790 = dma.done.wait [#allocation6], 33280  }
  0x25   :  { %6791 = vsyncadd [#allocation6], 4294934016  ;;  %vm99_vm0 = vcmask 261120   ;;  %v6873_v0 = vld [vmem:[%s7907_s0 + $0x18] sm:$0xff]  ;;  %v6878_v1 = vld [vmem:[%s7907_s0 + $0x10] sm:$0xff]  ;;  %vm6800_vm1 = vmmov 0  }
  0x26   :  { %5517 = vmatprep.subr.mxu1 %v6873_v0  ;;  %v95_v2 = vld [vmem:[#allocation2] sm:$0xff]  ;;  %v6885_v3 = vld [vmem:[%s7907_s0 + $0x8] sm:$0xff]  ;;  %v330_v5 = vld [vmem:[#allocation7 + $0x78] sm:$0xff]  ;;  %vm696_vm2 = vcmask 64512  }
  0x27   :  { %5518 = vmatpush3.msra.mxu1 %v6873_v0  ;;  %5525 = vmatprep.mubr.msk.f32.mxu1 %vm99_vm0, %v95_v2  ;;  %v6893_v4 = vld [vmem:[%s7907_s0] sm:$0xff]  ;;  %v329_v6 = vld [vmem:[#allocation7 + $0x70] sm:$0xff]  ;;  %v96_v7 = vld [vmem:[#allocation2 + $0x8] sm:$0xff] }
  0x28   :  { %5519 = vmatprep.subr.mxu1 %v6878_v1  ;;  %5545 = vmatprep.subr.mxu0 %v330_v5  ;;  %v97_v8 = vld [vmem:[#allocation2 + $0x10] sm:$0xff]  ;;  %v328_v9 = vld [vmem:[#allocation7 + $0x68] sm:$0xff]  ;;  %v98_v10 = vld [vmem:[#allocation2 + $0x18] sm:$0xff] }
  0x29   :  { %5520 = vmatpush3.msra.mxu1 %v6878_v1  ;;  %5546 = vmatpush3.msra.mxu0 %v330_v5  ;;  %v197_v11 = vld [vmem:[#allocation5] sm:$0xff]  ;;  %v198_v13 = vld [vmem:[#allocation5 + $0x8] sm:$0xff]  ;;  %v314_v14 = vld [vmem:[#allocation7 + $0xf8] sm:$0xff]  ;;  %v6799_v5 = vmov 0.0  }
  0x2a   :  { %5521 = vmatprep.subr.mxu1 %v6885_v3  ;;  %5547 = vmatprep.subr.mxu0 %v329_v6  ;;  %v327_v12 = vld [vmem:[#allocation7 + $0x60] sm:$0xff]  ;;  %v199_v15 = vld [vmem:[#allocation5 + $0x10] sm:$0xff]  ;;  %v326_v17 = vld [vmem:[#allocation7 + $0x58] sm:$0xff] }
  0x2b   :  { %5522 = vmatpush3.msra.mxu1 %v6885_v3  ;;  %5548 = vmatpush3.msra.mxu0 %v329_v6  ;;  %v313_v16 = vld [vmem:[#allocation7 + $0xf0] sm:$0xff]  ;;  %v200_v18 = vld [vmem:[#allocation5 + $0x18] sm:$0xff]  ;;  %v312_v19 = vld [vmem:[#allocation7 + $0xe8] sm:$0xff] }
  0x2c   :  { %5523 = vmatprep.subr.mxu1 %v6893_v4  ;;  %5549 = vmatprep.subr.mxu0 %v328_v9  ;;  %v325_v20 = vld [vmem:[#allocation7 + $0x50] sm:$0xff]  ;;  %v311_v21 = vld [vmem:[#allocation7 + $0xe0] sm:$0xff]  ;;  %v324_v22 = vld [vmem:[#allocation7 + $0x48] sm:$0xff] }
  0x2d   :  { %5524 = vmatpush3.msra.mxu1 %v6893_v4  ;;  %5550 = vmatpush3.msra.mxu0 %v328_v9  ;;  %v310_v23 = vld [vmem:[#allocation7 + $0xd8] sm:$0xff]  ;;  %v323_v24 = vld [vmem:[#allocation7 + $0x40] sm:$0xff]  ;;  %v309_v25 = vld [vmem:[#allocation7 + $0xd0] sm:$0xff] }
  0x2e   :  { %5526 = vmatmul.mubr.msk.f32.vlgmr.msra.gmra.mxu1 %vm99_vm0, %v96_v7  ;;  %5531 = vmatprep.subr.mxu1 %v6873_v0  ;;  %v322_v26 = vld [vmem:[#allocation7 + $0x38] sm:$0xff]  ;;  %v308_v27 = vld [vmem:[#allocation7 + $0xc8] sm:$0xff]  ;;  %v321_v28 = vld [vmem:[#allocation7 + $0x30] sm:$0xff] }
  0x2f   :  { %5528 = vmatprep.mubr.msk.f32.mxu1 %vm99_vm0, %v97_v8  ;;  %5532 = vmatpush3.msra.mxu1 %v6873_v0  ;;  %v307_v29 = vld [vmem:[#allocation7 + $0xc0] sm:$0xff]  ;;  %v320_v30 = vld [vmem:[#allocation7 + $0x28] sm:$0xff]  ;;  %v306_v31 = vld [vmem:[#allocation7 + $0xb8] sm:$0xff] }
  0x30   :  { %5533 = vmatprep.subr.mxu1 %v6878_v1  ;;  %5551 = vmatprep.subr.mxu0 %v327_v12  ;;  %v319_v32 = vld [vmem:[#allocation7 + $0x20] sm:$0xff]  ;;  %v305_v33 = vld [vmem:[#allocation7 + $0xb0] sm:$0xff]  ;;  %v318_v34 = vld [vmem:[#allocation7 + $0x18] sm:$0xff] }
  0x31   :  { %5534 = vmatpush3.msra.mxu1 %v6878_v1  ;;  %5552 = vmatpush3.msra.mxu0 %v327_v12  ;;  %v304_v35 = vld [vmem:[#allocation7 + $0xa8] sm:$0xff]  ;;  %v317_v36 = vld [vmem:[#allocation7 + $0x10] sm:$0xff]  ;;  %v303_v37 = vld [vmem:[#allocation7 + $0xa0] sm:$0xff] }
  0x32   :  { %5529 = vmatmul.mubr.msk.f32.gmra.mxu1 %vm99_vm0, %v98_v10  ;;  %5535 = vmatprep.subr.mxu1 %v6885_v3  ;;  %v316_v38 = vld [vmem:[#allocation7 + $0x8] sm:$0xff]  ;;  %v302_v39 = vld [vmem:[#allocation7 + $0x98] sm:$0xff]  ;;  %v301_v40 = vld [vmem:[#allocation7 + $0x90] sm:$0xff] }
  0x33   :  { %5536 = vmatpush3.msra.mxu1 %v6885_v3  ;;  %5539 = vmatprep.mubr.msk.f32.mxu1 %vm99_vm0, %v197_v11  ;;  %v300_v41 = vld [vmem:[#allocation7 + $0x88] sm:$0xff]  ;;  %v315_v42 = vld [vmem:[#allocation7] sm:$0xff]  ;;  %v517_v44 = vld [vmem:[#allocation7 + $0x178] sm:$0xff] }
  0x34   :  { %5537 = vmatprep.subr.mxu1 %v6893_v4  ;;  %5553 = vmatprep.subr.mxu0 %v326_v17  ;;  %v299_v43 = vld [vmem:[#allocation7 + $0x80] sm:$0xff]  ;;  %v516_v47 = vld [vmem:[#allocation7 + $0x170] sm:$0xff]  ;;  %v515_v49 = vld [vmem:[#allocation7 + $0x168] sm:$0xff] }
  0x35   :  { %5538 = vmatpush3.msra.mxu1 %v6893_v4  ;;  %5554 = vmatpush3.msra.mxu0 %v326_v17  ;;  %v514_v51 = vld [vmem:[#allocation7 + $0x160] sm:$0xff]  ;;  %v513_v53 = vld [vmem:[#allocation7 + $0x158] sm:$0xff]  ;;  %v512_v55 = vld [vmem:[#allocation7 + $0x150] sm:$0xff] }
  0x36   :  { %5540 = vmatmul.mubr.msk.f32.vlgmr.msra.gmra.mxu1 %vm99_vm0, %v198_v13  ;;  %5583 = vmatprep.subr.mxu1 %v314_v14  ;;  %v511_v56 = vld [vmem:[#allocation7 + $0x148] sm:$0xff]  ;;  %v510_v57 = vld [vmem:[#allocation7 + $0x140] sm:$0xff]  ;;  %v509_v58 = vld [vmem:[#allocation7 + $0x138] sm:$0xff] }
  0x37   :  { %5542 = vmatprep.mubr.msk.f32.mxu1 %vm99_vm0, %v199_v15  ;;  %5584 = vmatpush3.msra.mxu1 %v314_v14  ;;  %v508_v59 = vld [vmem:[#allocation7 + $0x130] sm:$0xff]  ;;  %v507_v60 = vld [vmem:[#allocation7 + $0x128] sm:$0xff]  ;;  %v506_v61 = vld [vmem:[#allocation7 + $0x120] sm:$0xff] }
  0x38   :  { %5585 = vmatprep.subr.mxu1 %v313_v16  ;;  %5555 = vmatprep.subr.mxu0 %v325_v20  ;;  %v505_v62 = vld [vmem:[#allocation7 + $0x118] sm:$0xff]  ;;  %v504_v63 = vld [vmem:[#allocation7 + $0x110] sm:$0xff]  ;;  %v502_v2 = vld [vmem:[#allocation7 + $0x100] sm:$0xff] }
  0x39   :  { %5586 = vmatpush3.msra.mxu1 %v313_v16  ;;  %5556 = vmatpush3.msra.mxu0 %v325_v20  ;;  %v6927_v6 = vld [vmem:[%s7914_s7 + $0x70] sm:$0xff]  ;;  %v6941_v7 = vld [vmem:[%s7914_s7 + $0x68] sm:$0xff]  ;;  %v6949_v8 = vld [vmem:[%s7914_s7 + $0x60] sm:$0xff] }
  0x3a   :  { %5543 = vmatmul.mubr.msk.f32.gmra.mxu1 %vm99_vm0, %v200_v18  ;;  %5587 = vmatprep.subr.mxu1 %v312_v19  ;;  %v6958_v9 = vld [vmem:[%s7914_s7 + $0x58] sm:$0xff]  ;;  %v6967_v10 = vld [vmem:[%s7914_s7 + $0x50] sm:$0xff]  ;;  %v6976_v11 = vld [vmem:[%s7914_s7 + $0x48] sm:$0xff] }
  0x3b   :  { %5588 = vmatpush3.msra.mxu1 %v312_v19  ;;  %5557 = vmatprep.subr.mxu0 %v324_v22  ;;  %v6985_v12 = vld [vmem:[%s7914_s7 + $0x40] sm:$0xff]  ;;  %v6994_v13 = vld [vmem:[%s7914_s7 + $0x38] sm:$0xff]  ;;  %v7003_v14 = vld [vmem:[%s7914_s7 + $0x30] sm:$0xff] }
  0x3c   :  { %5589 = vmatprep.subr.mxu1 %v311_v21  ;;  %5558 = vmatpush3.msra.mxu0 %v324_v22  ;;  %v7012_v15 = vld [vmem:[%s7914_s7 + $0x28] sm:$0xff]  ;;  %v7021_v16 = vld [vmem:[%s7914_s7 + $0x20] sm:$0xff]  ;;  %v7030_v17 = vld [vmem:[%s7914_s7 + $0x18] sm:$0xff] }
  0x3d   :  { %5590 = vmatpush3.msra.mxu1 %v311_v21  ;;  %5559 = vmatprep.subr.mxu0 %v323_v24  ;;  %v7039_v18 = vld [vmem:[%s7914_s7 + $0x10] sm:$0xff]  ;;  %v7044_v19 = vld [vmem:[%s7914_s7 + $0x8] sm:$0xff]  ;;  %v7054_v20 = vld [vmem:[%s7914_s7] sm:$0xff] }
  0x3e   :  { %5591 = vmatprep.subr.mxu1 %v310_v23  ;;  %5560 = vmatpush3.msra.mxu0 %v323_v24 }
  0x3f   :  { %5592 = vmatpush3.msra.mxu1 %v310_v23  ;;  %5561 = vmatprep.subr.mxu0 %v322_v26 }
  0x40   :  { %5593 = vmatprep.subr.mxu1 %v309_v25  ;;  %5562 = vmatpush3.msra.mxu0 %v322_v26 }
  0x41   :  { %5594 = vmatpush3.msra.mxu1 %v309_v25  ;;  %5563 = vmatprep.subr.mxu0 %v321_v28 }
  0x42   :  { %5595 = vmatprep.subr.mxu1 %v308_v27  ;;  %5564 = vmatpush3.msra.mxu0 %v321_v28 }
  0x43   :  { %5596 = vmatpush3.msra.mxu1 %v308_v27  ;;  %5565 = vmatprep.subr.mxu0 %v320_v30 }
  0x44   :  { %5597 = vmatprep.subr.mxu1 %v307_v29  ;;  %5566 = vmatpush3.msra.mxu0 %v320_v30 }
  0x45   :  { %5598 = vmatpush3.msra.mxu1 %v307_v29  ;;  %5567 = vmatprep.subr.mxu0 %v319_v32 }
  0x46   :  { %5599 = vmatprep.subr.mxu1 %v306_v31  ;;  %5568 = vmatpush3.msra.mxu0 %v319_v32 }
  0x47   :  { %5600 = vmatpush3.msra.mxu1 %v306_v31  ;;  %5569 = vmatprep.subr.mxu0 %v318_v34 }
  0x48   :  { %5601 = vmatprep.subr.mxu1 %v305_v33  ;;  %5570 = vmatpush3.msra.mxu0 %v318_v34 }
  0x49   :  { %5602 = vmatpush3.msra.mxu1 %v305_v33  ;;  %5571 = vmatprep.subr.mxu0 %v317_v36 }
  0x4a   :  { %5603 = vmatprep.subr.mxu1 %v304_v35  ;;  %5572 = vmatpush3.msra.mxu0 %v317_v36 }
  0x4b   :  { %5604 = vmatpush3.msra.mxu1 %v304_v35  ;;  %5573 = vmatprep.subr.mxu0 %v316_v38  ;;  %v4885_v35 = vld [vmem:[%s7911_s4] ss:$0 sm:$0xff] }
  0x4c   :  { %5605 = vmatprep.subr.mxu1 %v303_v37  ;;  %5574 = vmatpush3.msra.mxu0 %v316_v38 }
  0x4d   :  { %5606 = vmatpush3.msra.mxu1 %v303_v37  ;;  %5615 = vmatprep.mubr.f32.mxu1 %v6893_v4  ;;  %v6921_v4 = vld [vmem:[%s7914_s7 + $0x78] sm:$0xff] }
  0x4e   :  { %5607 = vmatprep.subr.mxu1 %v302_v39  ;;  %5575 = vmatprep.subr.mxu0 %v315_v42 }
  0x4f   :  { %5608 = vmatpush3.msra.mxu1 %v302_v39  ;;  %5576 = vmatpush3.msra.mxu0 %v315_v42 }
  0x50   :  { %5609 = vmatprep.subr.mxu1 %v301_v40  ;;  %5621 = vmatprep.subr.mxu0 %v517_v44 }
  0x51   :  { %5610 = vmatpush3.msra.mxu1 %v301_v40 }
  0x52   :  { %5611 = vmatprep.subr.mxu1 %v300_v41 }
  0x53   :  { %5612 = vmatpush3.msra.mxu1 %v300_v41 }
  0x54   :  { %5613 = vmatprep.subr.mxu1 %v299_v43 }
  0x55   :  { %5614 = vmatpush3.msra.mxu1 %v299_v43 }
  0x56   :  { %5616 = vmatmul.mubr.f32.vlgmr.msra.gmra.mxu1 %v6885_v3  ;;  %5659 = vmatprep.subr.mxu1 %v6799_v5 }
  0x57   :  { %5618 = vmatprep.mubr.f32.mxu1 %v6878_v1  ;;  %5660 = vmatpush3.msra.mxu1 %v6921_v4 }
  0x58   :  { %5661 = vmatprep.subr.mxu1 %v6799_v5 }
  0x59   :  { %5662 = vmatpush3.msra.mxu1 %v6927_v6 }
  0x5a   :  { %5619 = vmatmul.mubr.f32.gmra.mxu1 %v6873_v0  ;;  %v503_v0 = vld [vmem:[#allocation7 + $0x108] sm:$0xff]  ;;  %5663 = vmatprep.subr.mxu1 %v6799_v5 }
  0x5b   :  { %5664 = vmatpush3.msra.mxu1 %v6941_v7  ;;  %5691 = vmatprep.mubr.msk.f32.mxu1 %vm6800_vm1, %v6799_v5 }
  0x5c   :  { %5665 = vmatprep.subr.mxu1 %v6799_v5 }
  0x5d   :  { %5666 = vmatpush3.msra.mxu1 %v6949_v8 }
  0x5e   :  { %5667 = vmatprep.subr.mxu1 %v6799_v5 }
  0x5f   :  { %5668 = vmatpush3.msra.mxu1 %v6958_v9 }
  0x60   :  { %5669 = vmatprep.subr.mxu1 %v6799_v5 }
  0x61   :  { %5670 = vmatpush3.msra.mxu1 %v6967_v10 }
  0x62   :  { %5671 = vmatprep.subr.mxu1 %v6799_v5 }
  0x63   :  { %5672 = vmatpush3.msra.mxu1 %v6976_v11 }
  0x64   :  { %5673 = vmatprep.subr.mxu1 %v6799_v5 }
  0x65   :  { %5674 = vmatpush3.msra.mxu1 %v6985_v12 }
  0x66   :  { %5675 = vmatprep.subr.mxu1 %v6799_v5 }
  0x67   :  { %5676 = vmatpush3.msra.mxu1 %v6994_v13 }
  0x68   :  { %5677 = vmatprep.subr.mxu1 %v6799_v5 }
  0x69   :  { %5678 = vmatpush3.msra.mxu1 %v7003_v14 }
  0x6a   :  { %5679 = vmatprep.subr.mxu1 %v6799_v5 }
  0x6b   :  { %5680 = vmatpush3.msra.mxu1 %v7012_v15 }
  0x6c   :  { %5681 = vmatprep.subr.mxu1 %v6799_v5 }
  0x6d   :  { %5682 = vmatpush3.msra.mxu1 %v7021_v16 }
  0x6e   :  { %5683 = vmatprep.subr.mxu1 %v6799_v5 }
  0x6f   :  { %5684 = vmatpush3.msra.mxu1 %v7030_v17 }
  0x70   :  { %5685 = vmatprep.subr.mxu1 %v6799_v5 }
  0x71   :  { %5686 = vmatpush3.msra.mxu1 %v7039_v18 }
  0x72   :  { %5687 = vmatprep.subr.mxu1 %v6799_v5 }
  0x73   :  { %5688 = vmatpush3.msra.mxu1 %v7044_v19 }
  0x74   :  { %5689 = vmatprep.subr.mxu1 %v6799_v5 }
  0x75   :  { %5690 = vmatpush3.msra.mxu1 %v7054_v20 }
  0x76   :  { %5694 = vmatprep.subr.mxu1 %v6799_v5 }
  0xee   :  { %v5527_v45 = vpop.f32.mrf.mxu1 }
  0xf0   :  { %v178_v46 = vpop.f32.mrf.mxu1 }
  0xf1   :  { %5577 = vmatprep.mubr.f32.mxu0 %v178_v46 }
  0xf2   :  { %5578 = vmatmul.mubr.f32.vlgmr.msra.gmra.mxu0 %v5527_v45  ;;  %v5530_v48 = vpop.f32.mrf.mxu1 }
  0xf3   :  { %5622 = vmatpush3.msra.mxu0 %v517_v44 }
  0xf4   :  { %5623 = vmatprep.subr.mxu0 %v516_v47  ;;  %v188_v50 = vpop.f32.mrf.mxu1 }
  0xf5   :  { %5624 = vmatpush3.msra.mxu0 %v516_v47  ;;  %5580 = vmatprep.mubr.f32.mxu0 %v188_v50 }
  0xf6   :  { %5625 = vmatprep.subr.mxu0 %v515_v49  ;;  %5581 = vmatmul.mubr.f32.gmra.mxu0 %v5530_v48  ;;  %v5541_v52 = vpop.f32.mrf.mxu1 }
  0xf7   :  { %5626 = vmatpush3.msra.mxu0 %v515_v49 }
  0xf8   :  { %5627 = vmatprep.subr.mxu0 %v514_v51  ;;  %v279_v54 = vpop.f32.mrf.mxu1 }
  0xf9   :  { %5628 = vmatpush3.msra.mxu0 %v514_v51  ;;  %5653 = vmatprep.mubr.f32.mxu0 %v279_v54 }
  0xfa   :  { %5629 = vmatprep.subr.mxu0 %v513_v53  ;;  %v5544_v1 = vpop.f32.mrf.mxu1 }
  0xfb   :  { %5630 = vmatpush3.msra.mxu0 %v513_v53 }
  0xfc   :  { %5631 = vmatprep.subr.mxu0 %v512_v55  ;;  %v289_v3 = vpop.f32.mrf.mxu1 }
  0xfd   :  { %5632 = vmatpush3.msra.mxu0 %v512_v55  ;;  %v7085_v55 = vld [vmem:[%s7915_s8] sm:$0xff] }
  0xfe   :  { %5633 = vmatprep.subr.mxu0 %v511_v56 }
  0xff   :  { %5634 = vmatpush3.msra.mxu0 %v511_v56 }
 0x100   :  { %5635 = vmatprep.subr.mxu0 %v510_v57 }
 0x101   :  { %5636 = vmatpush3.msra.mxu0 %v510_v57 }
 0x102   :  { %5637 = vmatprep.subr.mxu0 %v509_v58 }
 0x103   :  { %5638 = vmatpush3.msra.mxu0 %v509_v58 }
 0x104   :  { %5639 = vmatprep.subr.mxu0 %v508_v59 }
 0x105   :  { %5640 = vmatpush3.msra.mxu0 %v508_v59  ;;  %v770_v59 = vlaneseq }
 0x106   :  { %5641 = vmatprep.subr.mxu0 %v507_v60 }
 0x107   :  { %5642 = vmatpush3.msra.mxu0 %v507_v60  ;;  %v771_v60 = vshrl.u32 %v770_v59, 7 }
 0x108   :  { %5643 = vmatprep.subr.mxu0 %v506_v61 }
 0x109   :  { %5644 = vmatpush3.msra.mxu0 %v506_v61  ;;  %v7099_v61 = vsub.s32 0, %v771_v60 }
 0x10a   :  { %5645 = vmatprep.subr.mxu0 %v505_v62 }
 0x10b   :  { %5646 = vmatpush3.msra.mxu0 %v505_v62 }
 0x10c   :  { %5647 = vmatprep.subr.mxu0 %v504_v63 }
 0x10d   :  { %5648 = vmatpush3.msra.mxu0 %v504_v63 }
 0x10e   :  { %5649 = vmatprep.subr.mxu0 %v503_v0 }
 0x10f   :  { %5650 = vmatpush3.msra.mxu0 %v503_v0 }
 0x110   :  { %5651 = vmatprep.subr.mxu0 %v502_v2 }
 0x111   :  { %5652 = vmatpush3.msra.mxu0 %v502_v2 }
 0x112   :  { %5654 = vmatmul.mubr.f32.vlgmr.msra.gmra.mxu0 %v5541_v52  ;;  %5699 = vmatprep.subr.mxu0 %v6799_v5 }
 0x113   :  { %5656 = vmatprep.mubr.f32.mxu0 %v289_v3  ;;  %5700 = vmatpush3.msra.mxu0 %v6921_v4 }
 0x114   :  { %5701 = vmatprep.subr.mxu0 %v6799_v5 }
 0x115   :  { %5702 = vmatpush3.msra.mxu0 %v6927_v6 }
 0x116   :  { %5657 = vmatmul.mubr.f32.gmra.mxu0 %v5544_v1  ;;  %5703 = vmatprep.subr.mxu0 %v6799_v5  ;;  %v5617_v22 = vpop.f32.mrf.mxu1 }
 0x117   :  { %5704 = vmatpush3.msra.mxu0 %v6941_v7  ;;  %5731 = vmatprep.mubr.msk.f32.mxu0 %vm6800_vm1, %v6799_v5 }
 0x118   :  { %5705 = vmatprep.subr.mxu0 %v6799_v5  ;;  %v482_v25 = vpop.f32.mrf.mxu1 }
 0x119   :  { %5706 = vmatpush3.msra.mxu0 %v6949_v8 }
 0x11a   :  { %5707 = vmatprep.subr.mxu0 %v6799_v5  ;;  %v5620_v26 = vpop.f32.mrf.mxu1 }
 0x11b   :  { %5708 = vmatpush3.msra.mxu0 %v6958_v9 }
 0x11c   :  { %5709 = vmatprep.subr.mxu0 %v6799_v5  ;;  %v492_v31 = vpop.f32.mrf.mxu1 }
 0x11d   :  { %5710 = vmatpush3.msra.mxu0 %v6967_v10 }
 0x11e   :  { %5711 = vmatprep.subr.mxu0 %v6799_v5 }
 0x11f   :  { %5712 = vmatpush3.msra.mxu0 %v6976_v11 }
 0x120   :  { %5713 = vmatprep.subr.mxu0 %v6799_v5 }
 0x121   :  { %5714 = vmatpush3.msra.mxu0 %v6985_v12 }
 0x122   :  { %5715 = vmatprep.subr.mxu0 %v6799_v5 }
 0x123   :  { %5716 = vmatpush3.msra.mxu0 %v6994_v13 }
 0x124   :  { %5717 = vmatprep.subr.mxu0 %v6799_v5 }
 0x125   :  { %5718 = vmatpush3.msra.mxu0 %v7003_v14 }
 0x126   :  { %5719 = vmatprep.subr.mxu0 %v6799_v5 }
 0x127   :  { %5720 = vmatpush3.msra.mxu0 %v7012_v15 }
 0x128   :  { %5721 = vmatprep.subr.mxu0 %v6799_v5 }
 0x129   :  { %5722 = vmatpush3.msra.mxu0 %v7021_v16 }
 0x12a   :  { %5723 = vmatprep.subr.mxu0 %v6799_v5 }
 0x12b   :  { %5724 = vmatpush3.msra.mxu0 %v7030_v17 }
 0x12c   :  { %5725 = vmatprep.subr.mxu0 %v6799_v5 }
 0x12d   :  { %5726 = vmatpush3.msra.mxu0 %v7039_v18 }
 0x12e   :  { %5727 = vmatprep.subr.mxu0 %v6799_v5 }
 0x12f   :  { %5728 = vmatpush3.msra.mxu0 %v7044_v19 }
 0x130   :  { %5729 = vmatprep.subr.mxu0 %v6799_v5 }
 0x131   :  { %5730 = vmatpush3.msra.mxu0 %v7054_v20 }
 0x1b2   :  { %v5579_v21 = vpop.f32.mrf.mxu0 }
 0x1b3   :  { %v488_v29 = vadd.f32 %v5617_v22, %v5579_v21 }
 0x1b4   :  { %v397_v23 = vpop.f32.mrf.mxu0 }
 0x1b5   :  { %v483_v30 = vadd.f32 %v482_v25, %v397_v23 }
 0x1b6   :  { %v5582_v24 = vpop.f32.mrf.mxu0 }
 0x1b7   :  { %v498_v37 = vadd.f32 %v5620_v26, %v5582_v24 }
 0x1b8   :  { %v407_v27 = vpop.f32.mrf.mxu0 }
 0x1b9   :  { %v493_v38 = vadd.f32 %v492_v31, %v407_v27 }
 0x1d2   :  { %v5655_v28 = vpop.f32.mrf.mxu0 }
 0x1d3   :  { %v604_v33 = vadd.f32 %v5655_v28, %v488_v29 }
 0x1d4   :  { %v584_v32 = vpop.f32.mrf.mxu0 }
 0x1d5   :  { %v603_v34 = vadd.f32 %v584_v32, %v483_v30  ;;  %v7072_v41 = vadd.f32 %v4885_v35, %v604_v33 }
 0x1d6   :  { %v5658_v36 = vpop.f32.mrf.mxu0 }
 0x1d7   :  { %v7070_v39 = vadd.f32 %v4885_v35, %v603_v34  ;;  %v606_v42 = vadd.f32 %v5658_v36, %v498_v37  ;;  %v1262_v36 = vld [vmem:[#allocation7 + $0x270] sm:$0xff]  ;;  %v1261_v37 = vld [vmem:[#allocation7 + $0x268] sm:$0xff] }
 0x1d8   :  { %v594_v40 = vpop.f32.mrf.mxu0 }
 0x1d9   :  { %v605_v43 = vadd.f32 %v594_v40, %v493_v38  ;;  %v616_v44 = vadd.f32 %v7072_v41, %v7070_v39  ;;  %v7078_v46 = vadd.f32 %v4885_v35, %v606_v42  ;;  %v1260_v38 = vld [vmem:[#allocation7 + $0x260] sm:$0xff]  ;;  %v1259_v40 = vld [vmem:[#allocation7 + $0x258] sm:$0xff]  ;;  %v1258_v42 = vld [vmem:[#allocation7 + $0x250] sm:$0xff] }
 0x1db   :  { %v7076_v45 = vadd.f32 %v4885_v35, %v605_v43  ;;  %v1263_v35 = vld [vmem:[#allocation7 + $0x278] sm:$0xff]  ;;  %v1257_v43 = vld [vmem:[#allocation7 + $0x248] sm:$0xff] }
 0x1dc   :  { %5810 = vmatprep.subr.mxu0 %v1263_v35 }
 0x1dd   :  { %v617_v47 = vadd.f32 %v616_v44, %v7076_v45  ;;  %v1256_v44 = vld [vmem:[#allocation7 + $0x240] sm:$0xff] }
 0x1df   :  { %v618_v48 = vadd.f32 %v617_v47, %v7078_v46  ;;  %v1255_v47 = vld [vmem:[#allocation7 + $0x238] sm:$0xff] }
 0x1e1   :  { %v619_v49 = vrot.slane %v618_v48, 4 }
 0x1e3   :  { %v620_v50 = vadd.f32 %v619_v49, %v618_v48  ;;  %v1254_v48 = vld [vmem:[#allocation7 + $0x230] sm:$0xff] }
 0x1e5   :  { %v621_v51 = vrot.slane %v620_v50, 2 }
 0x1e7   :  { %v622_v52 = vadd.f32 %v621_v51, %v620_v50 }
 0x1e9   :  { %v623_v53 = vrot.slane %v622_v52, 1 }
 0x1eb   :  { %v624_v54 = vadd.f32 %v623_v53, %v622_v52  ;;  %v862_v53 = vld [vmem:[%s7912_s5] sm:$0x1] }
 0x1ed   :  { %5692 = vmatmul.mubr.f32.vlgmr.msra.gmra.mxu1 %v624_v54 }
 0x1ee   :  { %5695 = vmatpush3.msra.mxu1 %v7085_v55  ;;  %5696 = vmatprep.mubr.msk.f32.mxu1 %vm6800_vm1, %v6799_v5 }
 0x1ef   :  { %5734 = vmatprep.subr.mxu1 %v6799_v5 }
 0x2ad   :  { %v691_v56 = vpop.f32.mrf.mxu1 }
 0x2ae   :  { %v7091_v57 = vmul.f32 0.001953125, %v691_v56 }
 0x2af   :  { %v5693_v58 = vpop.f32.mrf.mxu1 }
 0x2b0   :  { %5697 = vmatmul.mubr.msk.f32.vlgmr.msra.gmra.mxu1 %vm696_vm2, %v7091_v57  ;;  %v866_v58 = vld [vmem:[%s7913_s6] sm:$0x1] }
 0x2b1   :  { %5735 = vmatpush3.msra.mxu1 %v7085_v55  ;;  %5736 = vmatprep.mubr.msk.f32.mxu1 %vm6800_vm1, %v6799_v5 }
 0x2b2   :  { %5739 = vmatprep.subr.mxu1 %v6799_v5 }
 0x370   :  { %v766_v62 = vpop.f32.mrf.mxu1 }
 0x371   :  { %v773_v63 = vrot.slane %v766_v62, %v7099_v61  ;;  %v1253_v62 = vld [vmem:[#allocation7 + $0x228] sm:$0xff] }
 0x372   :  { %v5698_v0 = vpop.f32.mrf.mxu1 }
 0x373   :  { %v774_v1 = vsub.f32 %v7070_v39, %v773_v63  ;;  %v775_v2 = vsub.f32 %v7072_v41, %v773_v63  ;;  %v776_v3 = vsub.f32 %v7076_v45, %v773_v63  ;;  %v777_v21 = vsub.f32 %v7078_v46, %v773_v63  ;;  %v1252_v63 = vld [vmem:[#allocation7 + $0x220] sm:$0xff]  ;;  %v1251_v0 = vld [vmem:[#allocation7 + $0x218] sm:$0xff] }
 0x375   :  { %v778_v22 = vmul.f32 %v774_v1, %v774_v1  ;;  %v779_v23 = vmul.f32 %v775_v2, %v775_v2  ;;  %v780_v24 = vmul.f32 %v776_v3, %v776_v3  ;;  %v781_v26 = vmul.f32 %v777_v21, %v777_v21  ;;  %v1250_v1 = vld [vmem:[#allocation7 + $0x210] sm:$0xff]  ;;  %v1248_v2 = vld [vmem:[#allocation7 + $0x200] sm:$0xff] }
 0x376   :  { %v1044_v3 = vld [vmem:[#allocation2 + $0x20] sm:$0xff] }
 0x377   :  { %v782_v25 = vadd.f32 %v779_v23, %v778_v22 }
 0x379   :  { %v783_v27 = vadd.f32 %v782_v25, %v780_v24 }
 0x37b   :  { %v784_v28 = vadd.f32 %v783_v27, %v781_v26 }
 0x37d   :  { %v785_v29 = vrot.slane %v784_v28, 4 }
 0x37f   :  { %v786_v30 = vadd.f32 %v785_v29, %v784_v28 }
 0x381   :  { %v787_v31 = vrot.slane %v786_v30, 2 }
 0x383   :  { %v788_v32 = vadd.f32 %v787_v31, %v786_v30 }
 0x385   :  { %v789_v33 = vrot.slane %v788_v32, 1 }
 0x387   :  { %v790_v34 = vadd.f32 %v789_v33, %v788_v32 }
 0x389   :  { %5732 = vmatmul.mubr.f32.vlgmr.msra.gmra.mxu0 %v790_v34 }
 0x38a   :  { %5811 = vmatpush3.msra.mxu0 %v1263_v35 }
 0x38b   :  { %5812 = vmatprep.subr.mxu0 %v1262_v36 }
 0x38c   :  { %5813 = vmatpush3.msra.mxu0 %v1262_v36 }
 0x38d   :  { %5814 = vmatprep.subr.mxu0 %v1261_v37 }
 0x38e   :  { %5815 = vmatpush3.msra.mxu0 %v1261_v37 }
 0x38f   :  { %5816 = vmatprep.subr.mxu0 %v1260_v38 }
 0x390   :  { %5817 = vmatpush3.msra.mxu0 %v1260_v38 }
 0x391   :  { %5818 = vmatprep.subr.mxu0 %v1259_v40 }
 0x392   :  { %5819 = vmatpush3.msra.mxu0 %v1259_v40  ;;  %v1045_v40 = vld [vmem:[#allocation2 + $0x28] sm:$0xff] }
 0x393   :  { %5820 = vmatprep.subr.mxu0 %v1258_v42 }
 0x394   :  { %5821 = vmatpush3.msra.mxu0 %v1258_v42  ;;  %v1046_v42 = vld [vmem:[#allocation2 + $0x30] sm:$0xff] }
 0x395   :  { %5822 = vmatprep.subr.mxu0 %v1257_v43 }
 0x396   :  { %5823 = vmatpush3.msra.mxu0 %v1257_v43  ;;  %v1047_v43 = vld [vmem:[#allocation2 + $0x38] sm:$0xff] }
 0x397   :  { %5824 = vmatprep.subr.mxu0 %v1256_v44 }
 0x398   :  { %5825 = vmatpush3.msra.mxu0 %v1256_v44  ;;  %v1146_v44 = vld [vmem:[#allocation5 + $0x20] sm:$0xff] }
 0x399   :  { %5826 = vmatprep.subr.mxu0 %v1255_v47 }
 0x39a   :  { %5827 = vmatpush3.msra.mxu0 %v1255_v47  ;;  %v1147_v47 = vld [vmem:[#allocation5 + $0x28] sm:$0xff] }
 0x39b   :  { %5828 = vmatprep.subr.mxu0 %v1254_v48 }
 0x39c   :  { %5829 = vmatpush3.msra.mxu0 %v1254_v48  ;;  %v1280_v48 = vld [vmem:[#allocation7 + $0x1f8] sm:$0xff] }
 0x39d   :  { %5830 = vmatprep.subr.mxu0 %v1253_v62 }
 0x39e   :  { %5831 = vmatpush3.msra.mxu0 %v1253_v62  ;;  %v1271_v62 = vld [vmem:[#allocation7 + $0x1b0] sm:$0xff] }
 0x39f   :  { %5832 = vmatprep.subr.mxu0 %v1252_v63 }
 0x3a0   :  { %5833 = vmatpush3.msra.mxu0 %v1252_v63  ;;  %v1270_v63 = vld [vmem:[#allocation7 + $0x1a8] sm:$0xff] }
 0x3a1   :  { %5834 = vmatprep.subr.mxu0 %v1251_v0 }
 0x3a2   :  { %5835 = vmatpush3.msra.mxu0 %v1251_v0  ;;  %v1269_v0 = vld [vmem:[#allocation7 + $0x1a0] sm:$0xff] }
 0x3a3   :  { %5836 = vmatprep.subr.mxu0 %v1250_v1 }
 0x3a4   :  { %5837 = vmatpush3.msra.mxu0 %v1250_v1  ;;  %v1268_v1 = vld [vmem:[#allocation7 + $0x198] sm:$0xff] }
 0x449   :  { %v857_v49 = vpop.f32.mrf.mxu0 }
 0x44a   :  { %v861_v50 = vmul.f32 0.001953125, %v857_v49  ;;  %v1148_v49 = vld [vmem:[#allocation5 + $0x30] sm:$0xff] }
 0x44b   :  { %v5733_v51 = vpop.f32.mrf.mxu0 }
 0x44c   :  { %v863_v52 = vadd.f32 1e-05, %v861_v50  ;;  %v1279_v50 = vld [vmem:[#allocation7 + $0x1f0] sm:$0xff]  ;;  %v1149_v51 = vld [vmem:[#allocation5 + $0x38] sm:$0xff] }
 0x44e   :  { %6660 = vrsqrt.f32 %v863_v52  ;;  %v1278_v52 = vld [vmem:[#allocation7 + $0x1e8] sm:$0xff] }
 0x45b   :  { %v6661_v54 = vpop.eup %6660 }
 0x45c   :  { %v865_v56 = vmul.f32 %v6661_v54, %v862_v53  ;;  %v1277_v53 = vld [vmem:[#allocation7 + $0x1e0] sm:$0xff]  ;;  %v1276_v54 = vld [vmem:[#allocation7 + $0x1d8] sm:$0xff] }
 0x45e   :  { %5737 = vmatmul.mubr.msk.f32.vlgmr.msra.gmra.mxu1 %vm696_vm2, %v865_v56  ;;  %v867_v59 = vmul.f32 %v865_v56, %v7091_v57  ;;  %v1249_v57 = vld [vmem:[#allocation7 + $0x208] sm:$0xff]  ;;  %v1275_v56 = vld [vmem:[#allocation7 + $0x1d0] sm:$0xff] }
 0x45f   :  { %5740 = vmatpush3.msra.mxu1 %v7085_v55  ;;  %5741 = vmatprep.mubr.msk.f32.mxu1 %vm6800_vm1, %v6799_v5 }
 0x460   :  { %v868_v60 = vsub.f32 %v866_v58, %v867_v59  ;;  %5838 = vmatprep.subr.mxu0 %v1249_v57  ;;  %v1274_v58 = vld [vmem:[#allocation7 + $0x1c8] sm:$0xff]  ;;  %v1273_v59 = vld [vmem:[#allocation7 + $0x1c0] sm:$0xff] }
 0x461   :  { %5839 = vmatpush3.msra.mxu0 %v1249_v57  ;;  %v1267_v57 = vld [vmem:[#allocation7 + $0x190] sm:$0xff] }
 0x462   :  { %5742 = vmatmul.mubr.msk.f32.vlgmr.msra.gmra.mxu1 %vm696_vm2, %v868_v60  ;;  %5840 = vmatprep.subr.mxu0 %v1248_v2  ;;  %v1272_v60 = vld [vmem:[#allocation7 + $0x1b8] sm:$0xff] }
 0x463   :  { %5841 = vmatpush3.msra.mxu0 %v1248_v2  ;;  %5752 = vmatprep.mubr.msk.f32.mxu1 %vm99_vm0, %v1044_v3  ;;  %v1266_v2 = vld [vmem:[#allocation7 + $0x188] sm:$0xff]  ;;  %v1265_v3 = vld [vmem:[#allocation7 + $0x180] sm:$0xff] }
 0x464   :  { %5886 = vmatprep.subr.mxu0 %v6799_v5 }
 0x51e   :  { %v938_v21 = vpop.f32.mrf.mxu1 }
 0x51f   :  { %v945_v22 = vrot.slane %v938_v21, %v7099_v61  ;;  %v1467_v21 = vld [vmem:[#allocation7 + $0x2f8] sm:$0xff] }
 0x520   :  { %v5738_v23 = vpop.f32.mrf.mxu1 }
 0x521   :  { %v946_v24 = vmul.f32 %v945_v22, %v7070_v39  ;;  %v947_v26 = vmul.f32 %v945_v22, %v7072_v41  ;;  %v948_v27 = vmul.f32 %v945_v22, %v7076_v45  ;;  %v949_v28 = vmul.f32 %v945_v22, %v7078_v46 }
 0x522   :  { %v1019_v25 = vpop.f32.mrf.mxu1 }
 0x523   :  { %v1026_v29 = vrot.slane %v1019_v25, %v7099_v61 }
 0x524   :  { %v5743_v30 = vpop.f32.mrf.mxu1 }
 0x525   :  { %v1027_v31 = vadd.f32 %v1026_v29, %v946_v24  ;;  %v1028_v32 = vadd.f32 %v1026_v29, %v947_v26  ;;  %v1029_v33 = vadd.f32 %v1026_v29, %v948_v27  ;;  %v1030_v34 = vadd.f32 %v1026_v29, %v949_v28  ;;  %v1466_v24 = vld [vmem:[#allocation7 + $0x2f0] sm:$0xff]  ;;  %v1465_v26 = vld [vmem:[#allocation7 + $0x2e8] sm:$0xff]  ;;  %v1464_v28 = vld [vmem:[#allocation7 + $0x2e0] sm:$0xff] }
 0x526   :  { %v1463_v30 = vld [vmem:[#allocation7 + $0x2d8] sm:$0xff] }
 0x527   :  { %vm1034_vm3 = vcmp.ge.f32.partialorder %v1030_v34, 0.0  ;;  %v1038_v35 = vmul.f32 0.01, %v1030_v34  ;;  %vm1031_vm4 = vcmp.ge.f32.partialorder %v1027_v31, 0.0  ;;  %v1035_v36 = vmul.f32 0.01, %v1027_v31 }
 0x528   :  { %vm1032_vm5 = vcmp.ge.f32.partialorder %v1028_v32, 0.0  ;;  %v1036_v39 = vmul.f32 0.01, %v1028_v32  ;;  %vm1033_vm6 = vcmp.ge.f32.partialorder %v1029_v33, 0.0  ;;  %v1037_v37 = vmul.f32 0.01, %v1029_v33 }
 0x529   :  { %v7126_v41 = vsel %vm1034_vm3, %v1030_v34, %v1038_v35  ;;  %v7128_v45 = vsel %vm1031_vm4, %v1027_v31, %v1035_v36  ;;  %v1460_v34 = vld [vmem:[#allocation7 + $0x2c0] sm:$0xff]  ;;  %v1459_v35 = vld [vmem:[#allocation7 + $0x2b8] sm:$0xff]  ;;  %v1458_v36 = vld [vmem:[#allocation7 + $0x2b0] sm:$0xff] }
 0x52a   :  { %5744 = vmatprep.subr.mxu1 %v7126_v41  ;;  %5842 = vmatprep.mubr.f32.mxu0 %v7128_v45  ;;  %v7132_v46 = vsel %vm1032_vm5, %v1028_v32, %v1036_v39  ;;  %v7136_v38 = vsel %vm1033_vm6, %v1029_v33, %v1037_v37  ;;  %v1462_v32 = vld [vmem:[#allocation7 + $0x2d0] sm:$0xff]  ;;  %v1461_v33 = vld [vmem:[#allocation7 + $0x2c8] sm:$0xff]  ;;  %v1456_v37 = vld [vmem:[#allocation7 + $0x2a0] sm:$0xff] }
 0x52b   :  { %5745 = vmatpush3.msra.mxu1 %v7126_v41  ;;  %5843 = vmatmul.mubr.f32.vlgmr.msra.gmra.mxu0 %v7132_v46  ;;  %v1457_v39 = vld [vmem:[#allocation7 + $0x2a8] sm:$0xff] }
 0x52c   :  { %5746 = vmatprep.subr.mxu1 %v7136_v38  ;;  %5845 = vmatprep.mubr.f32.mxu0 %v7136_v38 }
 0x52d   :  { %5747 = vmatpush3.msra.mxu1 %v7136_v38  ;;  %5887 = vmatpush3.msra.mxu0 %v6921_v4 }
 0x52e   :  { %5748 = vmatprep.subr.mxu1 %v7132_v46  ;;  %5888 = vmatprep.subr.mxu0 %v6799_v5 }
 0x52f   :  { %5749 = vmatpush3.msra.mxu1 %v7132_v46  ;;  %5846 = vmatmul.mubr.f32.gmra.mxu0 %v7126_v41 }
 0x530   :  { %5750 = vmatprep.subr.mxu1 %v7128_v45  ;;  %5889 = vmatpush3.msra.mxu0 %v6927_v6 }
 0x531   :  { %5751 = vmatpush3.msra.mxu1 %v7128_v45  ;;  %5890 = vmatprep.subr.mxu0 %v6799_v5 }
 0x532   :  { %5753 = vmatmul.mubr.msk.f32.vlgmr.msra.gmra.mxu1 %vm99_vm0, %v1045_v40  ;;  %5758 = vmatprep.subr.mxu1 %v7126_v41  ;;  %v1455_v40 = vld [vmem:[#allocation7 + $0x298] sm:$0xff] }
 0x533   :  { %5759 = vmatpush3.msra.mxu1 %v7126_v41  ;;  %5755 = vmatprep.mubr.msk.f32.mxu1 %vm99_vm0, %v1046_v42  ;;  %v1454_v42 = vld [vmem:[#allocation7 + $0x290] sm:$0xff] }
 0x534   :  { %5760 = vmatprep.subr.mxu1 %v7136_v38  ;;  %5891 = vmatpush3.msra.mxu0 %v6941_v7 }
 0x535   :  { %5761 = vmatpush3.msra.mxu1 %v7136_v38  ;;  %5892 = vmatprep.subr.mxu0 %v6799_v5 }
 0x536   :  { %5756 = vmatmul.mubr.msk.f32.gmra.mxu1 %vm99_vm0, %v1047_v43  ;;  %5762 = vmatprep.subr.mxu1 %v7132_v46  ;;  %v1453_v43 = vld [vmem:[#allocation7 + $0x288] sm:$0xff] }
 0x537   :  { %5763 = vmatpush3.msra.mxu1 %v7132_v46  ;;  %5766 = vmatprep.mubr.msk.f32.mxu1 %vm99_vm0, %v1146_v44 }
 0x538   :  { %5764 = vmatprep.subr.mxu1 %v7128_v45  ;;  %5893 = vmatpush3.msra.mxu0 %v6949_v8 }
 0x539   :  { %5765 = vmatpush3.msra.mxu1 %v7128_v45  ;;  %5894 = vmatprep.subr.mxu0 %v6799_v5 }
 0x53a   :  { %5767 = vmatmul.mubr.msk.f32.vlgmr.msra.gmra.mxu1 %vm99_vm0, %v1147_v47  ;;  %5772 = vmatprep.subr.mxu1 %v1280_v48  ;;  %v1452_v47 = vld [vmem:[#allocation7 + $0x280] sm:$0xff] }
 0x53b   :  { %5769 = vmatprep.mubr.msk.f32.mxu1 %vm99_vm0, %v1148_v49  ;;  %5773 = vmatpush3.msra.mxu1 %v1280_v48 }
 0x53c   :  { %5774 = vmatprep.subr.mxu1 %v1279_v50  ;;  %5895 = vmatpush3.msra.mxu0 %v6958_v9 }
 0x53d   :  { %5775 = vmatpush3.msra.mxu1 %v1279_v50  ;;  %5896 = vmatprep.subr.mxu0 %v6799_v5 }
 0x53e   :  { %5770 = vmatmul.mubr.msk.f32.gmra.mxu1 %vm99_vm0, %v1149_v51  ;;  %5776 = vmatprep.subr.mxu1 %v1278_v52 }
 0x53f   :  { %5777 = vmatpush3.msra.mxu1 %v1278_v52  ;;  %5897 = vmatpush3.msra.mxu0 %v6967_v10 }
 0x540   :  { %5778 = vmatprep.subr.mxu1 %v1277_v53  ;;  %5898 = vmatprep.subr.mxu0 %v6799_v5 }
 0x541   :  { %5779 = vmatpush3.msra.mxu1 %v1277_v53  ;;  %5899 = vmatpush3.msra.mxu0 %v6976_v11 }
 0x542   :  { %5780 = vmatprep.subr.mxu1 %v1276_v54  ;;  %5900 = vmatprep.subr.mxu0 %v6799_v5 }
 0x543   :  { %5781 = vmatpush3.msra.mxu1 %v1276_v54  ;;  %5901 = vmatpush3.msra.mxu0 %v6985_v12 }
 0x544   :  { %5782 = vmatprep.subr.mxu1 %v1275_v56  ;;  %5902 = vmatprep.subr.mxu0 %v6799_v5 }
 0x545   :  { %5783 = vmatpush3.msra.mxu1 %v1275_v56  ;;  %5903 = vmatpush3.msra.mxu0 %v6994_v13 }
 0x546   :  { %5784 = vmatprep.subr.mxu1 %v1274_v58  ;;  %5904 = vmatprep.subr.mxu0 %v6799_v5 }
 0x547   :  { %5785 = vmatpush3.msra.mxu1 %v1274_v58  ;;  %5905 = vmatpush3.msra.mxu0 %v7003_v14 }
 0x548   :  { %5786 = vmatprep.subr.mxu1 %v1273_v59  ;;  %5906 = vmatprep.subr.mxu0 %v6799_v5 }
 0x549   :  { %5787 = vmatpush3.msra.mxu1 %v1273_v59  ;;  %5907 = vmatpush3.msra.mxu0 %v7012_v15 }
 0x54a   :  { %5788 = vmatprep.subr.mxu1 %v1272_v60  ;;  %5908 = vmatprep.subr.mxu0 %v6799_v5 }
 0x54b   :  { %5789 = vmatpush3.msra.mxu1 %v1272_v60  ;;  %5909 = vmatpush3.msra.mxu0 %v7021_v16 }
 0x54c   :  { %5790 = vmatprep.subr.mxu1 %v1271_v62  ;;  %5910 = vmatprep.subr.mxu0 %v6799_v5 }
 0x54d   :  { %5791 = vmatpush3.msra.mxu1 %v1271_v62  ;;  %5911 = vmatpush3.msra.mxu0 %v7030_v17 }
 0x54e   :  { %5792 = vmatprep.subr.mxu1 %v1270_v63  ;;  %5912 = vmatprep.subr.mxu0 %v6799_v5 }
 0x54f   :  { %5793 = vmatpush3.msra.mxu1 %v1270_v63  ;;  %5913 = vmatpush3.msra.mxu0 %v7039_v18 }
 0x550   :  { %5794 = vmatprep.subr.mxu1 %v1269_v0  ;;  %5914 = vmatprep.subr.mxu0 %v6799_v5 }
 0x551   :  { %5795 = vmatpush3.msra.mxu1 %v1269_v0  ;;  %5915 = vmatpush3.msra.mxu0 %v7044_v19 }
 0x552   :  { %5916 = vmatprep.subr.mxu0 %v6799_v5  ;;  %5918 = vmatprep.mubr.msk.f32.mxu0 %vm6800_vm1, %v6799_v5 }
 0x553   :  { %5917 = vmatpush3.msra.mxu0 %v7054_v20  ;;  %5796 = vmatprep.subr.mxu1 %v1268_v1 }
 0x554   :  { %5921 = vmatprep.subr.mxu0 %v6799_v5  ;;  %5797 = vmatpush3.msra.mxu1 %v1268_v1 }
 0x555   :  { %5798 = vmatprep.subr.mxu1 %v1267_v57 }
 0x556   :  { %5799 = vmatpush3.msra.mxu1 %v1267_v57 }
 0x557   :  { %5800 = vmatprep.subr.mxu1 %v1266_v2 }
 0x558   :  { %5801 = vmatpush3.msra.mxu1 %v1266_v2 }
 0x559   :  { %5802 = vmatprep.subr.mxu1 %v1265_v3 }
 0x55a   :  { %5803 = vmatpush3.msra.mxu1 %v1265_v3 }
 0x55b   :  { %5848 = vmatprep.subr.mxu1 %v1467_v21 }
 0x5f2   :  { %v5754_v22 = vpop.f32.mrf.mxu1 }
 0x5f4   :  { %v1126_v23 = vpop.f32.mrf.mxu1 }
 0x5f5   :  { %5804 = vmatprep.mubr.f32.mxu1 %v1126_v23 }
 0x5f6   :  { %v5757_v25 = vpop.f32.mrf.mxu1  ;;  %5805 = vmatmul.mubr.f32.vlgmr.msra.gmra.mxu1 %v5754_v22 }
 0x5f7   :  { %5849 = vmatpush3.msra.mxu1 %v1467_v21 }
 0x5f8   :  { %5850 = vmatprep.subr.mxu1 %v1466_v24  ;;  %v1136_v27 = vpop.f32.mrf.mxu1 }
 0x5f9   :  { %5851 = vmatpush3.msra.mxu1 %v1466_v24  ;;  %5807 = vmatprep.mubr.f32.mxu1 %v1136_v27 }
 0x5fa   :  { %5852 = vmatprep.subr.mxu1 %v1465_v26  ;;  %5808 = vmatmul.mubr.f32.gmra.mxu1 %v5757_v25  ;;  %v5768_v29 = vpop.f32.mrf.mxu1 }
 0x5fb   :  { %5853 = vmatpush3.msra.mxu1 %v1465_v26 }
 0x5fc   :  { %5854 = vmatprep.subr.mxu1 %v1464_v28  ;;  %v1228_v31 = vpop.f32.mrf.mxu1 }
 0x5fd   :  { %5855 = vmatpush3.msra.mxu1 %v1464_v28  ;;  %5880 = vmatprep.mubr.f32.mxu1 %v1228_v31 }
 0x5fe   :  { %5856 = vmatprep.subr.mxu1 %v1463_v30  ;;  %v5771_v44 = vpop.f32.mrf.mxu1 }
 0x5ff   :  { %5857 = vmatpush3.msra.mxu1 %v1463_v30 }
 0x600   :  { %5858 = vmatprep.subr.mxu1 %v1462_v32  ;;  %v1238_v48 = vpop.f32.mrf.mxu1 }
 0x601   :  { %5859 = vmatpush3.msra.mxu1 %v1462_v32 }
 0x602   :  { %5860 = vmatprep.subr.mxu1 %v1461_v33 }
 0x603   :  { %5861 = vmatpush3.msra.mxu1 %v1461_v33 }
 0x604   :  { %5862 = vmatprep.subr.mxu1 %v1460_v34 }
 0x605   :  { %5863 = vmatpush3.msra.mxu1 %v1460_v34 }
 0x606   :  { %5864 = vmatprep.subr.mxu1 %v1459_v35 }
 0x607   :  { %5865 = vmatpush3.msra.mxu1 %v1459_v35 }
 0x608   :  { %5866 = vmatprep.subr.mxu1 %v1458_v36 }
 0x609   :  { %5867 = vmatpush3.msra.mxu1 %v1458_v36 }
 0x60a   :  { %5868 = vmatprep.subr.mxu1 %v1457_v39 }
 0x60b   :  { %5869 = vmatpush3.msra.mxu1 %v1457_v39 }
 0x60c   :  { %5870 = vmatprep.subr.mxu1 %v1456_v37 }
 0x60d   :  { %5871 = vmatpush3.msra.mxu1 %v1456_v37 }
 0x60e   :  { %5872 = vmatprep.subr.mxu1 %v1455_v40 }
 0x60f   :  { %5873 = vmatpush3.msra.mxu1 %v1455_v40 }
 0x610   :  { %5874 = vmatprep.subr.mxu1 %v1454_v42 }
 0x611   :  { %5875 = vmatpush3.msra.mxu1 %v1454_v42 }
 0x612   :  { %5876 = vmatprep.subr.mxu1 %v1453_v43 }
 0x613   :  { %5877 = vmatpush3.msra.mxu1 %v1453_v43 }
 0x614   :  { %5878 = vmatprep.subr.mxu1 %v1452_v47 }
 0x615   :  { %5879 = vmatpush3.msra.mxu1 %v1452_v47 }
 0x616   :  { %5881 = vmatmul.mubr.f32.vlgmr.msra.gmra.mxu1 %v5768_v29  ;;  %5926 = vmatprep.subr.mxu1 %v6799_v5 }
 0x617   :  { %5883 = vmatprep.mubr.f32.mxu1 %v1238_v48  ;;  %5927 = vmatpush3.msra.mxu1 %v6921_v4 }
 0x618   :  { %5928 = vmatprep.subr.mxu1 %v6799_v5 }
 0x619   :  { %5929 = vmatpush3.msra.mxu1 %v6927_v6 }
 0x61a   :  { %5884 = vmatmul.mubr.f32.gmra.mxu1 %v5771_v44  ;;  %5930 = vmatprep.subr.mxu1 %v6799_v5 }
 0x61b   :  { %5931 = vmatpush3.msra.mxu1 %v6941_v7  ;;  %5958 = vmatprep.mubr.msk.f32.mxu1 %vm6800_vm1, %v6799_v5  ;;  %v5844_v7 = vpop.f32.mrf.mxu0 }
 0x61c   :  { %5932 = vmatprep.subr.mxu1 %v6799_v5 }
 0x61d   :  { %5933 = vmatpush3.msra.mxu1 %v6949_v8 }
 0x61e   :  { %5934 = vmatprep.subr.mxu1 %v6799_v5 }
 0x61f   :  { %5935 = vmatpush3.msra.mxu1 %v6958_v9  ;;  %v1432_v9 = vpop.f32.mrf.mxu0 }
 0x620   :  { %5936 = vmatprep.subr.mxu1 %v6799_v5 }
 0x621   :  { %5937 = vmatpush3.msra.mxu1 %v6967_v10 }
 0x622   :  { %5938 = vmatprep.subr.mxu1 %v6799_v5 }
 0x623   :  { %5939 = vmatpush3.msra.mxu1 %v6976_v11  ;;  %v5847_v11 = vpop.f32.mrf.mxu0 }
 0x624   :  { %5940 = vmatprep.subr.mxu1 %v6799_v5 }
 0x625   :  { %5941 = vmatpush3.msra.mxu1 %v6985_v12 }
 0x626   :  { %5942 = vmatprep.subr.mxu1 %v6799_v5 }
 0x627   :  { %5943 = vmatpush3.msra.mxu1 %v6994_v13 }
 0x628   :  { %5944 = vmatprep.subr.mxu1 %v6799_v5 }
 0x629   :  { %5945 = vmatpush3.msra.mxu1 %v7003_v14 }
 0x62a   :  { %5946 = vmatprep.subr.mxu1 %v6799_v5 }
 0x62b   :  { %5947 = vmatpush3.msra.mxu1 %v7012_v15 }
 0x62c   :  { %5948 = vmatprep.subr.mxu1 %v6799_v5 }
 0x62d   :  { %5949 = vmatpush3.msra.mxu1 %v7021_v16 }
 0x62e   :  { %5950 = vmatprep.subr.mxu1 %v6799_v5 }
 0x62f   :  { %5951 = vmatpush3.msra.mxu1 %v7030_v17 }
 0x630   :  { %5952 = vmatprep.subr.mxu1 %v6799_v5 }
 0x631   :  { %5953 = vmatpush3.msra.mxu1 %v7039_v18  ;;  %v1442_v18 = vpop.f32.mrf.mxu0 }
 0x632   :  { %5954 = vmatprep.subr.mxu1 %v6799_v5 }
 0x633   :  { %5955 = vmatpush3.msra.mxu1 %v7044_v19  ;;  %v4897_v19 = vld [vmem:[%s7911_s4 + $0x1] ss:$0 sm:$0xff] }
 0x634   :  { %5956 = vmatprep.subr.mxu1 %v6799_v5 }
 0x635   :  { %5957 = vmatpush3.msra.mxu1 %v7054_v20 }
 0x6b6   :  { %v5806_v4 = vpop.f32.mrf.mxu1 }
 0x6b7   :  { %v1438_v13 = vadd.f32 %v5844_v7, %v5806_v4  ;;  %v2216_v4 = vld [vmem:[#allocation7 + $0x3f8] sm:$0xff]  ;;  %v2214_v7 = vld [vmem:[#allocation7 + $0x3e8] sm:$0xff] }
 0x6b8   :  { %v1347_v6 = vpop.f32.mrf.mxu1  ;;  %6037 = vmatprep.subr.mxu1 %v2216_v4 }
 0x6b9   :  { %v1433_v14 = vadd.f32 %v1432_v9, %v1347_v6  ;;  %v2215_v6 = vld [vmem:[#allocation7 + $0x3f0] sm:$0xff]  ;;  %v2212_v9 = vld [vmem:[#allocation7 + $0x3d8] sm:$0xff] }
 0x6ba   :  { %v5809_v8 = vpop.f32.mrf.mxu1 }
 0x6bb   :  { %v1448_v20 = vadd.f32 %v5847_v11, %v5809_v8  ;;  %v2213_v8 = vld [vmem:[#allocation7 + $0x3e0] sm:$0xff]  ;;  %v2210_v11 = vld [vmem:[#allocation7 + $0x3c8] sm:$0xff] }
 0x6bc   :  { %v1357_v10 = vpop.f32.mrf.mxu1 }
 0x6bd   :  { %v1443_v50 = vadd.f32 %v1442_v18, %v1357_v10  ;;  %v2211_v10 = vld [vmem:[#allocation7 + $0x3d0] sm:$0xff]  ;;  %v1811_v18 = vld [vmem:[%s7912_s5 + $0x1] sm:$0x1] }
 0x6d6   :  { %v5882_v12 = vpop.f32.mrf.mxu1 }
 0x6d7   :  { %v1554_v16 = vadd.f32 %v5882_v12, %v1438_v13  ;;  %v2209_v12 = vld [vmem:[#allocation7 + $0x3c0] sm:$0xff]  ;;  %v2208_v13 = vld [vmem:[#allocation7 + $0x3b8] sm:$0xff] }
 0x6d8   :  { %v1534_v15 = vpop.f32.mrf.mxu1 }
 0x6d9   :  { %v1553_v17 = vadd.f32 %v1534_v15, %v1433_v14  ;;  %v7234_v53 = vadd.f32 %v4897_v19, %v1554_v16 }
 0x6da   :  { %v5885_v49 = vpop.f32.mrf.mxu1 }
 0x6db   :  { %v7232_v51 = vadd.f32 %v4897_v19, %v1553_v17  ;;  %v1556_v54 = vadd.f32 %v5885_v49, %v1448_v20  ;;  %v1815_v20 = vld [vmem:[%s7913_s6 + $0x1] sm:$0x1] }
 0x6dc   :  { %v1544_v52 = vpop.f32.mrf.mxu1 }
 0x6dd   :  { %v1555_v56 = vadd.f32 %v1544_v52, %v1443_v50  ;;  %v1566_v58 = vadd.f32 %v7234_v53, %v7232_v51  ;;  %v7240_v60 = vadd.f32 %v4897_v19, %v1556_v54  ;;  %v2207_v54 = vld [vmem:[#allocation7 + $0x3b0] sm:$0xff] }
 0x6df   :  { %v7238_v59 = vadd.f32 %v4897_v19, %v1555_v56  ;;  %v2206_v56 = vld [vmem:[#allocation7 + $0x3a8] sm:$0xff] }
 0x6e1   :  { %v1567_v62 = vadd.f32 %v1566_v58, %v7238_v59  ;;  %v2205_v58 = vld [vmem:[#allocation7 + $0x3a0] sm:$0xff] }
 0x6e3   :  { %v1568_v63 = vadd.f32 %v1567_v62, %v7240_v60  ;;  %v2204_v62 = vld [vmem:[#allocation7 + $0x398] sm:$0xff] }
 0x6e5   :  { %v1569_v0 = vrot.slane %v1568_v63, 4 }
 0x6e7   :  { %v1570_v1 = vadd.f32 %v1569_v0, %v1568_v63  ;;  %v2203_v63 = vld [vmem:[#allocation7 + $0x390] sm:$0xff]  ;;  %v2201_v0 = vld [vmem:[#allocation7 + $0x380] sm:$0xff] }
 0x6e9   :  { %v1571_v57 = vrot.slane %v1570_v1, 2 }
 0x6eb   :  { %v1572_v2 = vadd.f32 %v1571_v57, %v1570_v1  ;;  %v1997_v1 = vld [vmem:[#allocation2 + $0x40] sm:$0xff] }
 0x6ed   :  { %v1573_v3 = vrot.slane %v1572_v2, 1 }
 0x6ef   :  { %v1574_v21 = vadd.f32 %v1573_v3, %v1572_v2 }
 0x6f1   :  { %5919 = vmatmul.mubr.f32.vlgmr.msra.gmra.mxu0 %v1574_v21 }
 0x6f2   :  { %5922 = vmatpush3.msra.mxu0 %v7085_v55  ;;  %5923 = vmatprep.mubr.msk.f32.mxu0 %vm6800_vm1, %v6799_v5 }
 0x6f3   :  { %5961 = vmatprep.subr.mxu0 %v6799_v5 }
 0x7b1   :  { %v1641_v22 = vpop.f32.mrf.mxu0 }
 0x7b2   :  { %v7248_v23 = vmul.f32 0.001953125, %v1641_v22 }
 0x7b3   :  { %v5920_v24 = vpop.f32.mrf.mxu0 }
 0x7b4   :  { %5924 = vmatmul.mubr.msk.f32.vlgmr.msra.gmra.mxu0 %vm696_vm2, %v7248_v23 }
 0x7b5   :  { %5962 = vmatpush3.msra.mxu0 %v7085_v55  ;;  %5963 = vmatprep.mubr.msk.f32.mxu0 %vm6800_vm1, %v6799_v5 }
 0x7b6   :  { %5966 = vmatprep.subr.mxu0 %v6799_v5 }
 0x874   :  { %v1715_v25 = vpop.f32.mrf.mxu0 }
 0x875   :  { %v1722_v26 = vrot.slane %v1715_v25, %v7099_v61 }
 0x876   :  { %v5925_v27 = vpop.f32.mrf.mxu0 }
 0x877   :  { %v1723_v28 = vsub.f32 %v7232_v51, %v1722_v26  ;;  %v1724_v29 = vsub.f32 %v7234_v53, %v1722_v26  ;;  %v1725_v30 = vsub.f32 %v7238_v59, %v1722_v26  ;;  %v1726_v31 = vsub.f32 %v7240_v60, %v1722_v26 }
 0x879   :  { %v1727_v32 = vmul.f32 %v1723_v28, %v1723_v28  ;;  %v1728_v33 = vmul.f32 %v1724_v29, %v1724_v29  ;;  %v1729_v34 = vmul.f32 %v1725_v30, %v1725_v30  ;;  %v1730_v36 = vmul.f32 %v1726_v31, %v1726_v31 }
 0x87b   :  { %v1731_v35 = vadd.f32 %v1728_v33, %v1727_v32 }
 0x87d   :  { %v1732_v39 = vadd.f32 %v1731_v35, %v1729_v34 }
 0x87f   :  { %v1733_v37 = vadd.f32 %v1732_v39, %v1730_v36 }
 0x881   :  { %v1734_v40 = vrot.slane %v1733_v37, 4 }
 0x883   :  { %v1735_v42 = vadd.f32 %v1734_v40, %v1733_v37  ;;  %v6671_v37 = vld [vmem:[%s7907_s0 + $0x8] sm:$0xff] }
 0x885   :  { %v1736_v43 = vrot.slane %v1735_v42, 2 }
 0x887   :  { %v1737_v44 = vadd.f32 %v1736_v43, %v1735_v42  ;;  %v6672_v42 = vld [vmem:[%s7907_s0 + $0x18] sm:$0xff] }
 0x889   :  { %v1738_v47 = vrot.slane %v1737_v44, 1 }
 0x88b   :  { %v1739_v48 = vadd.f32 %v1738_v47, %v1737_v44  ;;  %v6673_v44 = vld [vmem:[%s7907_s0 + $0x10] sm:$0xff] }
 0x88d   :  { %5959 = vmatmul.mubr.f32.vlgmr.msra.gmra.mxu1 %v1739_v48  ;;  %v7310_v48 = vld [vmem:[%s7914_s7 + $0x78] sm:$0xff] }
 0x88e   :  { %6038 = vmatpush3.msra.mxu1 %v2216_v4  ;;  %v1998_v4 = vld [vmem:[#allocation2 + $0x48] sm:$0xff] }
 0x88f   :  { %6039 = vmatprep.subr.mxu1 %v2215_v6 }
 0x890   :  { %6040 = vmatpush3.msra.mxu1 %v2215_v6  ;;  %v7321_v6 = vld [vmem:[%s7914_s7 + $0x70] sm:$0xff] }
 0x891   :  { %6041 = vmatprep.subr.mxu1 %v2214_v7 }
 0x892   :  { %6042 = vmatpush3.msra.mxu1 %v2214_v7  ;;  %v1999_v7 = vld [vmem:[#allocation2 + $0x50] sm:$0xff] }
 0x893   :  { %6043 = vmatprep.subr.mxu1 %v2213_v8 }
 0x894   :  { %6044 = vmatpush3.msra.mxu1 %v2213_v8  ;;  %v7330_v8 = vld [vmem:[%s7914_s7 + $0x68] sm:$0xff] }
 0x895   :  { %6045 = vmatprep.subr.mxu1 %v2212_v9 }
 0x896   :  { %6046 = vmatpush3.msra.mxu1 %v2212_v9  ;;  %v2000_v9 = vld [vmem:[#allocation2 + $0x58] sm:$0xff] }
 0x897   :  { %6047 = vmatprep.subr.mxu1 %v2211_v10 }
 0x898   :  { %6048 = vmatpush3.msra.mxu1 %v2211_v10  ;;  %v2099_v10 = vld [vmem:[#allocation5 + $0x40] sm:$0xff] }
 0x899   :  { %6049 = vmatprep.subr.mxu1 %v2210_v11 }
 0x89a   :  { %6050 = vmatpush3.msra.mxu1 %v2210_v11  ;;  %v7343_v11 = vld [vmem:[%s7914_s7 + $0x60] sm:$0xff] }
 0x89b   :  { %6051 = vmatprep.subr.mxu1 %v2209_v12 }
 0x89c   :  { %6052 = vmatpush3.msra.mxu1 %v2209_v12  ;;  %v2100_v12 = vld [vmem:[#allocation5 + $0x48] sm:$0xff] }
 0x89d   :  { %6053 = vmatprep.subr.mxu1 %v2208_v13 }
 0x89e   :  { %6054 = vmatpush3.msra.mxu1 %v2208_v13  ;;  %v2233_v13 = vld [vmem:[#allocation7 + $0x378] sm:$0xff] }
 0x89f   :  { %6055 = vmatprep.subr.mxu1 %v2207_v54 }
 0x8a0   :  { %6056 = vmatpush3.msra.mxu1 %v2207_v54  ;;  %v7380_v54 = vld [vmem:[%s7914_s7 + $0x40] sm:$0xff] }
 0x8a1   :  { %6057 = vmatprep.subr.mxu1 %v2206_v56 }
 0x8a2   :  { %6058 = vmatpush3.msra.mxu1 %v2206_v56  ;;  %v2227_v56 = vld [vmem:[#allocation7 + $0x348] sm:$0xff] }
 0x8a3   :  { %6059 = vmatprep.subr.mxu1 %v2205_v58 }
 0x8a4   :  { %6060 = vmatpush3.msra.mxu1 %v2205_v58  ;;  %v7387_v58 = vld [vmem:[%s7914_s7 + $0x38] sm:$0xff] }
 0x8a5   :  { %6061 = vmatprep.subr.mxu1 %v2204_v62 }
 0x8a6   :  { %6062 = vmatpush3.msra.mxu1 %v2204_v62  ;;  %v2226_v62 = vld [vmem:[#allocation7 + $0x340] sm:$0xff] }
 0x8a7   :  { %6063 = vmatprep.subr.mxu1 %v2203_v63 }
 0x8a8   :  { %6064 = vmatpush3.msra.mxu1 %v2203_v63  ;;  %v7394_v63 = vld [vmem:[%s7914_s7 + $0x30] sm:$0xff] }
 0x94d   :  { %v1806_v14 = vpop.f32.mrf.mxu1 }
 0x94e   :  { %v1810_v15 = vmul.f32 0.001953125, %v1806_v14  ;;  %v2101_v14 = vld [vmem:[#allocation5 + $0x50] sm:$0xff] }
 0x94f   :  { %v5960_v16 = vpop.f32.mrf.mxu1 }
 0x950   :  { %v1812_v17 = vadd.f32 1e-05, %v1810_v15  ;;  %v2232_v15 = vld [vmem:[#allocation7 + $0x370] sm:$0xff]  ;;  %v7356_v16 = vld [vmem:[%s7914_s7 + $0x58] sm:$0xff] }
 0x952   :  { %6662 = vrsqrt.f32 %v1812_v17  ;;  %v2102_v17 = vld [vmem:[#allocation5 + $0x58] sm:$0xff] }
 0x95f   :  { %v6663_v19 = vpop.eup %6662 }
 0x960   :  { %v1814_v49 = vmul.f32 %v6663_v19, %v1811_v18  ;;  %v2231_v18 = vld [vmem:[#allocation7 + $0x368] sm:$0xff]  ;;  %v2230_v19 = vld [vmem:[#allocation7 + $0x360] sm:$0xff] }
 0x962   :  { %5964 = vmatmul.mubr.msk.f32.vlgmr.msra.gmra.mxu0 %vm696_vm2, %v1814_v49  ;;  %v1816_v50 = vmul.f32 %v1814_v49, %v7248_v23  ;;  %v7365_v49 = vld [vmem:[%s7914_s7 + $0x50] sm:$0xff] }
 0x963   :  { %5967 = vmatpush3.msra.mxu0 %v7085_v55  ;;  %5968 = vmatprep.mubr.msk.f32.mxu0 %vm6800_vm1, %v6799_v5  ;;  %v2202_v55 = vld [vmem:[#allocation7 + $0x388] sm:$0xff] }
 0x964   :  { %v1817_v52 = vsub.f32 %v1815_v20, %v1816_v50  ;;  %6065 = vmatprep.subr.mxu1 %v2202_v55  ;;  %v2229_v20 = vld [vmem:[#allocation7 + $0x358] sm:$0xff]  ;;  %v7373_v50 = vld [vmem:[%s7914_s7 + $0x48] sm:$0xff] }
 0x965   :  { %6066 = vmatpush3.msra.mxu1 %v2202_v55  ;;  %v2225_v55 = vld [vmem:[#allocation7 + $0x338] sm:$0xff] }
 0x966   :  { %5969 = vmatmul.mubr.msk.f32.vlgmr.msra.gmra.mxu0 %vm696_vm2, %v1817_v52  ;;  %6067 = vmatprep.subr.mxu1 %v2201_v0  ;;  %v2228_v52 = vld [vmem:[#allocation7 + $0x350] sm:$0xff] }
 0x967   :  { %6068 = vmatpush3.msra.mxu1 %v2201_v0  ;;  %5979 = vmatprep.mubr.msk.f32.mxu0 %vm99_vm0, %v1997_v1  ;;  %v7401_v0 = vld [vmem:[%s7914_s7 + $0x28] sm:$0xff]  ;;  %v2224_v1 = vld [vmem:[#allocation7 + $0x330] sm:$0xff] }
 0x968   :  { %6113 = vmatprep.subr.mxu1 %v6799_v5 }
 0xa22   :  { %v1887_v57 = vpop.f32.mrf.mxu0 }
 0xa23   :  { %v1894_v2 = vrot.slane %v1887_v57, %v7099_v61  ;;  %v7408_v57 = vld [vmem:[%s7914_s7 + $0x20] sm:$0xff] }
 0xa24   :  { %v5965_v3 = vpop.f32.mrf.mxu0 }
 0xa25   :  { %v1895_v21 = vmul.f32 %v1894_v2, %v7232_v51  ;;  %v1896_v23 = vmul.f32 %v1894_v2, %v7234_v53  ;;  %v1897_v24 = vmul.f32 %v1894_v2, %v7238_v59  ;;  %v1898_v25 = vmul.f32 %v1894_v2, %v7240_v60  ;;  %v6670_v60 = vld [vmem:[%s7907_s0] sm:$0xff]  ;;  %v2223_v2 = vld [vmem:[#allocation7 + $0x328] sm:$0xff]  ;;  %v7415_v3 = vld [vmem:[%s7914_s7 + $0x18] sm:$0xff] }
 0xa26   :  { %v1968_v22 = vpop.f32.mrf.mxu0 }
 0xa27   :  { %v1975_v26 = vrot.slane %v1968_v22, %v7099_v61  ;;  %v7422_v22 = vld [vmem:[%s7914_s7 + $0x10] sm:$0xff] }
 0xa28   :  { %v5970_v27 = vpop.f32.mrf.mxu0 }
 0xa29   :  { %v1976_v28 = vadd.f32 %v1975_v26, %v1895_v21  ;;  %v1977_v29 = vadd.f32 %v1975_v26, %v1896_v23  ;;  %v1978_v30 = vadd.f32 %v1975_v26, %v1897_v24  ;;  %v1979_v31 = vadd.f32 %v1975_v26, %v1898_v25  ;;  %v2222_v21 = vld [vmem:[#allocation7 + $0x320] sm:$0xff]  ;;  %v7429_v23 = vld [vmem:[%s7914_s7 + $0x8] sm:$0xff]  ;;  %v2221_v25 = vld [vmem:[#allocation7 + $0x318] sm:$0xff] }
 0xa2a   :  { %v7436_v24 = vld [vmem:[%s7914_s7] sm:$0xff]  ;;  %v2220_v26 = vld [vmem:[#allocation7 + $0x310] sm:$0xff]  ;;  %v2219_v27 = vld [vmem:[#allocation7 + $0x308] sm:$0xff] }
 0xa2b   :  { %vm1980_vm7 = vcmp.ge.f32.partialorder %v1976_v28, 0.0  ;;  %vm1981_vm8 = vcmp.ge.f32.partialorder %v1977_v29, 0.0  ;;  %vm1982_vm9 = vcmp.ge.f32.partialorder %v1978_v30, 0.0  ;;  %vm1983_vm10 = vcmp.ge.f32.partialorder %v1979_v31, 0.0 }
 0xa2c   :  { %v1984_v32 = vmul.f32 0.01, %v1976_v28  ;;  %v1985_v51 = vmul.f32 0.01, %v1977_v29  ;;  %v1986_v33 = vmul.f32 0.01, %v1978_v30 }
 0xa2d   :  { %v1987_v34 = vmul.f32 0.01, %v1979_v31 }
 0xa2e   :  { %v1988_v53 = vsel %vm1980_vm7, %v1976_v28, %v1984_v32  ;;  %v1989_v35 = vsel %vm1981_vm8, %v1977_v29, %v1985_v51  ;;  %v1990_v59 = vsel %vm1982_vm9, %v1978_v30, %v1986_v33  ;;  %v2218_v28 = vld [vmem:[#allocation7 + $0x300] sm:$0xff]  ;;  %v2420_v29 = vld [vmem:[#allocation7 + $0x478] sm:$0xff]  ;;  %v2419_v32 = vld [vmem:[#allocation7 + $0x470] sm:$0xff] }
 0xa2f   :  { %v1991_v36 = vsel %vm1983_vm10, %v1979_v31, %v1987_v34  ;;  %v7284_v39 = vadd.f32 %v6670_v60, %v1988_v53  ;;  %v7289_v40 = vadd.f32 %v6671_v37, %v1989_v35  ;;  %v7299_v47 = vadd.f32 %v6673_v44, %v1990_v59  ;;  %v2418_v33 = vld [vmem:[#allocation7 + $0x468] sm:$0xff]  ;;  %v2417_v53 = vld [vmem:[#allocation7 + $0x460] sm:$0xff]  ;;  %v2416_v59 = vld [vmem:[#allocation7 + $0x458] sm:$0xff] }
 0xa30   :  { %v7294_v43 = vadd.f32 %v6672_v42, %v1991_v36  ;;  %v2415_v60 = vld [vmem:[#allocation7 + $0x450] sm:$0xff]  ;;  %v2414_v37 = vld [vmem:[#allocation7 + $0x448] sm:$0xff]  ;;  %v2413_v42 = vld [vmem:[#allocation7 + $0x440] sm:$0xff] }
 0xa31   :  { %6069 = vmatprep.mubr.f32.mxu1 %v7284_v39  ;;  %v2412_v44 = vld [vmem:[#allocation7 + $0x438] sm:$0xff] }
 0xa32   :  { %5971 = vmatprep.subr.mxu0 %v7294_v43  ;;  %6070 = vmatmul.mubr.f32.vlgmr.msra.gmra.mxu1 %v7289_v40 }
 0xa33   :  { %5972 = vmatpush3.msra.mxu0 %v7294_v43  ;;  %6072 = vmatprep.mubr.f32.mxu1 %v7299_v47 }
 0xa34   :  { %5973 = vmatprep.subr.mxu0 %v7299_v47  ;;  %6114 = vmatpush3.msra.mxu1 %v7310_v48 }
 0xa35   :  { %5974 = vmatpush3.msra.mxu0 %v7299_v47  ;;  %6115 = vmatprep.subr.mxu1 %v6799_v5 }
 0xa36   :  { %5975 = vmatprep.subr.mxu0 %v7289_v40  ;;  %6073 = vmatmul.mubr.f32.gmra.mxu1 %v7294_v43 }
 0xa37   :  { %5976 = vmatpush3.msra.mxu0 %v7289_v40  ;;  %6116 = vmatpush3.msra.mxu1 %v7321_v6 }
 0xa38   :  { %5977 = vmatprep.subr.mxu0 %v7284_v39  ;;  %6117 = vmatprep.subr.mxu1 %v6799_v5 }
 0xa39   :  { %5978 = vmatpush3.msra.mxu0 %v7284_v39  ;;  %6118 = vmatpush3.msra.mxu1 %v7330_v8 }
 0xa3a   :  { %5980 = vmatmul.mubr.msk.f32.vlgmr.msra.gmra.mxu0 %vm99_vm0, %v1998_v4  ;;  %5985 = vmatprep.subr.mxu0 %v7294_v43  ;;  %v2411_v4 = vld [vmem:[#allocation7 + $0x430] sm:$0xff] }
 0xa3b   :  { %5986 = vmatpush3.msra.mxu0 %v7294_v43  ;;  %5982 = vmatprep.mubr.msk.f32.mxu0 %vm99_vm0, %v1999_v7  ;;  %v2410_v7 = vld [vmem:[#allocation7 + $0x428] sm:$0xff] }
 0xa3c   :  { %5987 = vmatprep.subr.mxu0 %v7299_v47  ;;  %6119 = vmatprep.subr.mxu1 %v6799_v5 }
 0xa3d   :  { %5988 = vmatpush3.msra.mxu0 %v7299_v47  ;;  %6120 = vmatpush3.msra.mxu1 %v7343_v11 }
 0xa3e   :  { %5983 = vmatmul.mubr.msk.f32.gmra.mxu0 %vm99_vm0, %v2000_v9  ;;  %5989 = vmatprep.subr.mxu0 %v7289_v40  ;;  %v2409_v9 = vld [vmem:[#allocation7 + $0x420] sm:$0xff] }
 0xa3f   :  { %5990 = vmatpush3.msra.mxu0 %v7289_v40  ;;  %5993 = vmatprep.mubr.msk.f32.mxu0 %vm99_vm0, %v2099_v10  ;;  %v2408_v10 = vld [vmem:[#allocation7 + $0x418] sm:$0xff] }
 0xa40   :  { %5991 = vmatprep.subr.mxu0 %v7284_v39  ;;  %6121 = vmatprep.subr.mxu1 %v6799_v5 }
 0xa41   :  { %5992 = vmatpush3.msra.mxu0 %v7284_v39  ;;  %6122 = vmatpush3.msra.mxu1 %v7356_v16 }
 0xa42   :  { %5994 = vmatmul.mubr.msk.f32.vlgmr.msra.gmra.mxu0 %vm99_vm0, %v2100_v12  ;;  %5999 = vmatprep.subr.mxu0 %v2233_v13  ;;  %v2407_v12 = vld [vmem:[#allocation7 + $0x410] sm:$0xff] }
 0xa43   :  { %5996 = vmatprep.mubr.msk.f32.mxu0 %vm99_vm0, %v2101_v14  ;;  %6000 = vmatpush3.msra.mxu0 %v2233_v13  ;;  %v2406_v13 = vld [vmem:[#allocation7 + $0x408] sm:$0xff] }
 0xa44   :  { %6001 = vmatprep.subr.mxu0 %v2232_v15  ;;  %6123 = vmatprep.subr.mxu1 %v6799_v5 }
 0xa45   :  { %6002 = vmatpush3.msra.mxu0 %v2232_v15  ;;  %6124 = vmatpush3.msra.mxu1 %v7365_v49  ;;  %v2405_v15 = vld [vmem:[#allocation7 + $0x400] sm:$0xff] }
 0xa46   :  { %5997 = vmatmul.mubr.msk.f32.gmra.mxu0 %vm99_vm0, %v2102_v17  ;;  %6003 = vmatprep.subr.mxu0 %v2231_v18 }
 0xa47   :  { %6004 = vmatpush3.msra.mxu0 %v2231_v18  ;;  %6125 = vmatprep.subr.mxu1 %v6799_v5 }
 0xa48   :  { %6005 = vmatprep.subr.mxu0 %v2230_v19  ;;  %6126 = vmatpush3.msra.mxu1 %v7373_v50 }
 0xa49   :  { %6006 = vmatpush3.msra.mxu0 %v2230_v19  ;;  %6127 = vmatprep.subr.mxu1 %v6799_v5 }
 0xa4a   :  { %6007 = vmatprep.subr.mxu0 %v2229_v20  ;;  %6128 = vmatpush3.msra.mxu1 %v7380_v54 }
 0xa4b   :  { %6008 = vmatpush3.msra.mxu0 %v2229_v20  ;;  %6129 = vmatprep.subr.mxu1 %v6799_v5 }
 0xa4c   :  { %6009 = vmatprep.subr.mxu0 %v2228_v52  ;;  %6130 = vmatpush3.msra.mxu1 %v7387_v58 }
 0xa4d   :  { %6010 = vmatpush3.msra.mxu0 %v2228_v52  ;;  %6131 = vmatprep.subr.mxu1 %v6799_v5 }
 0xa4e   :  { %6011 = vmatprep.subr.mxu0 %v2227_v56  ;;  %6132 = vmatpush3.msra.mxu1 %v7394_v63 }
 0xa4f   :  { %6012 = vmatpush3.msra.mxu0 %v2227_v56  ;;  %6133 = vmatprep.subr.mxu1 %v6799_v5 }
 0xa50   :  { %6013 = vmatprep.subr.mxu0 %v2226_v62  ;;  %6134 = vmatpush3.msra.mxu1 %v7401_v0 }
 0xa51   :  { %6014 = vmatpush3.msra.mxu0 %v2226_v62  ;;  %6135 = vmatprep.subr.mxu1 %v6799_v5 }
 0xa52   :  { %6015 = vmatprep.subr.mxu0 %v2225_v55  ;;  %6136 = vmatpush3.msra.mxu1 %v7408_v57 }
 0xa53   :  { %6016 = vmatpush3.msra.mxu0 %v2225_v55  ;;  %6137 = vmatprep.subr.mxu1 %v6799_v5 }
 0xa54   :  { %6017 = vmatprep.subr.mxu0 %v2224_v1  ;;  %6138 = vmatpush3.msra.mxu1 %v7415_v3 }
 0xa55   :  { %6018 = vmatpush3.msra.mxu0 %v2224_v1  ;;  %6139 = vmatprep.subr.mxu1 %v6799_v5 }
 0xa56   :  { %6019 = vmatprep.subr.mxu0 %v2223_v2  ;;  %6140 = vmatpush3.msra.mxu1 %v7422_v22 }
 0xa57   :  { %6020 = vmatpush3.msra.mxu0 %v2223_v2  ;;  %6141 = vmatprep.subr.mxu1 %v6799_v5 }
 0xa58   :  { %6021 = vmatprep.subr.mxu0 %v2222_v21  ;;  %6142 = vmatpush3.msra.mxu1 %v7429_v23 }
 0xa59   :  { %6022 = vmatpush3.msra.mxu0 %v2222_v21  ;;  %6143 = vmatprep.subr.mxu1 %v6799_v5 }
 0xa5a   :  { %6144 = vmatpush3.msra.mxu1 %v7436_v24  ;;  %6145 = vmatprep.mubr.msk.f32.mxu1 %vm6800_vm1, %v6799_v5 }
 0xa5b   :  { %6148 = vmatprep.subr.mxu1 %v6799_v5  ;;  %6023 = vmatprep.subr.mxu0 %v2221_v25 }
 0xa5c   :  { %6024 = vmatpush3.msra.mxu0 %v2221_v25 }
 0xa5d   :  { %6025 = vmatprep.subr.mxu0 %v2220_v26 }
 0xa5e   :  { %6026 = vmatpush3.msra.mxu0 %v2220_v26 }
 0xa5f   :  { %6027 = vmatprep.subr.mxu0 %v2219_v27 }
 0xa60   :  { %6028 = vmatpush3.msra.mxu0 %v2219_v27 }
 0xa61   :  { %6029 = vmatprep.subr.mxu0 %v2218_v28 }
 0xa62   :  { %6030 = vmatpush3.msra.mxu0 %v2218_v28 }
 0xa63   :  { %6075 = vmatprep.subr.mxu0 %v2420_v29 }
 0xaf2   :  { %v6071_v20 = vpop.f32.mrf.mxu1 }
 0xaf4   :  { %v2385_v56 = vpop.f32.mrf.mxu1 }
 0xaf6   :  { %v6074_v55 = vpop.f32.mrf.mxu1 }
 0xaf8   :  { %v2395_v28 = vpop.f32.mrf.mxu1 }
 0xafa   :  { %v5981_v30 = vpop.f32.mrf.mxu0 }
 0xafc   :  { %v2079_v31 = vpop.f32.mrf.mxu0 }
 0xafd   :  { %6031 = vmatprep.mubr.f32.mxu0 %v2079_v31 }
 0xafe   :  { %v5984_v51 = vpop.f32.mrf.mxu0  ;;  %6032 = vmatmul.mubr.f32.vlgmr.msra.gmra.mxu0 %v5981_v30 }
 0xaff   :  { %6076 = vmatpush3.msra.mxu0 %v2420_v29  ;;  %v4909_v29 = vld [vmem:[%s7911_s4 + $0x2] ss:$0 sm:$0xff] }
 0xb00   :  { %6077 = vmatprep.subr.mxu0 %v2419_v32  ;;  %v2089_v34 = vpop.f32.mrf.mxu0 }
 0xb01   :  { %6078 = vmatpush3.msra.mxu0 %v2419_v32  ;;  %6034 = vmatprep.mubr.f32.mxu0 %v2089_v34 }
 0xb02   :  { %6079 = vmatprep.subr.mxu0 %v2418_v33  ;;  %6035 = vmatmul.mubr.f32.gmra.mxu0 %v5984_v51  ;;  %v5995_v35 = vpop.f32.mrf.mxu0 }
 0xb03   :  { %6080 = vmatpush3.msra.mxu0 %v2418_v33 }
 0xb04   :  { %6081 = vmatprep.subr.mxu0 %v2417_v53  ;;  %v2181_v36 = vpop.f32.mrf.mxu0 }
 0xb05   :  { %6082 = vmatpush3.msra.mxu0 %v2417_v53  ;;  %6107 = vmatprep.mubr.f32.mxu0 %v2181_v36 }
 0xb06   :  { %6083 = vmatprep.subr.mxu0 %v2416_v59  ;;  %v5998_v14 = vpop.f32.mrf.mxu0 }
 0xb07   :  { %6084 = vmatpush3.msra.mxu0 %v2416_v59 }
 0xb08   :  { %6085 = vmatprep.subr.mxu0 %v2415_v60  ;;  %v2191_v17 = vpop.f32.mrf.mxu0 }
 0xb09   :  { %6086 = vmatpush3.msra.mxu0 %v2415_v60 }
 0xb0a   :  { %6087 = vmatprep.subr.mxu0 %v2414_v37 }
 0xb0b   :  { %6088 = vmatpush3.msra.mxu0 %v2414_v37 }
 0xb0c   :  { %6089 = vmatprep.subr.mxu0 %v2413_v42 }
 0xb0d   :  { %6090 = vmatpush3.msra.mxu0 %v2413_v42 }
 0xb0e   :  { %6091 = vmatprep.subr.mxu0 %v2412_v44 }
 0xb0f   :  { %6092 = vmatpush3.msra.mxu0 %v2412_v44 }
 0xb10   :  { %6093 = vmatprep.subr.mxu0 %v2411_v4 }
 0xb11   :  { %6094 = vmatpush3.msra.mxu0 %v2411_v4 }
 0xb12   :  { %6095 = vmatprep.subr.mxu0 %v2410_v7 }
 0xb13   :  { %6096 = vmatpush3.msra.mxu0 %v2410_v7 }
 0xb14   :  { %6097 = vmatprep.subr.mxu0 %v2409_v9 }
 0xb15   :  { %6098 = vmatpush3.msra.mxu0 %v2409_v9 }
 0xb16   :  { %6099 = vmatprep.subr.mxu0 %v2408_v10 }
 0xb17   :  { %6100 = vmatpush3.msra.mxu0 %v2408_v10 }
 0xb18   :  { %6101 = vmatprep.subr.mxu0 %v2407_v12 }
 0xb19   :  { %6102 = vmatpush3.msra.mxu0 %v2407_v12 }
 0xb1a   :  { %6103 = vmatprep.subr.mxu0 %v2406_v13 }
 0xb1b   :  { %6104 = vmatpush3.msra.mxu0 %v2406_v13  ;;  %v7494_v13 = vld [vmem:[%s7915_s8] sm:$0xff] }
 0xb1c   :  { %6105 = vmatprep.subr.mxu0 %v2405_v15 }
 0xb1d   :  { %6106 = vmatpush3.msra.mxu0 %v2405_v15 }
 0xb1e   :  { %6108 = vmatmul.mubr.f32.vlgmr.msra.gmra.mxu0 %v5995_v35  ;;  %6153 = vmatprep.subr.mxu0 %v6799_v5 }
 0xb1f   :  { %6110 = vmatprep.mubr.f32.mxu0 %v2191_v17  ;;  %6154 = vmatpush3.msra.mxu0 %v7310_v48 }
 0xb20   :  { %6155 = vmatprep.subr.mxu0 %v6799_v5 }
 0xb21   :  { %6156 = vmatpush3.msra.mxu0 %v7321_v6 }
 0xb22   :  { %6111 = vmatmul.mubr.f32.gmra.mxu0 %v5998_v14  ;;  %6157 = vmatprep.subr.mxu0 %v6799_v5 }
 0xb23   :  { %6158 = vmatpush3.msra.mxu0 %v7330_v8  ;;  %6185 = vmatprep.mubr.msk.f32.mxu0 %vm6800_vm1, %v6799_v5 }
 0xb24   :  { %6159 = vmatprep.subr.mxu0 %v6799_v5 }
 0xb25   :  { %6160 = vmatpush3.msra.mxu0 %v7343_v11 }
 0xb26   :  { %6161 = vmatprep.subr.mxu0 %v6799_v5 }
 0xb27   :  { %6162 = vmatpush3.msra.mxu0 %v7356_v16 }
 0xb28   :  { %6163 = vmatprep.subr.mxu0 %v6799_v5 }
 0xb29   :  { %6164 = vmatpush3.msra.mxu0 %v7365_v49 }
 0xb2a   :  { %6165 = vmatprep.subr.mxu0 %v6799_v5 }
 0xb2b   :  { %6166 = vmatpush3.msra.mxu0 %v7373_v50 }
 0xb2c   :  { %6167 = vmatprep.subr.mxu0 %v6799_v5 }
 0xb2d   :  { %6168 = vmatpush3.msra.mxu0 %v7380_v54 }
 0xb2e   :  { %6169 = vmatprep.subr.mxu0 %v6799_v5 }
 0xb2f   :  { %6170 = vmatpush3.msra.mxu0 %v7387_v58 }
 0xb30   :  { %6171 = vmatprep.subr.mxu0 %v6799_v5 }
 0xb31   :  { %6172 = vmatpush3.msra.mxu0 %v7394_v63 }
 0xb32   :  { %6173 = vmatprep.subr.mxu0 %v6799_v5 }
 0xb33   :  { %6174 = vmatpush3.msra.mxu0 %v7401_v0 }
 0xb34   :  { %6175 = vmatprep.subr.mxu0 %v6799_v5 }
 0xb35   :  { %6176 = vmatpush3.msra.mxu0 %v7408_v57 }
 0xb36   :  { %6177 = vmatprep.subr.mxu0 %v6799_v5 }
 0xb37   :  { %6178 = vmatpush3.msra.mxu0 %v7415_v3 }
 0xb38   :  { %6179 = vmatprep.subr.mxu0 %v6799_v5 }
 0xb39   :  { %6180 = vmatpush3.msra.mxu0 %v7422_v22 }
 0xb3a   :  { %6181 = vmatprep.subr.mxu0 %v6799_v5 }
 0xb3b   :  { %6182 = vmatpush3.msra.mxu0 %v7429_v23 }
 0xb3c   :  { %6183 = vmatprep.subr.mxu0 %v6799_v5 }
 0xb3d   :  { %6184 = vmatpush3.msra.mxu0 %v7436_v24 }
 0xbbe   :  { %v6033_v18 = vpop.f32.mrf.mxu0 }
 0xbbf   :  { %v2391_v2 = vadd.f32 %v6071_v20, %v6033_v18 }
 0xbc0   :  { %v2300_v19 = vpop.f32.mrf.mxu0 }
 0xbc1   :  { %v2386_v21 = vadd.f32 %v2385_v56, %v2300_v19 }
 0xbc2   :  { %v6036_v52 = vpop.f32.mrf.mxu0 }
 0xbc3   :  { %v2401_v31 = vadd.f32 %v6074_v55, %v6036_v52 }
 0xbc4   :  { %v2310_v62 = vpop.f32.mrf.mxu0 }
 0xbc5   :  { %v2396_v32 = vadd.f32 %v2395_v28, %v2310_v62 }
 0xbde   :  { %v6109_v1 = vpop.f32.mrf.mxu0 }
 0xbdf   :  { %v2507_v26 = vadd.f32 %v6109_v1, %v2391_v2 }
 0xbe0   :  { %v2487_v25 = vpop.f32.mrf.mxu0 }
 0xbe1   :  { %v2506_v27 = vadd.f32 %v2487_v25, %v2386_v21  ;;  %v7481_v34 = vadd.f32 %v4909_v29, %v2507_v26 }
 0xbe2   :  { %v6112_v30 = vpop.f32.mrf.mxu0 }
 0xbe3   :  { %v7479_v51 = vadd.f32 %v4909_v29, %v2506_v27  ;;  %v2509_v53 = vadd.f32 %v6112_v30, %v2401_v31 }
 0xbe4   :  { %v2497_v33 = vpop.f32.mrf.mxu0 }
 0xbe5   :  { %v2508_v35 = vadd.f32 %v2497_v33, %v2396_v32  ;;  %v2519_v59 = vadd.f32 %v7481_v34, %v7479_v51  ;;  %v7487_v60 = vadd.f32 %v4909_v29, %v2509_v53 }
 0xbe7   :  { %v7485_v36 = vadd.f32 %v4909_v29, %v2508_v35  ;;  %v3169_v35 = vld [vmem:[#allocation7 + $0x578] sm:$0xff] }
 0xbe8   :  { %6264 = vmatprep.subr.mxu0 %v3169_v35 }
 0xbe9   :  { %v2520_v37 = vadd.f32 %v2519_v59, %v7485_v36  ;;  %v3168_v59 = vld [vmem:[#allocation7 + $0x570] sm:$0xff] }
 0xbeb   :  { %v2521_v42 = vadd.f32 %v2520_v37, %v7487_v60  ;;  %v3167_v37 = vld [vmem:[#allocation7 + $0x568] sm:$0xff] }
 0xbed   :  { %v2522_v44 = vrot.slane %v2521_v42, 4 }
 0xbef   :  { %v2523_v4 = vadd.f32 %v2522_v44, %v2521_v42  ;;  %v3166_v42 = vld [vmem:[#allocation7 + $0x560] sm:$0xff]  ;;  %v3165_v44 = vld [vmem:[#allocation7 + $0x558] sm:$0xff] }
 0xbf1   :  { %v2524_v7 = vrot.slane %v2523_v4, 2 }
 0xbf3   :  { %v2525_v9 = vadd.f32 %v2524_v7, %v2523_v4  ;;  %v3164_v4 = vld [vmem:[#allocation7 + $0x550] sm:$0xff]  ;;  %v3163_v7 = vld [vmem:[#allocation7 + $0x548] sm:$0xff] }
 0xbf5   :  { %v2526_v10 = vrot.slane %v2525_v9, 1 }
 0xbf7   :  { %v2527_v12 = vadd.f32 %v2526_v10, %v2525_v9  ;;  %v3162_v9 = vld [vmem:[#allocation7 + $0x540] sm:$0xff]  ;;  %v3161_v10 = vld [vmem:[#allocation7 + $0x538] sm:$0xff] }
 0xbf9   :  { %6146 = vmatmul.mubr.f32.vlgmr.msra.gmra.mxu1 %v2527_v12 }
 0xbfa   :  { %6149 = vmatpush3.msra.mxu1 %v7494_v13  ;;  %6150 = vmatprep.mubr.msk.f32.mxu1 %vm6800_vm1, %v6799_v5 }
 0xbfb   :  { %6188 = vmatprep.subr.mxu1 %v6799_v5 }
 0xcb9   :  { %v2594_v14 = vpop.f32.mrf.mxu1 }
 0xcba   :  { %v7500_v15 = vmul.f32 0.001953125, %v2594_v14 }
 0xcbb   :  { %v6147_v17 = vpop.f32.mrf.mxu1 }
 0xcbc   :  { %6151 = vmatmul.mubr.msk.f32.vlgmr.msra.gmra.mxu1 %vm696_vm2, %v7500_v15 }
 0xcbd   :  { %6189 = vmatpush3.msra.mxu1 %v7494_v13  ;;  %6190 = vmatprep.mubr.msk.f32.mxu1 %vm6800_vm1, %v6799_v5 }
 0xcbe   :  { %6193 = vmatprep.subr.mxu1 %v6799_v5 }
 0xd7c   :  { %v2668_v18 = vpop.f32.mrf.mxu1 }
 0xd7d   :  { %v2675_v19 = vrot.slane %v2668_v18, %v7099_v61 }
 0xd7e   :  { %v6152_v20 = vpop.f32.mrf.mxu1 }
 0xd7f   :  { %v2676_v52 = vsub.f32 %v7479_v51, %v2675_v19  ;;  %v2677_v56 = vsub.f32 %v7481_v34, %v2675_v19  ;;  %v2678_v62 = vsub.f32 %v7485_v36, %v2675_v19  ;;  %v2679_v55 = vsub.f32 %v7487_v60, %v2675_v19  ;;  %v2764_v19 = vld [vmem:[%s7912_s5 + $0x2] sm:$0x1] }
 0xd81   :  { %v2680_v1 = vmul.f32 %v2676_v52, %v2676_v52  ;;  %v2681_v2 = vmul.f32 %v2677_v56, %v2677_v56  ;;  %v2682_v21 = vmul.f32 %v2678_v62, %v2678_v62  ;;  %v2683_v26 = vmul.f32 %v2679_v55, %v2679_v55  ;;  %v2768_v56 = vld [vmem:[%s7913_s6 + $0x2] sm:$0x1] }
 0xd83   :  { %v2684_v25 = vadd.f32 %v2681_v2, %v2680_v1  ;;  %v3160_v1 = vld [vmem:[#allocation7 + $0x530] sm:$0xff]  ;;  %v3159_v2 = vld [vmem:[#allocation7 + $0x528] sm:$0xff] }
 0xd85   :  { %v2685_v27 = vadd.f32 %v2684_v25, %v2682_v21  ;;  %v3158_v21 = vld [vmem:[#allocation7 + $0x520] sm:$0xff]  ;;  %v3157_v25 = vld [vmem:[#allocation7 + $0x518] sm:$0xff] }
 0xd87   :  { %v2686_v28 = vadd.f32 %v2685_v27, %v2683_v26  ;;  %v3155_v26 = vld [vmem:[#allocation7 + $0x508] sm:$0xff]  ;;  %v3154_v27 = vld [vmem:[#allocation7 + $0x500] sm:$0xff] }
 0xd89   :  { %v2687_v29 = vrot.slane %v2686_v28, 4 }
 0xd8b   :  { %v2688_v30 = vadd.f32 %v2687_v29, %v2686_v28  ;;  %v2950_v28 = vld [vmem:[#allocation2 + $0x60] sm:$0xff] }
 0xd8d   :  { %v2689_v31 = vrot.slane %v2688_v30, 2 }
 0xd8f   :  { %v2690_v32 = vadd.f32 %v2689_v31, %v2688_v30 }
 0xd91   :  { %v2691_v33 = vrot.slane %v2690_v32, 1 }
 0xd93   :  { %v2692_v53 = vadd.f32 %v2691_v33, %v2690_v32 }
 0xd95   :  { %6186 = vmatmul.mubr.f32.vlgmr.msra.gmra.mxu0 %v2692_v53 }
 0xd96   :  { %6265 = vmatpush3.msra.mxu0 %v3169_v35 }
 0xd97   :  { %6266 = vmatprep.subr.mxu0 %v3168_v59 }
 0xd98   :  { %6267 = vmatpush3.msra.mxu0 %v3168_v59 }
 0xd99   :  { %6268 = vmatprep.subr.mxu0 %v3167_v37 }
 0xd9a   :  { %6269 = vmatpush3.msra.mxu0 %v3167_v37 }
 0xd9b   :  { %6270 = vmatprep.subr.mxu0 %v3166_v42 }
 0xd9c   :  { %6271 = vmatpush3.msra.mxu0 %v3166_v42 }
 0xd9d   :  { %6272 = vmatprep.subr.mxu0 %v3165_v44 }
 0xd9e   :  { %6273 = vmatpush3.msra.mxu0 %v3165_v44 }
 0xd9f   :  { %6274 = vmatprep.subr.mxu0 %v3164_v4 }
 0xda0   :  { %6275 = vmatpush3.msra.mxu0 %v3164_v4 }
 0xda1   :  { %6276 = vmatprep.subr.mxu0 %v3163_v7 }
 0xda2   :  { %6277 = vmatpush3.msra.mxu0 %v3163_v7 }
 0xda3   :  { %6278 = vmatprep.subr.mxu0 %v3162_v9 }
 0xda4   :  { %6279 = vmatpush3.msra.mxu0 %v3162_v9 }
 0xda5   :  { %6280 = vmatprep.subr.mxu0 %v3161_v10 }
 0xda6   :  { %6281 = vmatpush3.msra.mxu0 %v3161_v10 }
 0xda7   :  { %6282 = vmatprep.subr.mxu0 %v3160_v1 }
 0xda8   :  { %6283 = vmatpush3.msra.mxu0 %v3160_v1  ;;  %v3181_v1 = vld [vmem:[#allocation7 + $0x4d0] sm:$0xff] }
 0xda9   :  { %6284 = vmatprep.subr.mxu0 %v3159_v2 }
 0xdaa   :  { %6285 = vmatpush3.msra.mxu0 %v3159_v2  ;;  %v3180_v2 = vld [vmem:[#allocation7 + $0x4c8] sm:$0xff] }
 0xdab   :  { %6286 = vmatprep.subr.mxu0 %v3158_v21 }
 0xdac   :  { %6287 = vmatpush3.msra.mxu0 %v3158_v21  ;;  %v3178_v21 = vld [vmem:[#allocation7 + $0x4b8] sm:$0xff] }
 0xdad   :  { %6288 = vmatprep.subr.mxu0 %v3157_v25 }
 0xdae   :  { %6289 = vmatpush3.msra.mxu0 %v3157_v25  ;;  %v3177_v25 = vld [vmem:[#allocation7 + $0x4b0] sm:$0xff] }
 0xe55   :  { %v2759_v12 = vpop.f32.mrf.mxu0 }
 0xe56   :  { %v2763_v14 = vmul.f32 0.001953125, %v2759_v12 }
 0xe57   :  { %v6187_v17 = vpop.f32.mrf.mxu0 }
 0xe58   :  { %v2765_v18 = vadd.f32 1e-05, %v2763_v14 }
 0xe5a   :  { %6664 = vrsqrt.f32 %v2765_v18 }
 0xe67   :  { %v6665_v20 = vpop.eup %6664 }
 0xe68   :  { %v2767_v52 = vmul.f32 %v6665_v20, %v2764_v19 }
 0xe6a   :  { %6191 = vmatmul.mubr.msk.f32.vlgmr.msra.gmra.mxu1 %vm696_vm2, %v2767_v52  ;;  %v2769_v62 = vmul.f32 %v2767_v52, %v7500_v15  ;;  %v3156_v15 = vld [vmem:[#allocation7 + $0x510] sm:$0xff] }
 0xe6b   :  { %6194 = vmatpush3.msra.mxu1 %v7494_v13  ;;  %6195 = vmatprep.mubr.msk.f32.mxu1 %vm6800_vm1, %v6799_v5 }
 0xe6c   :  { %v2770_v55 = vsub.f32 %v2768_v56, %v2769_v62  ;;  %6290 = vmatprep.subr.mxu0 %v3156_v15  ;;  %v3185_v56 = vld [vmem:[#allocation7 + $0x4f0] sm:$0xff]  ;;  %v3184_v62 = vld [vmem:[#allocation7 + $0x4e8] sm:$0xff] }
 0xe6d   :  { %6291 = vmatpush3.msra.mxu0 %v3156_v15  ;;  %v3176_v15 = vld [vmem:[#allocation7 + $0x4a8] sm:$0xff] }
 0xe6e   :  { %6196 = vmatmul.mubr.msk.f32.vlgmr.msra.gmra.mxu1 %vm696_vm2, %v2770_v55  ;;  %6292 = vmatprep.subr.mxu0 %v3155_v26  ;;  %v3183_v55 = vld [vmem:[#allocation7 + $0x4e0] sm:$0xff] }
 0xe6f   :  { %6293 = vmatpush3.msra.mxu0 %v3155_v26  ;;  %6206 = vmatprep.mubr.msk.f32.mxu1 %vm99_vm0, %v2950_v28  ;;  %v3175_v26 = vld [vmem:[#allocation7 + $0x4a0] sm:$0xff]  ;;  %v3173_v28 = vld [vmem:[#allocation7 + $0x490] sm:$0xff] }
 0xe70   :  { %6294 = vmatprep.subr.mxu0 %v3154_v27 }
 0xe71   :  { %6295 = vmatpush3.msra.mxu0 %v3154_v27  ;;  %v3174_v27 = vld [vmem:[#allocation7 + $0x498] sm:$0xff] }
 0xe72   :  { %6340 = vmatprep.subr.mxu0 %v6799_v5 }
 0xf2a   :  { %v2840_v29 = vpop.f32.mrf.mxu1 }
 0xf2b   :  { %v2847_v30 = vrot.slane %v2840_v29, %v7099_v61  ;;  %v3172_v29 = vld [vmem:[#allocation7 + $0x488] sm:$0xff] }
 0xf2c   :  { %v6192_v31 = vpop.f32.mrf.mxu1 }
 0xf2d   :  { %v2848_v32 = vmul.f32 %v2847_v30, %v7479_v51  ;;  %v2849_v53 = vmul.f32 %v2847_v30, %v7481_v34  ;;  %v2850_v35 = vmul.f32 %v2847_v30, %v7485_v36  ;;  %v2851_v59 = vmul.f32 %v2847_v30, %v7487_v60  ;;  %v3171_v30 = vld [vmem:[#allocation7 + $0x480] sm:$0xff]  ;;  %v3373_v31 = vld [vmem:[#allocation7 + $0x5f8] sm:$0xff] }
 0xf2e   :  { %v2921_v33 = vpop.f32.mrf.mxu1 }
 0xf2f   :  { %v2928_v37 = vrot.slane %v2921_v33, %v7099_v61 }
 0xf30   :  { %v6197_v42 = vpop.f32.mrf.mxu1 }
 0xf31   :  { %v2929_v44 = vadd.f32 %v2928_v37, %v2848_v32  ;;  %v2930_v4 = vadd.f32 %v2928_v37, %v2849_v53  ;;  %v2931_v7 = vadd.f32 %v2928_v37, %v2850_v35  ;;  %v2932_v9 = vadd.f32 %v2928_v37, %v2851_v59  ;;  %v3372_v53 = vld [vmem:[#allocation7 + $0x5f0] sm:$0xff]  ;;  %v3371_v59 = vld [vmem:[#allocation7 + $0x5e8] sm:$0xff]  ;;  %v3370_v42 = vld [vmem:[#allocation7 + $0x5e0] sm:$0xff] }
 0xf33   :  { %vm2933_vm11 = vcmp.ge.f32.partialorder %v2929_v44, 0.0  ;;  %vm2934_vm12 = vcmp.ge.f32.partialorder %v2930_v4, 0.0  ;;  %vm2935_vm13 = vcmp.ge.f32.partialorder %v2931_v7, 0.0  ;;  %vm2936_vm14 = vcmp.ge.f32.partialorder %v2932_v9, 0.0 }
 0xf34   :  { %v2937_v10 = vmul.f32 0.01, %v2929_v44  ;;  %v2938_v51 = vmul.f32 0.01, %v2930_v4  ;;  %v2939_v12 = vmul.f32 0.01, %v2931_v7 }
 0xf35   :  { %v2940_v14 = vmul.f32 0.01, %v2932_v9 }
 0xf36   :  { %v2941_v34 = vsel %vm2933_vm11, %v2929_v44, %v2937_v10  ;;  %v2942_v17 = vsel %vm2934_vm12, %v2930_v4, %v2938_v51  ;;  %v2943_v36 = vsel %vm2935_vm13, %v2931_v7, %v2939_v12  ;;  %v3369_v4 = vld [vmem:[#allocation7 + $0x5d8] sm:$0xff]  ;;  %v3367_v10 = vld [vmem:[#allocation7 + $0x5c8] sm:$0xff]  ;;  %v3366_v51 = vld [vmem:[#allocation7 + $0x5c0] sm:$0xff] }
 0xf37   :  { %v2944_v18 = vsel %vm2936_vm14, %v2932_v9, %v2940_v14  ;;  %v7534_v60 = vadd.f32 %v2941_v34, %v7128_v45  ;;  %v7537_v19 = vadd.f32 %v2942_v17, %v7132_v46  ;;  %v7543_v52 = vadd.f32 %v2943_v36, %v7136_v38  ;;  %v2952_v45 = vld [vmem:[#allocation2 + $0x70] sm:$0xff]  ;;  %v2953_v46 = vld [vmem:[#allocation2 + $0x78] sm:$0xff]  ;;  %v3052_v38 = vld [vmem:[#allocation5 + $0x60] sm:$0xff] }
 0xf38   :  { %v7540_v20 = vadd.f32 %v2944_v18, %v7126_v41  ;;  %v2951_v41 = vld [vmem:[#allocation2 + $0x68] sm:$0xff]  ;;  %v3368_v9 = vld [vmem:[#allocation7 + $0x5d0] sm:$0xff]  ;;  %v3365_v12 = vld [vmem:[#allocation7 + $0x5b8] sm:$0xff] }
 0xf39   :  { %6296 = vmatprep.mubr.f32.mxu0 %v7534_v60  ;;  %v3364_v14 = vld [vmem:[#allocation7 + $0x5b0] sm:$0xff]  ;;  %v3363_v34 = vld [vmem:[#allocation7 + $0x5a8] sm:$0xff]  ;;  %v3362_v17 = vld [vmem:[#allocation7 + $0x5a0] sm:$0xff] }
 0xf3a   :  { %6198 = vmatprep.subr.mxu1 %v7540_v20  ;;  %6297 = vmatmul.mubr.f32.vlgmr.msra.gmra.mxu0 %v7537_v19  ;;  %v3361_v36 = vld [vmem:[#allocation7 + $0x598] sm:$0xff]  ;;  %v3360_v18 = vld [vmem:[#allocation7 + $0x590] sm:$0xff] }
 0xf3b   :  { %6199 = vmatpush3.msra.mxu1 %v7540_v20  ;;  %6299 = vmatprep.mubr.f32.mxu0 %v7543_v52 }
 0xf3c   :  { %6200 = vmatprep.subr.mxu1 %v7543_v52  ;;  %6341 = vmatpush3.msra.mxu0 %v7310_v48  ;;  %v3053_v48 = vld [vmem:[#allocation5 + $0x68] sm:$0xff] }
 0xf3d   :  { %6201 = vmatpush3.msra.mxu1 %v7543_v52  ;;  %6342 = vmatprep.subr.mxu0 %v6799_v5 }
 0xf3e   :  { %6202 = vmatprep.subr.mxu1 %v7537_v19  ;;  %6300 = vmatmul.mubr.f32.gmra.mxu0 %v7540_v20 }
 0xf3f   :  { %6203 = vmatpush3.msra.mxu1 %v7537_v19  ;;  %6343 = vmatpush3.msra.mxu0 %v7321_v6  ;;  %v3186_v6 = vld [vmem:[#allocation7 + $0x4f8] sm:$0xff] }
 0xf40   :  { %6204 = vmatprep.subr.mxu1 %v7534_v60  ;;  %6344 = vmatprep.subr.mxu0 %v6799_v5 }
 0xf41   :  { %6205 = vmatpush3.msra.mxu1 %v7534_v60  ;;  %6345 = vmatpush3.msra.mxu0 %v7330_v8  ;;  %v3054_v8 = vld [vmem:[#allocation5 + $0x70] sm:$0xff] }
 0xf42   :  { %6207 = vmatmul.mubr.msk.f32.vlgmr.msra.gmra.mxu1 %vm99_vm0, %v2951_v41  ;;  %6212 = vmatprep.subr.mxu1 %v7540_v20  ;;  %v3359_v41 = vld [vmem:[#allocation7 + $0x588] sm:$0xff] }
 0xf43   :  { %6213 = vmatpush3.msra.mxu1 %v7540_v20  ;;  %6209 = vmatprep.mubr.msk.f32.mxu1 %vm99_vm0, %v2952_v45 }
 0xf44   :  { %6214 = vmatprep.subr.mxu1 %v7543_v52  ;;  %6346 = vmatprep.subr.mxu0 %v6799_v5 }
 0xf45   :  { %6215 = vmatpush3.msra.mxu1 %v7543_v52  ;;  %6347 = vmatpush3.msra.mxu0 %v7343_v11  ;;  %v3055_v11 = vld [vmem:[#allocation5 + $0x78] sm:$0xff] }
 0xf46   :  { %6210 = vmatmul.mubr.msk.f32.gmra.mxu1 %vm99_vm0, %v2953_v46  ;;  %6216 = vmatprep.subr.mxu1 %v7537_v19  ;;  %v3358_v46 = vld [vmem:[#allocation7 + $0x580] sm:$0xff] }
 0xf47   :  { %6217 = vmatpush3.msra.mxu1 %v7537_v19  ;;  %6220 = vmatprep.mubr.msk.f32.mxu1 %vm99_vm0, %v3052_v38 }
 0xf48   :  { %6218 = vmatprep.subr.mxu1 %v7534_v60  ;;  %6348 = vmatprep.subr.mxu0 %v6799_v5 }
 0xf49   :  { %6219 = vmatpush3.msra.mxu1 %v7534_v60  ;;  %6349 = vmatpush3.msra.mxu0 %v7356_v16  ;;  %v3182_v16 = vld [vmem:[#allocation7 + $0x4d8] sm:$0xff] }
 0xf4a   :  { %6221 = vmatmul.mubr.msk.f32.vlgmr.msra.gmra.mxu1 %vm99_vm0, %v3053_v48  ;;  %6226 = vmatprep.subr.mxu1 %v3186_v6  ;;  %v7610_v48 = vld [vmem:[%s7914_s7 + $0x78] sm:$0xff] }
 0xf4b   :  { %6223 = vmatprep.mubr.msk.f32.mxu1 %vm99_vm0, %v3054_v8  ;;  %6227 = vmatpush3.msra.mxu1 %v3186_v6  ;;  %v7617_v6 = vld [vmem:[%s7914_s7 + $0x70] sm:$0xff]  ;;  %v7624_v8 = vld [vmem:[%s7914_s7 + $0x68] sm:$0xff] }
 0xf4c   :  { %6228 = vmatprep.subr.mxu1 %v3185_v56  ;;  %6350 = vmatprep.subr.mxu0 %v6799_v5 }
 0xf4d   :  { %6229 = vmatpush3.msra.mxu1 %v3185_v56  ;;  %6351 = vmatpush3.msra.mxu0 %v7365_v49  ;;  %v3179_v49 = vld [vmem:[#allocation7 + $0x4c0] sm:$0xff] }
 0xf4e   :  { %6224 = vmatmul.mubr.msk.f32.gmra.mxu1 %vm99_vm0, %v3055_v11  ;;  %6230 = vmatprep.subr.mxu1 %v3184_v62  ;;  %v7633_v56 = vld [vmem:[%s7914_s7 + $0x60] sm:$0xff]  ;;  %v7640_v11 = vld [vmem:[%s7914_s7 + $0x58] sm:$0xff] }
 0xf4f   :  { %6231 = vmatpush3.msra.mxu1 %v3184_v62  ;;  %6352 = vmatprep.subr.mxu0 %v6799_v5  ;;  %v7647_v62 = vld [vmem:[%s7914_s7 + $0x50] sm:$0xff] }
 0xf50   :  { %6232 = vmatprep.subr.mxu1 %v3183_v55  ;;  %6353 = vmatpush3.msra.mxu0 %v7373_v50 }
 0xf51   :  { %6233 = vmatpush3.msra.mxu1 %v3183_v55  ;;  %6354 = vmatprep.subr.mxu0 %v6799_v5 }
 0xf52   :  { %6234 = vmatprep.subr.mxu1 %v3182_v16  ;;  %6355 = vmatpush3.msra.mxu0 %v7380_v54 }
 0xf53   :  { %6235 = vmatpush3.msra.mxu1 %v3182_v16  ;;  %6356 = vmatprep.subr.mxu0 %v6799_v5 }
 0xf54   :  { %6236 = vmatprep.subr.mxu1 %v3181_v1  ;;  %6357 = vmatpush3.msra.mxu0 %v7387_v58 }
 0xf55   :  { %6237 = vmatpush3.msra.mxu1 %v3181_v1  ;;  %6358 = vmatprep.subr.mxu0 %v6799_v5 }
 0xf56   :  { %6238 = vmatprep.subr.mxu1 %v3180_v2  ;;  %6359 = vmatpush3.msra.mxu0 %v7394_v63 }
 0xf57   :  { %6239 = vmatpush3.msra.mxu1 %v3180_v2  ;;  %6360 = vmatprep.subr.mxu0 %v6799_v5 }
 0xf58   :  { %6240 = vmatprep.subr.mxu1 %v3179_v49  ;;  %6361 = vmatpush3.msra.mxu0 %v7401_v0 }
 0xf59   :  { %6241 = vmatpush3.msra.mxu1 %v3179_v49  ;;  %6362 = vmatprep.subr.mxu0 %v6799_v5 }
 0xf5a   :  { %6242 = vmatprep.subr.mxu1 %v3178_v21  ;;  %6363 = vmatpush3.msra.mxu0 %v7408_v57 }
 0xf5b   :  { %6243 = vmatpush3.msra.mxu1 %v3178_v21  ;;  %6364 = vmatprep.subr.mxu0 %v6799_v5 }
 0xf5c   :  { %6244 = vmatprep.subr.mxu1 %v3177_v25  ;;  %6365 = vmatpush3.msra.mxu0 %v7415_v3 }
 0xf5d   :  { %6245 = vmatpush3.msra.mxu1 %v3177_v25  ;;  %6366 = vmatprep.subr.mxu0 %v6799_v5 }
 0xf5e   :  { %6246 = vmatprep.subr.mxu1 %v3176_v15  ;;  %6367 = vmatpush3.msra.mxu0 %v7422_v22 }
 0xf5f   :  { %6247 = vmatpush3.msra.mxu1 %v3176_v15  ;;  %6368 = vmatprep.subr.mxu0 %v6799_v5 }
 0xf60   :  { %6248 = vmatprep.subr.mxu1 %v3175_v26  ;;  %6369 = vmatpush3.msra.mxu0 %v7429_v23 }
 0xf61   :  { %6249 = vmatpush3.msra.mxu1 %v3175_v26  ;;  %6370 = vmatprep.subr.mxu0 %v6799_v5 }
 0xf62   :  { %6371 = vmatpush3.msra.mxu0 %v7436_v24  ;;  %6372 = vmatprep.mubr.msk.f32.mxu0 %vm6800_vm1, %v6799_v5 }
 0xf63   :  { %6375 = vmatprep.subr.mxu0 %v6799_v5  ;;  %6250 = vmatprep.subr.mxu1 %v3174_v27 }
 0xf64   :  { %6251 = vmatpush3.msra.mxu1 %v3174_v27 }
 0xf65   :  { %6252 = vmatprep.subr.mxu1 %v3173_v28 }
 0xf66   :  { %6253 = vmatpush3.msra.mxu1 %v3173_v28 }
 0xf67   :  { %6254 = vmatprep.subr.mxu1 %v3172_v29 }
 0xf68   :  { %6255 = vmatpush3.msra.mxu1 %v3172_v29 }
 0xf69   :  { %6256 = vmatprep.subr.mxu1 %v3171_v30 }
 0xf6a   :  { %6257 = vmatpush3.msra.mxu1 %v3171_v30 }
 0xf6b   :  { %6302 = vmatprep.subr.mxu1 %v3373_v31 }
0x1002   :  { %v6208_v32 = vpop.f32.mrf.mxu1 }
0x1004   :  { %v3032_v33 = vpop.f32.mrf.mxu1 }
0x1005   :  { %6258 = vmatprep.mubr.f32.mxu1 %v3032_v33 }
0x1006   :  { %v6211_v35 = vpop.f32.mrf.mxu1  ;;  %6259 = vmatmul.mubr.f32.vlgmr.msra.gmra.mxu1 %v6208_v32 }
0x1007   :  { %6303 = vmatpush3.msra.mxu1 %v3373_v31 }
0x1008   :  { %6304 = vmatprep.subr.mxu1 %v3372_v53  ;;  %v3042_v37 = vpop.f32.mrf.mxu1 }
0x1009   :  { %6305 = vmatpush3.msra.mxu1 %v3372_v53  ;;  %6261 = vmatprep.mubr.f32.mxu1 %v3042_v37 }
0x100a   :  { %6306 = vmatprep.subr.mxu1 %v3371_v59  ;;  %6262 = vmatmul.mubr.f32.gmra.mxu1 %v6211_v35  ;;  %v6222_v44 = vpop.f32.mrf.mxu1 }
0x100b   :  { %6307 = vmatpush3.msra.mxu1 %v3371_v59 }
0x100c   :  { %6308 = vmatprep.subr.mxu1 %v3370_v42  ;;  %v3134_v7 = vpop.f32.mrf.mxu1 }
0x100d   :  { %6309 = vmatpush3.msra.mxu1 %v3370_v42  ;;  %6334 = vmatprep.mubr.f32.mxu1 %v3134_v7 }
0x100e   :  { %6310 = vmatprep.subr.mxu1 %v3369_v4  ;;  %v6225_v45 = vpop.f32.mrf.mxu1 }
0x100f   :  { %6311 = vmatpush3.msra.mxu1 %v3369_v4 }
0x1010   :  { %6312 = vmatprep.subr.mxu1 %v3368_v9  ;;  %v3144_v38 = vpop.f32.mrf.mxu1 }
0x1011   :  { %6313 = vmatpush3.msra.mxu1 %v3368_v9 }
0x1012   :  { %6314 = vmatprep.subr.mxu1 %v3367_v10 }
0x1013   :  { %6315 = vmatpush3.msra.mxu1 %v3367_v10 }
0x1014   :  { %6316 = vmatprep.subr.mxu1 %v3366_v51 }
0x1015   :  { %6317 = vmatpush3.msra.mxu1 %v3366_v51 }
0x1016   :  { %6318 = vmatprep.subr.mxu1 %v3365_v12 }
0x1017   :  { %6319 = vmatpush3.msra.mxu1 %v3365_v12 }
0x1018   :  { %6320 = vmatprep.subr.mxu1 %v3364_v14 }
0x1019   :  { %6321 = vmatpush3.msra.mxu1 %v3364_v14 }
0x101a   :  { %6322 = vmatprep.subr.mxu1 %v3363_v34 }
0x101b   :  { %6323 = vmatpush3.msra.mxu1 %v3363_v34 }
0x101c   :  { %6324 = vmatprep.subr.mxu1 %v3362_v17 }
0x101d   :  { %6325 = vmatpush3.msra.mxu1 %v3362_v17 }
0x101e   :  { %6326 = vmatprep.subr.mxu1 %v3361_v36 }
0x101f   :  { %6327 = vmatpush3.msra.mxu1 %v3361_v36 }
0x1020   :  { %6328 = vmatprep.subr.mxu1 %v3360_v18 }
0x1021   :  { %6329 = vmatpush3.msra.mxu1 %v3360_v18 }
0x1022   :  { %6330 = vmatprep.subr.mxu1 %v3359_v41 }
0x1023   :  { %6331 = vmatpush3.msra.mxu1 %v3359_v41 }
0x1024   :  { %6332 = vmatprep.subr.mxu1 %v3358_v46 }
0x1025   :  { %6333 = vmatpush3.msra.mxu1 %v3358_v46 }
0x1026   :  { %6335 = vmatmul.mubr.f32.vlgmr.msra.gmra.mxu1 %v6222_v44  ;;  %6380 = vmatprep.subr.mxu1 %v6799_v5 }
0x1027   :  { %6337 = vmatprep.mubr.f32.mxu1 %v3144_v38  ;;  %6381 = vmatpush3.msra.mxu1 %v7610_v48 }
0x1028   :  { %6382 = vmatprep.subr.mxu1 %v6799_v5 }
0x1029   :  { %6383 = vmatpush3.msra.mxu1 %v7617_v6 }
0x102a   :  { %6338 = vmatmul.mubr.f32.gmra.mxu1 %v6225_v45  ;;  %6384 = vmatprep.subr.mxu1 %v6799_v5 }
0x102b   :  { %6385 = vmatpush3.msra.mxu1 %v7624_v8  ;;  %6412 = vmatprep.mubr.msk.f32.mxu1 %vm6800_vm1, %v6799_v5 }
0x102c   :  { %6386 = vmatprep.subr.mxu1 %v6799_v5 }
0x102d   :  { %6387 = vmatpush3.msra.mxu1 %v7633_v56 }
0x102e   :  { %6388 = vmatprep.subr.mxu1 %v6799_v5 }
0x102f   :  { %6389 = vmatpush3.msra.mxu1 %v7640_v11 }
0x1030   :  { %6390 = vmatprep.subr.mxu1 %v6799_v5 }
0x1031   :  { %6391 = vmatpush3.msra.mxu1 %v7647_v62 }
0x1032   :  { %6392 = vmatprep.subr.mxu1 %v6799_v5 }
0x1033   :  { %6393 = vmatpush3.msra.mxu1 %v7373_v50 }
0x1034   :  { %6394 = vmatprep.subr.mxu1 %v6799_v5 }
0x1035   :  { %6395 = vmatpush3.msra.mxu1 %v7380_v54 }
0x1036   :  { %6396 = vmatprep.subr.mxu1 %v6799_v5 }
0x1037   :  { %6397 = vmatpush3.msra.mxu1 %v7387_v58  ;;  %v6298_v58 = vpop.f32.mrf.mxu0 }
0x1038   :  { %6398 = vmatprep.subr.mxu1 %v6799_v5 }
0x1039   :  { %6399 = vmatpush3.msra.mxu1 %v7394_v63 }
0x103a   :  { %6400 = vmatprep.subr.mxu1 %v6799_v5 }
0x103b   :  { %6401 = vmatpush3.msra.mxu1 %v7401_v0  ;;  %v3338_v0 = vpop.f32.mrf.mxu0 }
0x103c   :  { %6402 = vmatprep.subr.mxu1 %v6799_v5 }
0x103d   :  { %6403 = vmatpush3.msra.mxu1 %v7408_v57  ;;  %v6301_v55 = vpop.f32.mrf.mxu0 }
0x103e   :  { %6404 = vmatprep.subr.mxu1 %v6799_v5 }
0x103f   :  { %6405 = vmatpush3.msra.mxu1 %v7415_v3  ;;  %v3348_v21 = vpop.f32.mrf.mxu0 }
0x1040   :  { %6406 = vmatprep.subr.mxu1 %v6799_v5 }
0x1041   :  { %6407 = vmatpush3.msra.mxu1 %v7422_v22 }
0x1042   :  { %6408 = vmatprep.subr.mxu1 %v6799_v5 }
0x1043   :  { %6409 = vmatpush3.msra.mxu1 %v7429_v23  ;;  %v4921_v23 = vld [vmem:[%s7911_s4 + $0x3] ss:$0 sm:$0xff] }
0x1044   :  { %6410 = vmatprep.subr.mxu1 %v6799_v5 }
0x1045   :  { %6411 = vmatpush3.msra.mxu1 %v7436_v24 }
0x10c6   :  { %v6260_v50 = vpop.f32.mrf.mxu1 }
0x10c7   :  { %v3344_v16 = vadd.f32 %v6298_v58, %v6260_v50 }
0x10c8   :  { %v3253_v54 = vpop.f32.mrf.mxu1 }
0x10c9   :  { %v3339_v1 = vadd.f32 %v3338_v0, %v3253_v54 }
0x10ca   :  { %v6263_v63 = vpop.f32.mrf.mxu1 }
0x10cb   :  { %v3354_v24 = vadd.f32 %v6301_v55, %v6263_v63 }
0x10cc   :  { %v3263_v57 = vpop.f32.mrf.mxu1 }
0x10cd   :  { %v3349_v15 = vadd.f32 %v3348_v21, %v3263_v57  ;;  %v4119_v21 = vld [vmem:[#allocation7 + $0x6e0] sm:$0xff] }
0x10e6   :  { %v6336_v3 = vpop.f32.mrf.mxu1 }
0x10e7   :  { %v3460_v22 = vadd.f32 %v6336_v3, %v3344_v16 }
0x10e8   :  { %v3440_v2 = vpop.f32.mrf.mxu1 }
0x10e9   :  { %v3459_v49 = vadd.f32 %v3440_v2, %v3339_v1  ;;  %v7675_v28 = vadd.f32 %v4921_v23, %v3460_v22  ;;  %v4122_v2 = vld [vmem:[#allocation7 + $0x6f8] sm:$0xff]  ;;  %v4121_v22 = vld [vmem:[#allocation7 + $0x6f0] sm:$0xff] }
0x10ea   :  { %v6339_v25 = vpop.f32.mrf.mxu1  ;;  %6491 = vmatprep.subr.mxu1 %v4122_v2 }
0x10eb   :  { %v7673_v26 = vadd.f32 %v4921_v23, %v3459_v49  ;;  %v3462_v29 = vadd.f32 %v6339_v25, %v3354_v24  ;;  %v4120_v49 = vld [vmem:[#allocation7 + $0x6e8] sm:$0xff]  ;;  %v4117_v25 = vld [vmem:[#allocation7 + $0x6d0] sm:$0xff] }
0x10ec   :  { %v3450_v27 = vpop.f32.mrf.mxu1  ;;  %v4116_v24 = vld [vmem:[#allocation7 + $0x6c8] sm:$0xff] }
0x10ed   :  { %v3461_v30 = vadd.f32 %v3450_v27, %v3349_v15  ;;  %v3472_v31 = vadd.f32 %v7675_v28, %v7673_v26  ;;  %v7681_v33 = vadd.f32 %v4921_v23, %v3462_v29  ;;  %v4115_v15 = vld [vmem:[#allocation7 + $0x6c0] sm:$0xff]  ;;  %v4114_v27 = vld [vmem:[#allocation7 + $0x6b8] sm:$0xff] }
0x10ef   :  { %v7679_v32 = vadd.f32 %v4921_v23, %v3461_v30  ;;  %v4118_v23 = vld [vmem:[#allocation7 + $0x6d8] sm:$0xff] }
0x10f1   :  { %v3473_v53 = vadd.f32 %v3472_v31, %v7679_v32 }
0x10f3   :  { %v3474_v35 = vadd.f32 %v3473_v53, %v7681_v33 }
0x10f5   :  { %v3475_v59 = vrot.slane %v3474_v35, 4 }
0x10f7   :  { %v3476_v37 = vadd.f32 %v3475_v59, %v3474_v35  ;;  %v3717_v35 = vld [vmem:[%s7912_s5 + $0x3] sm:$0x1] }
0x10f9   :  { %v3477_v42 = vrot.slane %v3476_v37, 2 }
0x10fb   :  { %v3478_v44 = vadd.f32 %v3477_v42, %v3476_v37  ;;  %v3721_v42 = vld [vmem:[%s7913_s6 + $0x3] sm:$0x1] }
0x10fd   :  { %v3479_v4 = vrot.slane %v3478_v44, 1 }
0x10ff   :  { %v3480_v7 = vadd.f32 %v3479_v4, %v3478_v44 }
0x1101   :  { %6373 = vmatmul.mubr.f32.vlgmr.msra.gmra.mxu0 %v3480_v7  ;;  %v4113_v7 = vld [vmem:[#allocation7 + $0x6b0] sm:$0xff] }
0x1102   :  { %6376 = vmatpush3.msra.mxu0 %v7494_v13  ;;  %6377 = vmatprep.mubr.msk.f32.mxu0 %vm6800_vm1, %v6799_v5 }
0x1103   :  { %6415 = vmatprep.subr.mxu0 %v6799_v5 }
0x11c1   :  { %v3547_v9 = vpop.f32.mrf.mxu0 }
0x11c2   :  { %v7689_v10 = vmul.f32 0.001953125, %v3547_v9  ;;  %v4112_v9 = vld [vmem:[#allocation7 + $0x6a8] sm:$0xff] }
0x11c3   :  { %v6374_v51 = vpop.f32.mrf.mxu0 }
0x11c4   :  { %6378 = vmatmul.mubr.msk.f32.vlgmr.msra.gmra.mxu0 %vm696_vm2, %v7689_v10  ;;  %v4111_v51 = vld [vmem:[#allocation7 + $0x6a0] sm:$0xff] }
0x11c5   :  { %6416 = vmatpush3.msra.mxu0 %v7494_v13  ;;  %6417 = vmatprep.mubr.msk.f32.mxu0 %vm6800_vm1, %v6799_v5 }
0x11c6   :  { %6420 = vmatprep.subr.mxu0 %v6799_v5 }
0x1284   :  { %v3621_v12 = vpop.f32.mrf.mxu0 }
0x1285   :  { %v3628_v14 = vrot.slane %v3621_v12, %v7099_v61  ;;  %v4110_v12 = vld [vmem:[#allocation7 + $0x698] sm:$0xff] }
0x1286   :  { %v6379_v34 = vpop.f32.mrf.mxu0 }
0x1287   :  { %v3629_v17 = vsub.f32 %v7673_v26, %v3628_v14  ;;  %v3630_v36 = vsub.f32 %v7675_v28, %v3628_v14  ;;  %v3631_v18 = vsub.f32 %v7679_v32, %v3628_v14  ;;  %v3632_v41 = vsub.f32 %v7681_v33, %v3628_v14  ;;  %v4107_v14 = vld [vmem:[#allocation7 + $0x680] sm:$0xff] }
0x1288   :  { %v3903_v34 = vld [vmem:[#allocation2 + $0x80] sm:$0xff] }
0x1289   :  { %v3633_v45 = vmul.f32 %v3629_v17, %v3629_v17  ;;  %v3634_v46 = vmul.f32 %v3630_v36, %v3630_v36  ;;  %v3635_v38 = vmul.f32 %v3631_v18, %v3631_v18  ;;  %v3636_v54 = vmul.f32 %v3632_v41, %v3632_v41 }
0x128b   :  { %v3637_v50 = vadd.f32 %v3634_v46, %v3633_v45 }
0x128d   :  { %v3638_v58 = vadd.f32 %v3637_v50, %v3635_v38 }
0x128f   :  { %v3639_v63 = vadd.f32 %v3638_v58, %v3636_v54 }
0x1291   :  { %v3640_v0 = vrot.slane %v3639_v63, 4 }
0x1293   :  { %v3641_v57 = vadd.f32 %v3640_v0, %v3639_v63 }
0x1295   :  { %v3642_v55 = vrot.slane %v3641_v57, 2 }
0x1297   :  { %v3643_v3 = vadd.f32 %v3642_v55, %v3641_v57 }
0x1299   :  { %v3644_v16 = vrot.slane %v3643_v3, 1 }
0x129b   :  { %v3645_v1 = vadd.f32 %v3644_v16, %v3643_v3 }
0x129d   :  { %6413 = vmatmul.mubr.f32.vlgmr.msra.gmra.mxu1 %v3645_v1 }
0x129e   :  { %6492 = vmatpush3.msra.mxu1 %v4122_v2 }
0x129f   :  { %6493 = vmatprep.subr.mxu1 %v4121_v22 }
0x12a0   :  { %6494 = vmatpush3.msra.mxu1 %v4121_v22 }
0x12a1   :  { %6495 = vmatprep.subr.mxu1 %v4120_v49 }
0x12a2   :  { %6496 = vmatpush3.msra.mxu1 %v4120_v49 }
0x12a3   :  { %6497 = vmatprep.subr.mxu1 %v4119_v21 }
0x12a4   :  { %6498 = vmatpush3.msra.mxu1 %v4119_v21 }
0x12a5   :  { %6499 = vmatprep.subr.mxu1 %v4118_v23 }
0x12a6   :  { %6500 = vmatpush3.msra.mxu1 %v4118_v23 }
0x12a7   :  { %6501 = vmatprep.subr.mxu1 %v4117_v25 }
0x12a8   :  { %6502 = vmatpush3.msra.mxu1 %v4117_v25  ;;  %v4006_v25 = vld [vmem:[#allocation5 + $0x88] sm:$0xff] }
0x12a9   :  { %6503 = vmatprep.subr.mxu1 %v4116_v24 }
0x12aa   :  { %6504 = vmatpush3.msra.mxu1 %v4116_v24  ;;  %v4139_v24 = vld [vmem:[#allocation7 + $0x678] sm:$0xff] }
0x12ab   :  { %6505 = vmatprep.subr.mxu1 %v4115_v15 }
0x12ac   :  { %6506 = vmatpush3.msra.mxu1 %v4115_v15  ;;  %v4007_v15 = vld [vmem:[#allocation5 + $0x90] sm:$0xff] }
0x12ad   :  { %6507 = vmatprep.subr.mxu1 %v4114_v27 }
0x12ae   :  { %6508 = vmatpush3.msra.mxu1 %v4114_v27  ;;  %v4138_v27 = vld [vmem:[#allocation7 + $0x670] sm:$0xff] }
0x12af   :  { %6509 = vmatprep.subr.mxu1 %v4113_v7 }
0x12b0   :  { %6510 = vmatpush3.msra.mxu1 %v4113_v7  ;;  %v7769_v7 = vld [vmem:[%s7914_s7 + $0x30] sm:$0xff] }
0x12b1   :  { %6511 = vmatprep.subr.mxu1 %v4112_v9 }
0x12b2   :  { %6512 = vmatpush3.msra.mxu1 %v4112_v9  ;;  %v4131_v9 = vld [vmem:[#allocation7 + $0x638] sm:$0xff] }
0x12b3   :  { %6513 = vmatprep.subr.mxu1 %v4111_v51 }
0x12b4   :  { %6514 = vmatpush3.msra.mxu1 %v4111_v51  ;;  %v7776_v51 = vld [vmem:[%s7914_s7 + $0x28] sm:$0xff] }
0x12b5   :  { %6515 = vmatprep.subr.mxu1 %v4110_v12 }
0x12b6   :  { %6516 = vmatpush3.msra.mxu1 %v4110_v12  ;;  %v4130_v12 = vld [vmem:[#allocation7 + $0x630] sm:$0xff] }
0x135d   :  { %v3712_v29 = vpop.f32.mrf.mxu1 }
0x135e   :  { %v3716_v30 = vmul.f32 0.001953125, %v3712_v29  ;;  %v4008_v29 = vld [vmem:[#allocation5 + $0x98] sm:$0xff] }
0x135f   :  { %v6414_v31 = vpop.f32.mrf.mxu1 }
0x1360   :  { %v3718_v53 = vadd.f32 1e-05, %v3716_v30  ;;  %v4137_v30 = vld [vmem:[#allocation7 + $0x668] sm:$0xff]  ;;  %v4136_v31 = vld [vmem:[#allocation7 + $0x660] sm:$0xff] }
0x1362   :  { %6666 = vrsqrt.f32 %v3718_v53  ;;  %v4135_v53 = vld [vmem:[#allocation7 + $0x658] sm:$0xff] }
0x136f   :  { %v6667_v59 = vpop.eup %6666 }
0x1370   :  { %v3720_v37 = vmul.f32 %v6667_v59, %v3717_v35  ;;  %v7748_v35 = vld [vmem:[%s7914_s7 + $0x48] sm:$0xff]  ;;  %v4134_v59 = vld [vmem:[#allocation7 + $0x650] sm:$0xff] }
0x1372   :  { %6418 = vmatmul.mubr.msk.f32.vlgmr.msra.gmra.mxu0 %vm696_vm2, %v3720_v37  ;;  %v3722_v44 = vmul.f32 %v3720_v37, %v7689_v10  ;;  %v4109_v10 = vld [vmem:[#allocation7 + $0x690] sm:$0xff]  ;;  %v7755_v37 = vld [vmem:[%s7914_s7 + $0x40] sm:$0xff] }
0x1373   :  { %6421 = vmatpush3.msra.mxu0 %v7494_v13  ;;  %6422 = vmatprep.mubr.msk.f32.mxu0 %vm6800_vm1, %v6799_v5  ;;  %v4108_v13 = vld [vmem:[#allocation7 + $0x688] sm:$0xff] }
0x1374   :  { %v3723_v4 = vsub.f32 %v3721_v42, %v3722_v44  ;;  %6517 = vmatprep.subr.mxu1 %v4109_v10  ;;  %v4133_v42 = vld [vmem:[#allocation7 + $0x648] sm:$0xff]  ;;  %v7762_v44 = vld [vmem:[%s7914_s7 + $0x38] sm:$0xff] }
0x1375   :  { %6518 = vmatpush3.msra.mxu1 %v4109_v10  ;;  %v7783_v10 = vld [vmem:[%s7914_s7 + $0x20] sm:$0xff] }
0x1376   :  { %6423 = vmatmul.mubr.msk.f32.vlgmr.msra.gmra.mxu0 %vm696_vm2, %v3723_v4  ;;  %6519 = vmatprep.subr.mxu1 %v4108_v13  ;;  %v4132_v4 = vld [vmem:[#allocation7 + $0x640] sm:$0xff] }
0x1377   :  { %6520 = vmatpush3.msra.mxu1 %v4108_v13  ;;  %6433 = vmatprep.mubr.msk.f32.mxu0 %vm99_vm0, %v3903_v34  ;;  %v4129_v13 = vld [vmem:[#allocation7 + $0x628] sm:$0xff]  ;;  %v4128_v34 = vld [vmem:[#allocation7 + $0x620] sm:$0xff] }
0x1378   :  { %6521 = vmatprep.subr.mxu1 %v4107_v14 }
0x1379   :  { %6522 = vmatpush3.msra.mxu1 %v4107_v14  ;;  %v7790_v14 = vld [vmem:[%s7914_s7 + $0x18] sm:$0xff] }
0x137a   :  { %6567 = vmatprep.subr.mxu1 %v6799_v5 }
0x1432   :  { %v3793_v17 = vpop.f32.mrf.mxu0 }
0x1433   :  { %v3800_v36 = vrot.slane %v3793_v17, %v7099_v61  ;;  %v7797_v17 = vld [vmem:[%s7914_s7 + $0x10] sm:$0xff] }
0x1434   :  { %v6419_v18 = vpop.f32.mrf.mxu0 }
0x1435   :  { %v3801_v41 = vmul.f32 %v3800_v36, %v7673_v26  ;;  %v3802_v46 = vmul.f32 %v3800_v36, %v7675_v28  ;;  %v3803_v38 = vmul.f32 %v3800_v36, %v7679_v32  ;;  %v3804_v50 = vmul.f32 %v3800_v36, %v7681_v33  ;;  %v7804_v36 = vld [vmem:[%s7914_s7 + $0x8] sm:$0xff]  ;;  %v7811_v18 = vld [vmem:[%s7914_s7] sm:$0xff] }
0x1436   :  { %v3874_v45 = vpop.f32.mrf.mxu0 }
0x1437   :  { %v3881_v54 = vrot.slane %v3874_v45, %v7099_v61  ;;  %v4126_v45 = vld [vmem:[#allocation7 + $0x610] sm:$0xff] }
0x1438   :  { %v6424_v58 = vpop.f32.mrf.mxu0 }
0x1439   :  { %v3882_v63 = vadd.f32 %v3881_v54, %v3801_v41  ;;  %v3883_v0 = vadd.f32 %v3881_v54, %v3802_v46  ;;  %v3884_v57 = vadd.f32 %v3881_v54, %v3803_v38  ;;  %v3885_v55 = vadd.f32 %v3881_v54, %v3804_v50  ;;  %v4127_v41 = vld [vmem:[#allocation7 + $0x618] sm:$0xff]  ;;  %v4125_v46 = vld [vmem:[#allocation7 + $0x608] sm:$0xff]  ;;  %v4124_v38 = vld [vmem:[#allocation7 + $0x600] sm:$0xff] }
0x143a   :  { %v4326_v50 = vld [vmem:[#allocation7 + $0x778] sm:$0xff] }
0x143b   :  { %vm3886_vm15 = vcmp.ge.f32.partialorder %v3882_v63, 0.0  ;;  %vm3887_vm3 = vcmp.ge.f32.partialorder %v3883_v0, 0.0  ;;  %vm3888_vm4 = vcmp.ge.f32.partialorder %v3884_v57, 0.0  ;;  %vm3889_vm5 = vcmp.ge.f32.partialorder %v3885_v55, 0.0 }
0x143c   :  { %v3890_v3 = vmul.f32 0.01, %v3882_v63  ;;  %v3891_v26 = vmul.f32 0.01, %v3883_v0  ;;  %v3892_v16 = vmul.f32 0.01, %v3884_v57 }
0x143d   :  { %v3893_v1 = vmul.f32 0.01, %v3885_v55 }
0x143e   :  { %v3894_v28 = vsel %vm3886_vm15, %v3882_v63, %v3890_v3  ;;  %v3895_v2 = vsel %vm3887_vm3, %v3883_v0, %v3891_v26  ;;  %v3896_v32 = vsel %vm3888_vm4, %v3884_v57, %v3892_v16  ;;  %v4325_v63 = vld [vmem:[#allocation7 + $0x770] sm:$0xff]  ;;  %v4324_v57 = vld [vmem:[#allocation7 + $0x768] sm:$0xff]  ;;  %v4323_v3 = vld [vmem:[#allocation7 + $0x760] sm:$0xff] }
0x143f   :  { %v3897_v22 = vsel %vm3889_vm5, %v3885_v55, %v3893_v1  ;;  %v3898_v33 = vadd.f32 %v3894_v28, %v7284_v39  ;;  %v3899_v49 = vadd.f32 %v3895_v2, %v7289_v40  ;;  %v3900_v23 = vadd.f32 %v3896_v32, %v7299_v47  ;;  %v3904_v39 = vld [vmem:[#allocation2 + $0x88] sm:$0xff]  ;;  %v3905_v40 = vld [vmem:[#allocation2 + $0x90] sm:$0xff]  ;;  %v4005_v47 = vld [vmem:[#allocation5 + $0x80] sm:$0xff] }
0x1440   :  { %v3901_v21 = vadd.f32 %v3897_v22, %v7294_v43  ;;  %v3906_v43 = vld [vmem:[#allocation2 + $0x98] sm:$0xff]  ;;  %v4321_v28 = vld [vmem:[#allocation7 + $0x750] sm:$0xff]  ;;  %v4320_v2 = vld [vmem:[#allocation7 + $0x748] sm:$0xff] }
0x1441   :  { %6523 = vmatprep.mubr.f32.mxu1 %v3898_v33  ;;  %v4322_v16 = vld [vmem:[#allocation7 + $0x758] sm:$0xff]  ;;  %v4319_v32 = vld [vmem:[#allocation7 + $0x740] sm:$0xff] }
0x1442   :  { %6425 = vmatprep.subr.mxu0 %v3901_v21  ;;  %6524 = vmatmul.mubr.f32.vlgmr.msra.gmra.mxu1 %v3899_v49  ;;  %v4318_v22 = vld [vmem:[#allocation7 + $0x738] sm:$0xff] }
0x1443   :  { %6426 = vmatpush3.msra.mxu0 %v3901_v21  ;;  %6526 = vmatprep.mubr.f32.mxu1 %v3900_v23 }
0x1444   :  { %6427 = vmatprep.subr.mxu0 %v3900_v23  ;;  %6568 = vmatpush3.msra.mxu1 %v7610_v48 }
0x1445   :  { %6428 = vmatpush3.msra.mxu0 %v3900_v23  ;;  %6569 = vmatprep.subr.mxu1 %v6799_v5 }
0x1446   :  { %6429 = vmatprep.subr.mxu0 %v3899_v49  ;;  %6527 = vmatmul.mubr.f32.gmra.mxu1 %v3901_v21 }
0x1447   :  { %6430 = vmatpush3.msra.mxu0 %v3899_v49  ;;  %6570 = vmatpush3.msra.mxu1 %v7617_v6 }
0x1448   :  { %6431 = vmatprep.subr.mxu0 %v3898_v33  ;;  %6571 = vmatprep.subr.mxu1 %v6799_v5 }
0x1449   :  { %6432 = vmatpush3.msra.mxu0 %v3898_v33  ;;  %6572 = vmatpush3.msra.mxu1 %v7624_v8 }
0x144a   :  { %6434 = vmatmul.mubr.msk.f32.vlgmr.msra.gmra.mxu0 %vm99_vm0, %v3904_v39  ;;  %6439 = vmatprep.subr.mxu0 %v3901_v21  ;;  %v4313_v39 = vld [vmem:[#allocation7 + $0x710] sm:$0xff] }
0x144b   :  { %6440 = vmatpush3.msra.mxu0 %v3901_v21  ;;  %6436 = vmatprep.mubr.msk.f32.mxu0 %vm99_vm0, %v3905_v40  ;;  %v4315_v21 = vld [vmem:[#allocation7 + $0x720] sm:$0xff]  ;;  %v4312_v40 = vld [vmem:[#allocation7 + $0x708] sm:$0xff] }
0x144c   :  { %6441 = vmatprep.subr.mxu0 %v3900_v23  ;;  %6573 = vmatprep.subr.mxu1 %v6799_v5 }
0x144d   :  { %6442 = vmatpush3.msra.mxu0 %v3900_v23  ;;  %6574 = vmatpush3.msra.mxu1 %v7633_v56  ;;  %v4314_v23 = vld [vmem:[#allocation7 + $0x718] sm:$0xff] }
0x144e   :  { %6437 = vmatmul.mubr.msk.f32.gmra.mxu0 %vm99_vm0, %v3906_v43  ;;  %6443 = vmatprep.subr.mxu0 %v3899_v49 }
0x144f   :  { %6444 = vmatpush3.msra.mxu0 %v3899_v49  ;;  %6447 = vmatprep.mubr.msk.f32.mxu0 %vm99_vm0, %v4005_v47  ;;  %v4316_v49 = vld [vmem:[#allocation7 + $0x728] sm:$0xff]  ;;  %v4311_v47 = vld [vmem:[#allocation7 + $0x700] sm:$0xff] }
0x1450   :  { %6445 = vmatprep.subr.mxu0 %v3898_v33  ;;  %6575 = vmatprep.subr.mxu1 %v6799_v5 }
0x1451   :  { %6446 = vmatpush3.msra.mxu0 %v3898_v33  ;;  %6576 = vmatpush3.msra.mxu1 %v7640_v11  ;;  %v4317_v33 = vld [vmem:[#allocation7 + $0x730] sm:$0xff] }
0x1452   :  { %6448 = vmatmul.mubr.msk.f32.vlgmr.msra.gmra.mxu0 %vm99_vm0, %v4006_v25  ;;  %6453 = vmatprep.subr.mxu0 %v4139_v24 }
0x1453   :  { %6450 = vmatprep.mubr.msk.f32.mxu0 %vm99_vm0, %v4007_v15  ;;  %6454 = vmatpush3.msra.mxu0 %v4139_v24 }
0x1454   :  { %6455 = vmatprep.subr.mxu0 %v4138_v27  ;;  %6577 = vmatprep.subr.mxu1 %v6799_v5 }
0x1455   :  { %6456 = vmatpush3.msra.mxu0 %v4138_v27  ;;  %6578 = vmatpush3.msra.mxu1 %v7647_v62 }
0x1456   :  { %6451 = vmatmul.mubr.msk.f32.gmra.mxu0 %vm99_vm0, %v4008_v29  ;;  %6457 = vmatprep.subr.mxu0 %v4137_v30 }
0x1457   :  { %6458 = vmatpush3.msra.mxu0 %v4137_v30  ;;  %6579 = vmatprep.subr.mxu1 %v6799_v5 }
0x1458   :  { %6459 = vmatprep.subr.mxu0 %v4136_v31  ;;  %6580 = vmatpush3.msra.mxu1 %v7748_v35 }
0x1459   :  { %6460 = vmatpush3.msra.mxu0 %v4136_v31  ;;  %6581 = vmatprep.subr.mxu1 %v6799_v5 }
0x145a   :  { %6461 = vmatprep.subr.mxu0 %v4135_v53  ;;  %6582 = vmatpush3.msra.mxu1 %v7755_v37 }
0x145b   :  { %6462 = vmatpush3.msra.mxu0 %v4135_v53  ;;  %6583 = vmatprep.subr.mxu1 %v6799_v5 }
0x145c   :  { %6463 = vmatprep.subr.mxu0 %v4134_v59  ;;  %6584 = vmatpush3.msra.mxu1 %v7762_v44 }
0x145d   :  { %6464 = vmatpush3.msra.mxu0 %v4134_v59  ;;  %6585 = vmatprep.subr.mxu1 %v6799_v5  ;;  %v4933_v59 = vld [vmem:[%s7911_s4 + $0x4] ss:$0 sm:$0xff] }
0x145e   :  { %6465 = vmatprep.subr.mxu0 %v4133_v42  ;;  %6586 = vmatpush3.msra.mxu1 %v7769_v7 }
0x145f   :  { %6466 = vmatpush3.msra.mxu0 %v4133_v42  ;;  %6587 = vmatprep.subr.mxu1 %v6799_v5 }
0x1460   :  { %6467 = vmatprep.subr.mxu0 %v4132_v4  ;;  %6588 = vmatpush3.msra.mxu1 %v7776_v51 }
0x1461   :  { %6468 = vmatpush3.msra.mxu0 %v4132_v4  ;;  %6589 = vmatprep.subr.mxu1 %v6799_v5 }
0x1462   :  { %6469 = vmatprep.subr.mxu0 %v4131_v9  ;;  %6590 = vmatpush3.msra.mxu1 %v7783_v10 }
0x1463   :  { %6470 = vmatpush3.msra.mxu0 %v4131_v9  ;;  %6591 = vmatprep.subr.mxu1 %v6799_v5 }
0x1464   :  { %6471 = vmatprep.subr.mxu0 %v4130_v12  ;;  %6592 = vmatpush3.msra.mxu1 %v7790_v14 }
0x1465   :  { %6472 = vmatpush3.msra.mxu0 %v4130_v12  ;;  %6593 = vmatprep.subr.mxu1 %v6799_v5 }
0x1466   :  { %6473 = vmatprep.subr.mxu0 %v4129_v13  ;;  %6594 = vmatpush3.msra.mxu1 %v7797_v17 }
0x1467   :  { %6474 = vmatpush3.msra.mxu0 %v4129_v13  ;;  %6595 = vmatprep.subr.mxu1 %v6799_v5 }
0x1468   :  { %6475 = vmatprep.subr.mxu0 %v4128_v34  ;;  %6596 = vmatpush3.msra.mxu1 %v7804_v36 }
0x1469   :  { %6476 = vmatpush3.msra.mxu0 %v4128_v34  ;;  %6597 = vmatprep.subr.mxu1 %v6799_v5 }
0x146a   :  { %6598 = vmatpush3.msra.mxu1 %v7811_v18  ;;  %6599 = vmatprep.mubr.msk.f32.mxu1 %vm6800_vm1, %v6799_v5 }
0x146b   :  { %6602 = vmatprep.subr.mxu1 %v6799_v5  ;;  %6477 = vmatprep.subr.mxu0 %v4127_v41 }
0x146c   :  { %6478 = vmatpush3.msra.mxu0 %v4127_v41 }
0x146d   :  { %6479 = vmatprep.subr.mxu0 %v4126_v45 }
0x146e   :  { %6480 = vmatpush3.msra.mxu0 %v4126_v45 }
0x146f   :  { %6481 = vmatprep.subr.mxu0 %v4125_v46 }
0x1470   :  { %6482 = vmatpush3.msra.mxu0 %v4125_v46 }
0x1471   :  { %6483 = vmatprep.subr.mxu0 %v4124_v38 }
0x1472   :  { %6484 = vmatpush3.msra.mxu0 %v4124_v38 }
0x1473   :  { %6529 = vmatprep.subr.mxu0 %v4326_v50 }
0x150a   :  { %v6435_v54 = vpop.f32.mrf.mxu0 }
0x150c   :  { %v3985_v58 = vpop.f32.mrf.mxu0 }
0x150d   :  { %6485 = vmatprep.mubr.f32.mxu0 %v3985_v58 }
0x150e   :  { %v6438_v0 = vpop.f32.mrf.mxu0  ;;  %6486 = vmatmul.mubr.f32.vlgmr.msra.gmra.mxu0 %v6435_v54 }
0x150f   :  { %6530 = vmatpush3.msra.mxu0 %v4326_v50  ;;  %v6707_v50 = vld [vmem:[%s7915_s8] sm:$0xff] }
0x1510   :  { %6531 = vmatprep.subr.mxu0 %v4325_v63  ;;  %v3995_v55 = vpop.f32.mrf.mxu0 }
0x1511   :  { %6532 = vmatpush3.msra.mxu0 %v4325_v63  ;;  %6488 = vmatprep.mubr.f32.mxu0 %v3995_v55 }
0x1512   :  { %6533 = vmatprep.subr.mxu0 %v4324_v57  ;;  %6489 = vmatmul.mubr.f32.gmra.mxu0 %v6438_v0  ;;  %v6449_v26 = vpop.f32.mrf.mxu0 }
0x1513   :  { %6534 = vmatpush3.msra.mxu0 %v4324_v57 }
0x1514   :  { %6535 = vmatprep.subr.mxu0 %v4323_v3  ;;  %v4087_v1 = vpop.f32.mrf.mxu0 }
0x1515   :  { %6536 = vmatpush3.msra.mxu0 %v4323_v3  ;;  %6561 = vmatprep.mubr.f32.mxu0 %v4087_v1 }
0x1516   :  { %6537 = vmatprep.subr.mxu0 %v4322_v16  ;;  %v6452_v43 = vpop.f32.mrf.mxu0 }
0x1517   :  { %6538 = vmatpush3.msra.mxu0 %v4322_v16 }
0x1518   :  { %6539 = vmatprep.subr.mxu0 %v4321_v28  ;;  %v4097_v25 = vpop.f32.mrf.mxu0 }
0x1519   :  { %6540 = vmatpush3.msra.mxu0 %v4321_v28 }
0x151a   :  { %6541 = vmatprep.subr.mxu0 %v4320_v2 }
0x151b   :  { %6542 = vmatpush3.msra.mxu0 %v4320_v2 }
0x151c   :  { %6543 = vmatprep.subr.mxu0 %v4319_v32 }
0x151d   :  { %6544 = vmatpush3.msra.mxu0 %v4319_v32 }
0x151e   :  { %6545 = vmatprep.subr.mxu0 %v4318_v22 }
0x151f   :  { %6546 = vmatpush3.msra.mxu0 %v4318_v22 }
0x1520   :  { %6547 = vmatprep.subr.mxu0 %v4317_v33 }
0x1521   :  { %6548 = vmatpush3.msra.mxu0 %v4317_v33 }
0x1522   :  { %6549 = vmatprep.subr.mxu0 %v4316_v49 }
0x1523   :  { %6550 = vmatpush3.msra.mxu0 %v4316_v49 }
0x1524   :  { %6551 = vmatprep.subr.mxu0 %v4315_v21 }
0x1525   :  { %6552 = vmatpush3.msra.mxu0 %v4315_v21 }
0x1526   :  { %6553 = vmatprep.subr.mxu0 %v4314_v23 }
0x1527   :  { %6554 = vmatpush3.msra.mxu0 %v4314_v23 }
0x1528   :  { %6555 = vmatprep.subr.mxu0 %v4313_v39 }
0x1529   :  { %6556 = vmatpush3.msra.mxu0 %v4313_v39 }
0x152a   :  { %6557 = vmatprep.subr.mxu0 %v4312_v40 }
0x152b   :  { %6558 = vmatpush3.msra.mxu0 %v4312_v40 }
0x152c   :  { %6559 = vmatprep.subr.mxu0 %v4311_v47 }
0x152d   :  { %6560 = vmatpush3.msra.mxu0 %v4311_v47 }
0x152e   :  { %6562 = vmatmul.mubr.f32.vlgmr.msra.gmra.mxu0 %v6449_v26  ;;  %6607 = vmatprep.subr.mxu0 %v6799_v5 }
0x152f   :  { %6564 = vmatprep.mubr.f32.mxu0 %v4097_v25  ;;  %6608 = vmatpush3.msra.mxu0 %v7610_v48 }
0x1530   :  { %6609 = vmatprep.subr.mxu0 %v6799_v5 }
0x1531   :  { %6610 = vmatpush3.msra.mxu0 %v7617_v6 }
0x1532   :  { %6565 = vmatmul.mubr.f32.gmra.mxu0 %v6452_v43  ;;  %6611 = vmatprep.subr.mxu0 %v6799_v5 }
0x1533   :  { %6612 = vmatpush3.msra.mxu0 %v7624_v8  ;;  %6639 = vmatprep.mubr.msk.f32.mxu0 %vm6800_vm1, %v6799_v5  ;;  %v6525_v8 = vpop.f32.mrf.mxu1 }
0x1534   :  { %6613 = vmatprep.subr.mxu0 %v6799_v5 }
0x1535   :  { %6614 = vmatpush3.msra.mxu0 %v7633_v56 }
0x1536   :  { %6615 = vmatprep.subr.mxu0 %v6799_v5 }
0x1537   :  { %6616 = vmatpush3.msra.mxu0 %v7640_v11  ;;  %v4291_v11 = vpop.f32.mrf.mxu1 }
0x1538   :  { %6617 = vmatprep.subr.mxu0 %v6799_v5 }
0x1539   :  { %6618 = vmatpush3.msra.mxu0 %v7647_v62  ;;  %v6528_v24 = vpop.f32.mrf.mxu1 }
0x153a   :  { %6619 = vmatprep.subr.mxu0 %v6799_v5 }
0x153b   :  { %6620 = vmatpush3.msra.mxu0 %v7748_v35  ;;  %v4301_v35 = vpop.f32.mrf.mxu1 }
0x153c   :  { %6621 = vmatprep.subr.mxu0 %v6799_v5 }
0x153d   :  { %6622 = vmatpush3.msra.mxu0 %v7755_v37 }
0x153e   :  { %6623 = vmatprep.subr.mxu0 %v6799_v5 }
0x153f   :  { %6624 = vmatpush3.msra.mxu0 %v7762_v44 }
0x1540   :  { %6625 = vmatprep.subr.mxu0 %v6799_v5 }
0x1541   :  { %6626 = vmatpush3.msra.mxu0 %v7769_v7 }
0x1542   :  { %6627 = vmatprep.subr.mxu0 %v6799_v5 }
0x1543   :  { %6628 = vmatpush3.msra.mxu0 %v7776_v51 }
0x1544   :  { %6629 = vmatprep.subr.mxu0 %v6799_v5 }
0x1545   :  { %6630 = vmatpush3.msra.mxu0 %v7783_v10 }
0x1546   :  { %6631 = vmatprep.subr.mxu0 %v6799_v5 }
0x1547   :  { %6632 = vmatpush3.msra.mxu0 %v7790_v14 }
0x1548   :  { %6633 = vmatprep.subr.mxu0 %v6799_v5 }
0x1549   :  { %6634 = vmatpush3.msra.mxu0 %v7797_v17 }
0x154a   :  { %6635 = vmatprep.subr.mxu0 %v6799_v5 }
0x154b   :  { %6636 = vmatpush3.msra.mxu0 %v7804_v36 }
0x154c   :  { %6637 = vmatprep.subr.mxu0 %v6799_v5 }
0x154d   :  { %6638 = vmatpush3.msra.mxu0 %v7811_v18 }
0x15ce   :  { %v6487_v48 = vpop.f32.mrf.mxu0 }
0x15cf   :  { %v4297_v27 = vadd.f32 %v6525_v8, %v6487_v48 }
0x15d0   :  { %v4206_v6 = vpop.f32.mrf.mxu0 }
0x15d1   :  { %v4292_v29 = vadd.f32 %v4291_v11, %v4206_v6  ;;  %v4670_v11 = vld [vmem:[%s7912_s5 + $0x4] sm:$0x1]  ;;  %s6801_s5 = smov [#allocation8]  }
0x15d2   :  { %v6490_v56 = vpop.f32.mrf.mxu0 }
0x15d3   :  { %v4307_v42 = vadd.f32 %v6528_v24, %v6490_v56 }
0x15d4   :  { %v4216_v62 = vpop.f32.mrf.mxu0 }
0x15d5   :  { %v4302_v44 = vadd.f32 %v4301_v35, %v4216_v62 }
0x15ee   :  { %v6563_v15 = vpop.f32.mrf.mxu0 }
0x15ef   :  { %v4413_v31 = vadd.f32 %v6563_v15, %v4297_v27  ;;  %v4674_v15 = vld [vmem:[%s7913_s6 + $0x4] sm:$0x1]  ;;  %s4864_s6 = sshll.u32 %s6801_s5, 4  ;;  %s4865_s6 = int_to_ptr.vmem [resolvable:$true] %s4864_s6 }
0x15f0   :  { %v4393_v30 = vpop.f32.mrf.mxu0  ;;  %s6768_s11 = scalar_lea.vmem %s4865_s6, 512  ;;  %p6773_p2 = scmp.lt.s32.totalorder %s4865_s6, %s4865_s6 }
0x15f1   :  { %v4412_v53 = vadd.f32 %v4393_v30, %v4292_v29  ;;  %v7856_v9 = vadd.f32 %v4933_v59, %v4413_v31  ;;  %p6769_p1 = scmp.ne.s32.totalorder %s4865_s6, %s6768_s11  ;;  %p6774_p3 = scmp.lt.s32.totalorder %s6768_s11, %s6768_s11 }
0x15f2   :  { %v6566_v37 = vpop.f32.mrf.mxu0 }
0x15f3   :  { %v7854_v4 = vadd.f32 %v4933_v59, %v4412_v53  ;;  %v4415_v51 = vadd.f32 %v6566_v37, %v4307_v42  ;;  %p6775_p4 = por %p6774_p3, %p6773_p2 }
0x15f4   :  { %v4403_v7 = vpop.f32.mrf.mxu0 }
0x15f5   :  { %v4414_v12 = vadd.f32 %v4403_v7, %v4302_v44  ;;  %v4425_v10 = vadd.f32 %v7856_v9, %v7854_v4  ;;  %v7862_v14 = vadd.f32 %v4933_v59, %v4415_v51  ;;  %p6776_p5 = pnand %p6775_p4, %p6769_p1 }
0x15f7   :  { %v7860_v13 = vadd.f32 %v4933_v59, %v4414_v12 }
0x15f9   :  { %v4426_v34 = vadd.f32 %v4425_v10, %v7860_v13 }
0x15fb   :  { %v4427_v17 = vadd.f32 %v4426_v34, %v7862_v14 }
0x15fd   :  { %v4428_v36 = vrot.slane %v4427_v17, 4 }
0x15ff   :  { %v4429_v18 = vadd.f32 %v4428_v36, %v4427_v17 }
0x1601   :  { %v4430_v41 = vrot.slane %v4429_v18, 2 }
0x1603   :  { %v4431_v45 = vadd.f32 %v4430_v41, %v4429_v18 }
0x1605   :  { %v4432_v46 = vrot.slane %v4431_v45, 1 }
0x1607   :  { %v4433_v38 = vadd.f32 %v4432_v46, %v4431_v45 }
0x1609   :  { %6600 = vmatmul.mubr.f32.vlgmr.msra.gmra.mxu1 %v4433_v38 }
0x160a   :  { %6603 = vmatpush3.msra.mxu1 %v6707_v50  ;;  %6604 = vmatprep.mubr.msk.f32.mxu1 %vm6800_vm1, %v6799_v5 }
0x160b   :  { %6642 = vmatprep.subr.mxu1 %v6799_v5 }
0x16c9   :  { %v4500_v54 = vpop.f32.mrf.mxu1 }
0x16ca   :  { %v4504_v58 = vmul.f32 0.001953125, %v4500_v54 }
0x16cb   :  { %v6601_v63 = vpop.f32.mrf.mxu1 }
0x16cc   :  { %6605 = vmatmul.mubr.msk.f32.vlgmr.msra.gmra.mxu1 %vm696_vm2, %v4504_v58 }
0x16cd   :  { %6643 = vmatpush3.msra.mxu1 %v6707_v50  ;;  %6644 = vmatprep.mubr.msk.f32.mxu1 %vm6800_vm1, %v6799_v5 }
0x16ce   :  { %6647 = vmatprep.subr.mxu1 %v6799_v5 }
0x178c   :  { %v4574_v0 = vpop.f32.mrf.mxu1 }
0x178d   :  { %v4581_v57 = vrot.slane %v4574_v0, %v7099_v61 }
0x178e   :  { %v6606_v55 = vpop.f32.mrf.mxu1 }
0x178f   :  { %v4582_v3 = vsub.f32 %v7854_v4, %v4581_v57  ;;  %v4583_v26 = vsub.f32 %v7856_v9, %v4581_v57  ;;  %v4584_v16 = vsub.f32 %v7860_v13, %v4581_v57  ;;  %v4585_v1 = vsub.f32 %v7862_v14, %v4581_v57 }
0x1791   :  { %v4586_v28 = vmul.f32 %v4582_v3, %v4582_v3  ;;  %v4587_v2 = vmul.f32 %v4583_v26, %v4583_v26  ;;  %v4588_v32 = vmul.f32 %v4584_v16, %v4584_v16  ;;  %v4589_v33 = vmul.f32 %v4585_v1, %v4585_v1 }
0x1793   :  { %v4590_v22 = vadd.f32 %v4587_v2, %v4586_v28 }
0x1795   :  { %v4591_v49 = vadd.f32 %v4590_v22, %v4588_v32 }
0x1797   :  { %v4592_v21 = vadd.f32 %v4591_v49, %v4589_v33 }
0x1799   :  { %v4593_v23 = vrot.slane %v4592_v21, 4 }
0x179b   :  { %v4594_v39 = vadd.f32 %v4593_v23, %v4592_v21 }
0x179d   :  { %v4595_v40 = vrot.slane %v4594_v39, 2 }
0x179f   :  { %v4596_v43 = vadd.f32 %v4595_v40, %v4594_v39 }
0x17a1   :  { %v4597_v47 = vrot.slane %v4596_v43, 1 }
0x17a3   :  { %v4598_v25 = vadd.f32 %v4597_v47, %v4596_v43 }
0x17a5   :  { %6640 = vmatmul.mubr.f32.vlgmr.msra.gmra.mxu0 %v4598_v25 }
0x1865   :  { %v4665_v48 = vpop.f32.mrf.mxu0 }
0x1866   :  { %v4669_v6 = vmul.f32 0.001953125, %v4665_v48 }
0x1867   :  { %v6641_v8 = vpop.f32.mrf.mxu0 }
0x1868   :  { %v4671_v56 = vadd.f32 1e-05, %v4669_v6 }
0x186a   :  { %6668 = vrsqrt.f32 %v4671_v56 }
0x1877   :  { %v6669_v62 = vpop.eup %6668 }
0x1878   :  { %v4673_v24 = vmul.f32 %v6669_v62, %v4670_v11 }
0x187a   :  { %6645 = vmatmul.mubr.msk.f32.vlgmr.msra.gmra.mxu1 %vm696_vm2, %v4673_v24  ;;  %v4675_v27 = vmul.f32 %v4673_v24, %v4504_v58 }
0x187b   :  { %6648 = vmatpush3.msra.mxu1 %v6707_v50  ;;  %6649 = vmatprep.mubr.msk.f32.mxu1 %vm6800_vm1, %v6799_v5 }
0x187c   :  { %v4676_v29 = vsub.f32 %v4674_v15, %v4675_v27 }
0x187e   :  { %6650 = vmatmul.mubr.msk.f32.vlgmr.msra.gmra.mxu1 %vm696_vm2, %v4676_v29 }
0x193a   :  { %v4746_v30 = vpop.f32.mrf.mxu1 }
0x193b   :  { %v4753_v31 = vrot.slane %v4746_v30, %v7099_v61 }
0x193c   :  { %v6646_v53 = vpop.f32.mrf.mxu1 }
0x193d   :  { %v4754_v35 = vmul.f32 %v4753_v31, %v7854_v4  ;;  %v4755_v37 = vmul.f32 %v4753_v31, %v7856_v9  ;;  %v4756_v42 = vmul.f32 %v4753_v31, %v7860_v13  ;;  %v4757_v44 = vmul.f32 %v4753_v31, %v7862_v14 }
0x193e   :  { %v4827_v59 = vpop.f32.mrf.mxu1 }
0x193f   :  { %v4834_v7 = vrot.slane %v4827_v59, %v7099_v61 }
0x1940   :  { %v6651_v51 = vpop.f32.mrf.mxu1 }
0x1941   :  { %v4835_v5 = vadd.f32 %v4834_v7, %v4754_v35  ;;  %v4836_v12 = vadd.f32 %v4834_v7, %v4755_v37  ;;  %v4837_v10 = vadd.f32 %v4834_v7, %v4756_v42  ;;  %v4838_v34 = vadd.f32 %v4834_v7, %v4757_v44 }
0x1943   :  { %vm4839_vm0 = vcmp.ge.f32.partialorder %v4835_v5, 0.0  ;;  %vm4840_vm1 = vcmp.ge.f32.partialorder %v4836_v12, 0.0  ;;  %vm4841_vm2 = vcmp.ge.f32.partialorder %v4837_v10, 0.0  ;;  %vm4842_vm6 = vcmp.ge.f32.partialorder %v4838_v34, 0.0 }
0x1944   :  { %v4843_v17 = vmul.f32 0.01, %v4835_v5  ;;  %v4844_v4 = vmul.f32 0.01, %v4836_v12  ;;  %v4845_v36 = vmul.f32 0.01, %v4837_v10 }
0x1945   :  { %v4846_v18 = vmul.f32 0.01, %v4838_v34 }
0x1946   :  { %v4847_v9 = vsel %vm4839_vm0, %v4835_v5, %v4843_v17  ;;  %v4848_v13 = vsel %vm4840_vm1, %v4836_v12, %v4844_v4  ;;  %v4849_v14 = vsel %vm4841_vm2, %v4837_v10, %v4845_v36 }
0x1947   :  { %v4850_v41 = vsel %vm4842_vm6, %v4838_v34, %v4846_v18  ;;  %v4851_v61 = vadd.f32 %v4847_v9, %v7534_v60  ;;  %v4852_v45 = vadd.f32 %v4848_v13, %v7537_v19  ;;  %v4853_v46 = vadd.f32 %v4849_v14, %v7543_v52 }
0x1948   :  { %v4854_v38 = vadd.f32 %v4850_v41, %v7540_v20 }
0x1949   :  { %4855 = vst [vmem:[#allocation8] sm:$0xff] %v4851_v61  ;;  %4856 = vst [vmem:[#allocation8 + $0x8] sm:$0xff] %v4852_v45 }
0x194a   :  { %4857 = vst [vmem:[#allocation8 + $0x10] sm:$0xff] %v4853_v46  ;;  %4858 = vst [vmem:[#allocation8 + $0x18] sm:$0xff] %v4854_v38 }
0x194b   :  { %6779 = shalt.err (!%p6776_p5)
}
0x194c   :  { %4870 = dma.vmem_to_hbm [thread:$0]  %s4865_s6, 512, %s7916_s9, [#allocation4], %s6796_s14, %s6796_s14, %s6797_s15  }
0x194d   :  { %6792 = dma.done.wait [#allocation4], 512  }
0x194e   :  { %6793 = vsyncadd [#allocation4], 4294966784 }
0x194f   :  { %4874 = vsyncpa [#allocation3], 1 }
0x1950   :  { %4875 = vsyncpa [#allocation6], 1 }
0x1951   :  { %4876 = vsyncpa [#allocation4], 1 }

</bundles_post_ra>
